<compile_context>
chip_gen: v5e
topology: v5e:2x2
jax: 0.10.0
libtpu: 0.0.40
codegen_flags: <defaults>
</compile_context>

<pallas_src>
import jax
import jax.numpy as jnp
from jax import lax
from jax.experimental import pallas as pl
from jax.experimental.pallas import tpu as pltpu

NEG_SLOPE = 0.01   # PyTorch default leaky_relu negative slope
BN_EPS = 1e-5      # PyTorch BatchNorm1d default eps


# ----------------------------------------------------------------------------
# chip-adaptive sizing
# ----------------------------------------------------------------------------
def _vmem_capacity_bytes():
    try:
        return int(pltpu.get_tpu_info().vmem_capacity_bytes)
    except Exception:
        return 64 << 20   # conservative default (v7x-sized)


_VMEM_CAP = _vmem_capacity_bytes()
_MAX_ROWS = 512 if _VMEM_CAP <= (64 << 20) else 1024   # keep tiles small on v7x
_VMEM_LIMIT = int(min(_VMEM_CAP // 2, 64 << 20))


# ----------------------------------------------------------------------------
# in-kernel helpers
# ----------------------------------------------------------------------------
def _leaky_relu(x):
    return jnp.where(x > 0, x, NEG_SLOPE * x)


# ----------------------------------------------------------------------------
# Inception block kernel (single fused kernel per layer):
#   bottleneck 1x1 -> all k-convs ('same', one fused im2col matmul)
#   -> (maxpool3 -> 1x1 conv) -> folded-BN shift -> leaky ReLU
#   [-> fused residual add + leaky ReLU] [-> fused GAP + FC head]
# ----------------------------------------------------------------------------
def _make_inception_kernel(kernel_sizes, has_residual, fuse_head):
    nk = len(kernel_sizes)
    pad_l = max((k - 1) // 2 for k in kernel_sizes)
    pad_r = max((k - 1) - (k - 1) // 2 for k in kernel_sizes)
    offsets = tuple(range(-pad_l, pad_r + 1))
    n_taps = len(offsets)

    def kernel(*refs):
        it = iter(refs)
        x_ref = next(it)
        resx_ref = next(it) if has_residual else None
        wb_ref, bb_ref = next(it), next(it)
        wconv_ref, tconv_ref = next(it), next(it)
        wp_ref, tp_ref = next(it), next(it)
        if has_residual:
            wr_ref, tr_ref = next(it), next(it)
        if fuse_head:
            w1_ref, b1_ref = next(it), next(it)
            w2_ref, b2_ref = next(it), next(it)
            w3_ref, b3_ref = next(it), next(it)
        out_ref = next(it)

        nb, L, cin = x_ref.shape
        M = nb * L
        cout = wb_ref.shape[1]
        cp = (nk + 1) * cout

        x3 = x_ref[...]                                 # [nb, L, cin]
        xb = x3.reshape(M, cin).astype(jnp.bfloat16)

        # ---- bottleneck 1x1 conv --------------------------------------------
        # (its bias must see the conv branches' zero 'same' padding, so it is
        #  NOT folded into the downstream shifts)
        x0 = jnp.dot(xb, wb_ref[...],
                     preferred_element_type=jnp.float32) + bb_ref[...]
        x0b = x0.astype(jnp.bfloat16).reshape(nb, L, cout)

        # ---- all k-conv branches in ONE matmul -------------------------------
        # im2col over tap offsets (zero 'same' padding), lane-concatenated,
        # against the tap-padded + BN-folded weight [n_taps*cout, nk*cout].
        cols = []
        for o in offsets:
            take = L - abs(o)
            if take <= 0:
                cols.append(jnp.zeros_like(x0b))
            elif o == 0:
                cols.append(x0b)
            elif o > 0:   # col[l] = x0[l + o], zeros past the right edge
                z = jnp.zeros((nb, o, cout), jnp.bfloat16)
                cols.append(jnp.concatenate([x0b[:, o:, :], z], axis=1))
            else:         # o < 0: col[l] = x0[l + o], zeros before the left edge
                z = jnp.zeros((nb, -o, cout), jnp.bfloat16)
                cols.append(jnp.concatenate([z, x0b[:, :take, :]], axis=1))
        act = jnp.concatenate(cols, axis=-1).reshape(M, n_taps * cout)
        y_conv = _leaky_relu(
            jnp.dot(act, wconv_ref[...], preferred_element_type=jnp.float32)
            + tconv_ref[...])                           # [M, nk*cout]

        # ---- MaxPool1d(3, stride=1, pad=1) + 1x1 conv (BN folded) ------------
        # Edge-replicated shifts are max-equivalent to -inf padding.
        if L > 1:
            x_prev = jnp.concatenate([x3[:, :1, :], x3[:, :L - 1, :]], axis=1)
            x_next = jnp.concatenate([x3[:, 1:, :], x3[:, L - 1:, :]], axis=1)
            pooled = jnp.maximum(jnp.maximum(x3, x_prev), x_next)
        else:
            pooled = x3
        pooled = pooled.reshape(M, cin).astype(jnp.bfloat16)
        y_pool = _leaky_relu(
            jnp.dot(pooled, wp_ref[...], preferred_element_type=jnp.float32)
            + tp_ref[...])                              # [M, cout]

        y = jnp.concatenate([y_conv, y_pool], axis=-1)  # [M, cp] lane-dense

        # ---- fused residual: y = leaky(y + BN(res @ Wr + br)) ---------------
        if has_residual:
            rin = resx_ref.shape[-1]
            rf = resx_ref[...].reshape(M, rin).astype(jnp.bfloat16)
            z = jnp.dot(rf, wr_ref[...],
                        preferred_element_type=jnp.float32) + tr_ref[...]
            y = _leaky_relu(y + z)

        if fuse_head:
            # global average pool over L + fc1/fc2/output (dropouts = identity)
            feat = jnp.mean(y.reshape(nb, L, cp), axis=1)      # [nb, cp]
            h = _leaky_relu(
                jnp.dot(feat.astype(jnp.bfloat16), w1_ref[...],
                        preferred_element_type=jnp.float32) + b1_ref[...])
            h = _leaky_relu(
                jnp.dot(h.astype(jnp.bfloat16), w2_ref[...],
                        preferred_element_type=jnp.float32) + b2_ref[...])
            out_ref[...] = (jnp.dot(h.astype(jnp.bfloat16), w3_ref[...],
                                    preferred_element_type=jnp.float32)
                            + b3_ref[...])
        else:
            out_ref[...] = y.reshape(nb, L, cp).astype(out_ref.dtype)

    return kernel


def _full_spec(a):
    nd = a.ndim
    return pl.BlockSpec(a.shape, lambda n, _nd=nd: (0,) * _nd)


def _pick_batch_block(n, l, max_rows=None):
    """Largest divisor of n with nb*l <= max_rows, preferring >=2 grid steps."""
    max_rows = max_rows or _MAX_ROWS
    divs = [d for d in range(1, n + 1) if n % d == 0 and d * l <= max_rows]
    if not divs:
        return 1
    multi = [d for d in divs if n // d >= 2]   # keep both v7x TCs busy when possible
    return max(multi) if multi else max(divs)


def _pick_head_batch_block(n, l, max_rows=None):
    """Last layer emits [nb, 1] logits blocks: nb must equal N or be a multiple of 8."""
    max_rows = max_rows or _MAX_ROWS
    divs = [d for d in range(1, n + 1)
            if n % d == 0 and d * l <= max_rows and (d == n or d % 8 == 0)]
    if divs:
        multi = [d for d in divs if n // d >= 2]
        return max(multi) if multi else max(divs)
    # TODO(synk): for huge N with no aligned divisor, fall back to an un-fused head
    return n


def inception_block(x3, layer, kernel_sizes, resx3=None, head_p=None):
    """x3: [N, L, Cin_packed] -> [N, L, n_paths*cout] bf16, or [N, 1] logits
    when the FC head is fused into this (last) layer."""
    N, L, cin = x3.shape
    cout = layer["wb"].shape[1]
    n_paths = len(kernel_sizes) + 1
    cp = n_paths * cout
    has_res = resx3 is not None
    fuse_head = head_p is not None

    nb = (_pick_head_batch_block(N, L) if fuse_head
          else _pick_batch_block(N, L))

    args = [x3]
    in_specs = [pl.BlockSpec((nb, L, cin), lambda n: (n, 0, 0))]
    if has_res:
        rcin = resx3.shape[-1]
        args.append(resx3)
        in_specs.append(pl.BlockSpec((nb, L, rcin), lambda n: (n, 0, 0)))

    rest = [layer["wb"], layer["bb"], layer["wconv"], layer["tconv"],
            layer["wp"], layer["tp"]]
    if has_res:
        rest += [layer["wr"], layer["tr"]]
    if fuse_head:
        rest += [head_p["w1"], head_p["b1"], head_p["w2"], head_p["b2"],
                 head_p["w3"], head_p["b3"]]
    args += rest
    in_specs += [_full_spec(a) for a in rest]

    if fuse_head:
        out_shape = jax.ShapeDtypeStruct((N, 1), jnp.float32)
        out_spec = pl.BlockSpec((nb, 1), lambda n: (n, 0))
    else:
        out_shape = jax.ShapeDtypeStruct((N, L, cp), jnp.bfloat16)
        out_spec = pl.BlockSpec((nb, L, cp), lambda n: (n, 0, 0))

    return pl.pallas_call(
        _make_inception_kernel(tuple(kernel_sizes), has_res, fuse_head),
        grid=(N // nb,),
        in_specs=in_specs,
        out_specs=out_spec,
        out_shape=out_shape,
        compiler_params=pltpu.CompilerParams(
            dimension_semantics=("parallel",),
            vmem_limit_bytes=_VMEM_LIMIT),
    )(*args)


# ----------------------------------------------------------------------------
# Parameter construction (deterministic, mirrors module __init__ shapes)
# ----------------------------------------------------------------------------
def configure_channels(num_channels, depth, n_paths):
    in_ch = [num_channels]
    out_ch = [min(256, num_channels)]
    for i in range(1, depth):
        prev_out = out_ch[i - 1]
        in_ch.append(prev_out * n_paths)
        if i < depth // 3:
            out_ch.append(prev_out)
        elif i < 2 * depth // 3:
            out_ch.append(max(prev_out // 2, 32))
        else:
            out_ch.append(max(prev_out // 2, 16))
    return in_ch, out_ch


def _conv1x1_params(key, cin, cout):
    kw, kb = jax.random.split(key)
    w = jax.random.normal(kw, (cin, cout), jnp.float32) / jnp.sqrt(float(cin))
    b = 0.05 * jax.random.normal(kb, (cout,), jnp.float32)
    return w, b


def _convk_params(key, cin, cout, k):
    kw, kb = jax.random.split(key)
    w = jax.random.normal(kw, (k, cin, cout), jnp.float32) / jnp.sqrt(float(cin * k))
    b = 0.05 * jax.random.normal(kb, (cout,), jnp.float32)
    return w, b


def _bn_params(key, c):
    k1, k2, k3, k4 = jax.random.split(key, 4)
    gamma = 1.0 + 0.1 * jax.random.normal(k1, (c,), jnp.float32)
    beta = 0.1 * jax.random.normal(k2, (c,), jnp.float32)
    mean = 0.1 * jax.random.normal(k3, (c,), jnp.float32)
    var = 1.0 + 0.1 * jnp.abs(jax.random.normal(k4, (c,), jnp.float32))
    return gamma, beta, mean, var


def build_params(key, num_channels, depth, kernel_sizes):
    n_paths = len(kernel_sizes) + 1
    in_ch, out_ch = configure_channels(num_channels, depth, n_paths)
    inc_params, res_params = [], {}
    for d in range(depth):
        key, *ks = jax.random.split(key, 4 + len(kernel_sizes))
        cin, cout = in_ch[d], out_ch[d]
        wb, bb = _conv1x1_params(ks[0], cin, cout)
        wc, bc = [], []
        for j, ksz in enumerate(kernel_sizes):
            w, b = _convk_params(ks[1 + j], cout, cout, ksz)
            wc.append(w)
            bc.append(b)
        wp, bp = _conv1x1_params(ks[1 + len(kernel_sizes)], cin, cout)
        key, kbn = jax.random.split(key)
        gamma, beta, mean, var = _bn_params(kbn, n_paths * cout)
        inc_params.append(dict(wb=wb, bb=bb, wc=wc, bc=bc, wp=wp, bp=bp,
                               gamma=gamma, beta=beta, mean=mean, var=var))
        if d % 3 == 2 and d >= 2:
            key, k1, k2 = jax.random.split(key, 3)
            rin = out_ch[d - 2] * n_paths
            rout = out_ch[d] * n_paths
            rwb, rbb = _conv1x1_params(k1, rin, rout)
            rg, rbe, rm, rv = _bn_params(k2, rout)
            res_params[d] = dict(wb=rwb, bb=rbb, gamma=rg, beta=rbe, mean=rm, var=rv)
    key, k1, k2, k3 = jax.random.split(key, 4)
    c_final = n_paths * out_ch[-1]
    w1, b1 = _conv1x1_params(k1, c_final, 64)
    w2, b2 = _conv1x1_params(k2, 64, 16)
    w3, b3 = _conv1x1_params(k3, 16, 1)
    head_params = dict(w1=w1, b1=b1, w2=w2, b2=b2, w3=w3, b3=b3)
    return inc_params, res_params, head_params, in_ch, out_ch


# ----------------------------------------------------------------------------
# One-time prep: fold BN + biases, fuse conv-tap weights, cast to bf16.
# (hoisted out of forward(); run once per parameter set)
# ----------------------------------------------------------------------------
def prepare_params(inc_params, res_params, head_params, kernel_sizes):
    nk = len(kernel_sizes)
    pad_l = max((k - 1) // 2 for k in kernel_sizes)
    pad_r = max((k - 1) - (k - 1) // 2 for k in kernel_sizes)
    n_taps = pad_l + pad_r + 1

    layers = []
    for d, p in enumerate(inc_params):
        cin, cout = p["wb"].shape
        s = p["gamma"] / jnp.sqrt(p["var"] + BN_EPS)       # [n_paths*cout]
        shift = p["beta"] - p["mean"] * s

        # fused, tap-padded, BN-folded conv weight [n_taps*cout, nk*cout]
        wconv = jnp.zeros((n_taps * cout, nk * cout), jnp.float32)
        tconv = jnp.zeros((nk * cout,), jnp.float32)
        for j, ksz in enumerate(kernel_sizes):
            sj = s[j * cout:(j + 1) * cout]
            tj = shift[j * cout:(j + 1) * cout] + p["bc"][j] * sj
            wj = p["wc"][j] * sj[None, None, :]            # [ksz, cout, cout]
            left = (ksz - 1) // 2
            for t in range(ksz):
                g = (t - left) + pad_l
                wconv = wconv.at[g * cout:(g + 1) * cout,
                                 j * cout:(j + 1) * cout].set(wj[t])
            tconv = tconv.at[j * cout:(j + 1) * cout].set(tj)

        sp = s[nk * cout:]
        wp = p["wp"] * sp[None, :]
        tp = shift[nk * cout:] + p["bp"] * sp

        layer = dict(
            wb=p["wb"].astype(jnp.bfloat16),
            bb=p["bb"].reshape(1, cout).astype(jnp.float32),
            wconv=wconv.astype(jnp.bfloat16),
            tconv=tconv.reshape(1, nk * cout),
            wp=wp.astype(jnp.bfloat16),
            tp=tp.reshape(1, cout),
        )
        if d in res_params:
            rp = res_params[d]
            sr = rp["gamma"] / jnp.sqrt(rp["var"] + BN_EPS)
            layer["wr"] = (rp["wb"] * sr[None, :]).astype(jnp.bfloat16)
            layer["tr"] = (rp["beta"] - rp["mean"] * sr + rp["bb"] * sr).reshape(1, -1)
        layers.append(layer)

    hp = head_params
    head_p = dict(
        w1=hp["w1"].astype(jnp.bfloat16), b1=hp["b1"].reshape(1, -1),
        w2=hp["w2"].astype(jnp.bfloat16), b2=hp["b2"].reshape(1, -1),
        w3=hp["w3"].astype(jnp.bfloat16), b3=hp["b3"].reshape(1, -1),
    )
    return layers, head_p


# ----------------------------------------------------------------------------
# Full forward pass (mirrors InceptionTimeModel.forward recent_outputs logic;
# residual input is recent_outputs[0], exactly as in the torch module)
# ----------------------------------------------------------------------------
def forward(x_ncl, layers, head_p, kernel_sizes, res_layers):
    x3 = jnp.transpose(x_ncl, (0, 2, 1))                  # [N, L, Cin]
    recent = [None, None, None]
    depth = len(layers)
    for d, layer in enumerate(layers):
        is_last = (d == depth - 1)
        resx = recent[0] if (d in res_layers and recent[0] is not None) else None
        out = inception_block(x3, layer, kernel_sizes, resx3=resx,
                              head_p=head_p if is_last else None)
        if is_last:
            return out                                    # [N, 1] logits (head fused)
        recent.pop(0)
        recent.append(out)
        x3 = out
    return x3   # unreachable for depth >= 1


# ----------------------------------------------------------------------------
# Pure-JAX reference (f32, same math, no Pallas) for self-verification
# ----------------------------------------------------------------------------
def ref_forward(x_ncl, inc_params, res_params, head_params, kernel_sizes):
    def lrelu(v):
        return jnp.where(v > 0, v, NEG_SLOPE * v)

    def conv1x1(v, w, b):
        return jnp.einsum("nlc,cd->nld", v, w) + b.reshape(1, 1, -1)

    def conv_same(v, w, b):
        k, L = w.shape[0], v.shape[1]
        pl_, pr_ = (k - 1) // 2, (k - 1) - (k - 1) // 2
        vp = jnp.pad(v, ((0, 0), (pl_, pr_), (0, 0)))
        out = sum(jnp.einsum("nlc,cd->nld", vp[:, t:t + L, :], w[t]) for t in range(k))
        return out + b.reshape(1, 1, -1)

    def maxpool3(v):
        L = v.shape[1]
        vp = jnp.pad(v, ((0, 0), (1, 1), (0, 0)), constant_values=-jnp.inf)
        return jnp.maximum(jnp.maximum(vp[:, 0:L], vp[:, 1:L + 1]), vp[:, 2:L + 2])

    def bn(v, g, be, m, var):
        return ((v - m.reshape(1, 1, -1)) * (g.reshape(1, 1, -1)
                / jnp.sqrt(var.reshape(1, 1, -1) + BN_EPS)) + be.reshape(1, 1, -1))

    x = jnp.transpose(x_ncl, (0, 2, 1))
    recent = [None, None, None]
    for d, p in enumerate(inc_params):
        x0 = conv1x1(x, p["wb"], p["bb"])
        branches = [conv_same(x0, p["wc"][j], p["bc"][j])
                    for j in range(len(kernel_sizes))]
        branches.append(conv1x1(maxpool3(x), p["wp"], p["bp"]))
        y = lrelu(bn(jnp.concatenate(branches, axis=-1),
                     p["gamma"], p["beta"], p["mean"], p["var"]))
        if d in res_params and recent[0] is not None:
            rp = res_params[d]
            z = bn(conv1x1(recent[0], rp["wb"], rp["bb"]),
                   rp["gamma"], rp["beta"], rp["mean"], rp["var"])
            y = lrelu(y + z)
        recent.pop(0)
        recent.append(y)
        x = y
    pooled = jnp.mean(x, axis=1)
    h = lrelu(pooled @ head_params["w1"] + head_params["b1"])
    h = lrelu(h @ head_params["w2"] + head_params["b2"])
    return h @ head_params["w3"] + head_params["b3"]


# ----------------------------------------------------------------------------
if __name__ == "__main__":
    DEPTH = 6                  # exercises the d=5 residual connection
    KERNEL_SIZES = (1, 3, 5)   # Inception default
    NUM_CHANNELS = 4
    SEQ_LEN = 16
    BATCH = 2

    key = jax.random.PRNGKey(0)
    key_params, key_x = jax.random.split(key)
    inc_params, res_params, head_params, in_ch, out_ch = build_params(
        key_params, NUM_CHANNELS, DEPTH, KERNEL_SIZES)

    # One-time weight folding / fusion / bf16 cast (hoisted out of forward).
    layers, head_p = prepare_params(inc_params, res_params, head_params, KERNEL_SIZES)
    res_layers = frozenset(res_params.keys())

    # PyTorch-convention input: [N, C, L]
    x = jax.random.normal(key_x, (BATCH, NUM_CHANNELS, SEQ_LEN), jnp.float32)

    fwd = jax.jit(forward, static_argnums=(3, 4))
    out = jax.block_until_ready(fwd(x, layers, head_p, KERNEL_SIZES, res_layers))

    # kernel output vs pure-f32 reference; kernel uses bf16 MXU operands and
    # bf16 inter-layer activation storage, so tolerances are relaxed vs f32.
    ref = jax.block_until_ready(
        ref_forward(x, inc_params, res_params, head_params, KERNEL_SIZES))

    assert out.shape == (BATCH, 1), out.shape
    assert bool(jnp.all(jnp.isfinite(out)))
    assert bool(jnp.allclose(out, ref, atol=2e-1, rtol=2e-1)), (out, ref)
    print("KERNEL_OK")
</pallas_src>

<mosaic_0001>
module attributes {stable_mosaic.version = 11 : i64} {
  func.func @kernel(%arg0: i32, %arg1: memref<1x16x4xf32, #tpu.memory_space<vmem>>, %arg2: memref<4x4xbf16, #tpu.memory_space<vmem>>, %arg3: memref<1x4xf32, #tpu.memory_space<vmem>>, %arg4: memref<20x12xbf16, #tpu.memory_space<vmem>>, %arg5: memref<1x12xf32, #tpu.memory_space<vmem>>, %arg6: memref<4x4xbf16, #tpu.memory_space<vmem>>, %arg7: memref<1x4xf32, #tpu.memory_space<vmem>>, %arg8: memref<1x16x16xbf16, #tpu.memory_space<vmem>>) attributes {dimension_semantics = [#tpu.dimension_semantics<parallel>], iteration_bounds = array<i64: 2>, scalar_prefetch = 0 : i64, scratch_operands = 0 : i64, tpu.core_type = #tpu.core_type<tc>, window_params = [{transform_indices = @transform_0, window_bounds = array<i64: 1, 16, 4>}, {pipeline_mode = #tpu.pipeline_mode<synchronous>, transform_indices = @transform_1, window_bounds = array<i64: 4, 4>}, {pipeline_mode = #tpu.pipeline_mode<synchronous>, transform_indices = @transform_2, window_bounds = array<i64: 1, 4>}, {pipeline_mode = #tpu.pipeline_mode<synchronous>, transform_indices = @transform_3, window_bounds = array<i64: 20, 12>}, {pipeline_mode = #tpu.pipeline_mode<synchronous>, transform_indices = @transform_4, window_bounds = array<i64: 1, 12>}, {pipeline_mode = #tpu.pipeline_mode<synchronous>, transform_indices = @transform_5, window_bounds = array<i64: 4, 4>}, {pipeline_mode = #tpu.pipeline_mode<synchronous>, transform_indices = @transform_6, window_bounds = array<i64: 1, 4>}, {transform_indices = @transform_7, window_bounds = array<i64: 1, 16, 16>}]} {
    %c0 = arith.constant 0 : index
    %c0_0 = arith.constant 0 : index
    %c0_1 = arith.constant 0 : index
    %0 = vector.load %arg1[%c0, %c0_0, %c0_1] : memref<1x16x4xf32, #tpu.memory_space<vmem>>, vector<1x16x4xf32>
    %1 = vector.shape_cast %0 : vector<1x16x4xf32> to vector<16x4xf32>
    %2 = arith.truncf %1 : vector<16x4xf32> to vector<16x4xbf16>
    %c0_2 = arith.constant 0 : index
    %c0_3 = arith.constant 0 : index
    %3 = vector.load %arg2[%c0_2, %c0_3] : memref<4x4xbf16, #tpu.memory_space<vmem>>, vector<4x4xbf16>
    %cst = arith.constant dense<0.000000e+00> : vector<16x4xf32>
    %4 = tpu.matmul %2, %3, %cst {dimension_numbers = #tpu.dot_dimension_numbers<[1], [0], [0], [1], [0, 0, 1, 1], [], []>} : vector<16x4xbf16>, vector<4x4xbf16>, vector<16x4xf32> -> vector<16x4xf32>
    %c0_4 = arith.constant 0 : index
    %c0_5 = arith.constant 0 : index
    %5 = vector.load %arg3[%c0_4, %c0_5] : memref<1x4xf32, #tpu.memory_space<vmem>>, vector<1x4xf32>
    %6 = vector.broadcast %5 : vector<1x4xf32> to vector<16x4xf32>
    %7 = arith.addf %4, %6 : vector<16x4xf32>
    %8 = arith.truncf %7 : vector<16x4xf32> to vector<16x4xbf16>
    %9 = vector.shape_cast %8 : vector<16x4xbf16> to vector<1x16x4xbf16>
    %cst_6 = arith.constant 0.000000e+00 : bf16
    %10 = vector.broadcast %cst_6 : bf16 to vector<1x2x4xbf16>
    %11 = vector.extract_strided_slice %9 {offsets = [0, 0, 0], sizes = [1, 14, 4], strides = [1, 1, 1]} : vector<1x16x4xbf16> to vector<1x14x4xbf16>
    %12 = tpu.concatenate %10, %11 in 1 : vector<1x2x4xbf16>, vector<1x14x4xbf16> -> vector<1x16x4xbf16>
    %cst_7 = arith.constant 0.000000e+00 : bf16
    %13 = vector.broadcast %cst_7 : bf16 to vector<1x1x4xbf16>
    %14 = vector.extract_strided_slice %9 {offsets = [0, 0, 0], sizes = [1, 15, 4], strides = [1, 1, 1]} : vector<1x16x4xbf16> to vector<1x15x4xbf16>
    %15 = tpu.concatenate %13, %14 in 1 : vector<1x1x4xbf16>, vector<1x15x4xbf16> -> vector<1x16x4xbf16>
    %cst_8 = arith.constant 0.000000e+00 : bf16
    %16 = vector.broadcast %cst_8 : bf16 to vector<1x1x4xbf16>
    %17 = vector.extract_strided_slice %9 {offsets = [0, 1, 0], sizes = [1, 15, 4], strides = [1, 1, 1]} : vector<1x16x4xbf16> to vector<1x15x4xbf16>
    %18 = tpu.concatenate %17, %16 in 1 : vector<1x15x4xbf16>, vector<1x1x4xbf16> -> vector<1x16x4xbf16>
    %cst_9 = arith.constant 0.000000e+00 : bf16
    %19 = vector.broadcast %cst_9 : bf16 to vector<1x2x4xbf16>
    %20 = vector.extract_strided_slice %9 {offsets = [0, 2, 0], sizes = [1, 14, 4], strides = [1, 1, 1]} : vector<1x16x4xbf16> to vector<1x14x4xbf16>
    %21 = tpu.concatenate %20, %19 in 1 : vector<1x14x4xbf16>, vector<1x2x4xbf16> -> vector<1x16x4xbf16>
    %22 = tpu.concatenate %12, %15, %9, %18, %21 in 2 : vector<1x16x4xbf16>, vector<1x16x4xbf16>, vector<1x16x4xbf16>, vector<1x16x4xbf16>, vector<1x16x4xbf16> -> vector<1x16x20xbf16>
    %23 = vector.shape_cast %22 : vector<1x16x20xbf16> to vector<16x20xbf16>
    %c0_10 = arith.constant 0 : index
    %c0_11 = arith.constant 0 : index
    %24 = vector.load %arg4[%c0_10, %c0_11] : memref<20x12xbf16, #tpu.memory_space<vmem>>, vector<20x12xbf16>
    %cst_12 = arith.constant dense<0.000000e+00> : vector<16x12xf32>
    %25 = tpu.matmul %23, %24, %cst_12 {dimension_numbers = #tpu.dot_dimension_numbers<[1], [0], [0], [1], [0, 0, 1, 1], [], []>} : vector<16x20xbf16>, vector<20x12xbf16>, vector<16x12xf32> -> vector<16x12xf32>
    %c0_13 = arith.constant 0 : index
    %c0_14 = arith.constant 0 : index
    %26 = vector.load %arg5[%c0_13, %c0_14] : memref<1x12xf32, #tpu.memory_space<vmem>>, vector<1x12xf32>
    %27 = vector.broadcast %26 : vector<1x12xf32> to vector<16x12xf32>
    %28 = arith.addf %25, %27 : vector<16x12xf32>
    %cst_15 = arith.constant 0.000000e+00 : f32
    %29 = vector.broadcast %cst_15 : f32 to vector<16x12xf32>
    %30 = arith.cmpf ogt, %28, %29 : vector<16x12xf32>
    %cst_16 = arith.constant 0.00999999977 : f32
    %31 = vector.broadcast %cst_16 : f32 to vector<16x12xf32>
    %32 = arith.mulf %31, %28 : vector<16x12xf32>
    %33 = arith.select %30, %28, %32 : vector<16x12xi1>, vector<16x12xf32>
    %34 = vector.extract_strided_slice %0 {offsets = [0, 0, 0], sizes = [1, 1, 4], strides = [1, 1, 1]} : vector<1x16x4xf32> to vector<1x1x4xf32>
    %35 = vector.extract_strided_slice %0 {offsets = [0, 0, 0], sizes = [1, 15, 4], strides = [1, 1, 1]} : vector<1x16x4xf32> to vector<1x15x4xf32>
    %36 = tpu.concatenate %34, %35 in 1 : vector<1x1x4xf32>, vector<1x15x4xf32> -> vector<1x16x4xf32>
    %37 = vector.extract_strided_slice %0 {offsets = [0, 1, 0], sizes = [1, 15, 4], strides = [1, 1, 1]} : vector<1x16x4xf32> to vector<1x15x4xf32>
    %38 = vector.extract_strided_slice %0 {offsets = [0, 15, 0], sizes = [1, 1, 4], strides = [1, 1, 1]} : vector<1x16x4xf32> to vector<1x1x4xf32>
    %39 = tpu.concatenate %37, %38 in 1 : vector<1x15x4xf32>, vector<1x1x4xf32> -> vector<1x16x4xf32>
    %40 = arith.maximumf %0, %36 : vector<1x16x4xf32>
    %41 = arith.maximumf %40, %39 : vector<1x16x4xf32>
    %42 = vector.shape_cast %41 : vector<1x16x4xf32> to vector<16x4xf32>
    %43 = arith.truncf %42 : vector<16x4xf32> to vector<16x4xbf16>
    %c0_17 = arith.constant 0 : index
    %c0_18 = arith.constant 0 : index
    %44 = vector.load %arg6[%c0_17, %c0_18] : memref<4x4xbf16, #tpu.memory_space<vmem>>, vector<4x4xbf16>
    %cst_19 = arith.constant dense<0.000000e+00> : vector<16x4xf32>
    %45 = tpu.matmul %43, %44, %cst_19 {dimension_numbers = #tpu.dot_dimension_numbers<[1], [0], [0], [1], [0, 0, 1, 1], [], []>} : vector<16x4xbf16>, vector<4x4xbf16>, vector<16x4xf32> -> vector<16x4xf32>
    %c0_20 = arith.constant 0 : index
    %c0_21 = arith.constant 0 : index
    %46 = vector.load %arg7[%c0_20, %c0_21] : memref<1x4xf32, #tpu.memory_space<vmem>>, vector<1x4xf32>
    %47 = vector.broadcast %46 : vector<1x4xf32> to vector<16x4xf32>
    %48 = arith.addf %45, %47 : vector<16x4xf32>
    %cst_22 = arith.constant 0.000000e+00 : f32
    %49 = vector.broadcast %cst_22 : f32 to vector<16x4xf32>
    %50 = arith.cmpf ogt, %48, %49 : vector<16x4xf32>
    %cst_23 = arith.constant 0.00999999977 : f32
    %51 = vector.broadcast %cst_23 : f32 to vector<16x4xf32>
    %52 = arith.mulf %51, %48 : vector<16x4xf32>
    %53 = arith.select %50, %48, %52 : vector<16x4xi1>, vector<16x4xf32>
    %54 = tpu.concatenate %33, %53 in 1 : vector<16x12xf32>, vector<16x4xf32> -> vector<16x16xf32>
    %55 = vector.shape_cast %54 : vector<16x16xf32> to vector<1x16x16xf32>
    %56 = arith.truncf %55 : vector<1x16x16xf32> to vector<1x16x16xbf16>
    %c0_24 = arith.constant 0 : index
    %c0_25 = arith.constant 0 : index
    %c0_26 = arith.constant 0 : index
    %57 = vector.load %arg8[%c0_24, %c0_25, %c0_26] : memref<1x16x16xbf16, #tpu.memory_space<vmem>>, vector<1x16x16xbf16>
    tpu.vector_store %arg8[%c0_24, %c0_25, %c0_26], %56 {strides = array<i32>} : memref<1x16x16xbf16, #tpu.memory_space<vmem>>, vector<1x16x16xbf16>,
    return
  }
  func.func @transform_0(%arg0: i32) -> (i32, i32, i32) {
    %c0_i32 = arith.constant 0 : i32
    %c0_i32_0 = arith.constant 0 : i32
    %c0_i32_1 = arith.constant 0 : i32
    return %arg0, %c0_i32, %c0_i32_0 : i32, i32, i32
  }
  func.func @transform_1(%arg0: i32) -> (i32, i32) {
    %c0_i32 = arith.constant 0 : i32
    %c0_i32_0 = arith.constant 0 : i32
    %c0_i32_1 = arith.constant 0 : i32
    return %c0_i32, %c0_i32_0 : i32, i32
  }
  func.func @transform_2(%arg0: i32) -> (i32, i32) {
    %c0_i32 = arith.constant 0 : i32
    %c0_i32_0 = arith.constant 0 : i32
    %c0_i32_1 = arith.constant 0 : i32
    return %c0_i32, %c0_i32_0 : i32, i32
  }
  func.func @transform_3(%arg0: i32) -> (i32, i32) {
    %c0_i32 = arith.constant 0 : i32
    %c0_i32_0 = arith.constant 0 : i32
    %c0_i32_1 = arith.constant 0 : i32
    return %c0_i32, %c0_i32_0 : i32, i32
  }
  func.func @transform_4(%arg0: i32) -> (i32, i32) {
    %c0_i32 = arith.constant 0 : i32
    %c0_i32_0 = arith.constant 0 : i32
    %c0_i32_1 = arith.constant 0 : i32
    return %c0_i32, %c0_i32_0 : i32, i32
  }
  func.func @transform_5(%arg0: i32) -> (i32, i32) {
    %c0_i32 = arith.constant 0 : i32
    %c0_i32_0 = arith.constant 0 : i32
    %c0_i32_1 = arith.constant 0 : i32
    return %c0_i32, %c0_i32_0 : i32, i32
  }
  func.func @transform_6(%arg0: i32) -> (i32, i32) {
    %c0_i32 = arith.constant 0 : i32
    %c0_i32_0 = arith.constant 0 : i32
    %c0_i32_1 = arith.constant 0 : i32
    return %c0_i32, %c0_i32_0 : i32, i32
  }
  func.func @transform_7(%arg0: i32) -> (i32, i32, i32) {
    %c0_i32 = arith.constant 0 : i32
    %c0_i32_0 = arith.constant 0 : i32
    %c0_i32_1 = arith.constant 0 : i32
    return %arg0, %c0_i32, %c0_i32_0 : i32, i32, i32
  }
}

module attributes {stable_mosaic.version = 11 : i64} {
  func.func @kernel(%arg0: i32, %arg1: memref<1x16x128xbf16, #tpu.memory_space<vmem>>, %arg2: memref<128x32xbf16, #tpu.memory_space<vmem>>, %arg3: memref<1x32xf32, #tpu.memory_space<vmem>>, %arg4: memref<160x96xbf16, #tpu.memory_space<vmem>>, %arg5: memref<1x96xf32, #tpu.memory_space<vmem>>, %arg6: memref<128x32xbf16, #tpu.memory_space<vmem>>, %arg7: memref<1x32xf32, #tpu.memory_space<vmem>>, %arg8: memref<1x16x128xbf16, #tpu.memory_space<vmem>>) attributes {dimension_semantics = [#tpu.dimension_semantics<parallel>], iteration_bounds = array<i64: 2>, scalar_prefetch = 0 : i64, scratch_operands = 0 : i64, tpu.core_type = #tpu.core_type<tc>, window_params = [{transform_indices = @transform_0, window_bounds = array<i64: 1, 16, 128>}, {pipeline_mode = #tpu.pipeline_mode<synchronous>, transform_indices = @transform_1, window_bounds = array<i64: 128, 32>}, {pipeline_mode = #tpu.pipeline_mode<synchronous>, transform_indices = @transform_2, window_bounds = array<i64: 1, 32>}, {pipeline_mode = #tpu.pipeline_mode<synchronous>, transform_indices = @transform_3, window_bounds = array<i64: 160, 96>}, {pipeline_mode = #tpu.pipeline_mode<synchronous>, transform_indices = @transform_4, window_bounds = array<i64: 1, 96>}, {pipeline_mode = #tpu.pipeline_mode<synchronous>, transform_indices = @transform_5, window_bounds = array<i64: 128, 32>}, {pipeline_mode = #tpu.pipeline_mode<synchronous>, transform_indices = @transform_6, window_bounds = array<i64: 1, 32>}, {transform_indices = @transform_7, window_bounds = array<i64: 1, 16, 128>}]} {
    %c0 = arith.constant 0 : index
    %c0_0 = arith.constant 0 : index
    %c0_1 = arith.constant 0 : index
    %0 = vector.load %arg1[%c0, %c0_0, %c0_1] : memref<1x16x128xbf16, #tpu.memory_space<vmem>>, vector<1x16x128xbf16>
    %1 = vector.shape_cast %0 : vector<1x16x128xbf16> to vector<16x128xbf16>
    %c0_2 = arith.constant 0 : index
    %c0_3 = arith.constant 0 : index
    %2 = vector.load %arg2[%c0_2, %c0_3] : memref<128x32xbf16, #tpu.memory_space<vmem>>, vector<128x32xbf16>
    %cst = arith.constant dense<0.000000e+00> : vector<16x32xf32>
    %3 = tpu.matmul %1, %2, %cst {dimension_numbers = #tpu.dot_dimension_numbers<[1], [0], [0], [1], [0, 0, 1, 1], [], []>} : vector<16x128xbf16>, vector<128x32xbf16>, vector<16x32xf32> -> vector<16x32xf32>
    %c0_4 = arith.constant 0 : index
    %c0_5 = arith.constant 0 : index
    %4 = vector.load %arg3[%c0_4, %c0_5] : memref<1x32xf32, #tpu.memory_space<vmem>>, vector<1x32xf32>
    %5 = vector.broadcast %4 : vector<1x32xf32> to vector<16x32xf32>
    %6 = arith.addf %3, %5 : vector<16x32xf32>
    %7 = arith.truncf %6 : vector<16x32xf32> to vector<16x32xbf16>
    %8 = vector.shape_cast %7 : vector<16x32xbf16> to vector<1x16x32xbf16>
    %cst_6 = arith.constant 0.000000e+00 : bf16
    %9 = vector.broadcast %cst_6 : bf16 to vector<1x2x32xbf16>
    %10 = vector.extract_strided_slice %8 {offsets = [0, 0, 0], sizes = [1, 14, 32], strides = [1, 1, 1]} : vector<1x16x32xbf16> to vector<1x14x32xbf16>
    %11 = tpu.concatenate %9, %10 in 1 : vector<1x2x32xbf16>, vector<1x14x32xbf16> -> vector<1x16x32xbf16>
    %cst_7 = arith.constant 0.000000e+00 : bf16
    %12 = vector.broadcast %cst_7 : bf16 to vector<1x1x32xbf16>
    %13 = vector.extract_strided_slice %8 {offsets = [0, 0, 0], sizes = [1, 15, 32], strides = [1, 1, 1]} : vector<1x16x32xbf16> to vector<1x15x32xbf16>
    %14 = tpu.concatenate %12, %13 in 1 : vector<1x1x32xbf16>, vector<1x15x32xbf16> -> vector<1x16x32xbf16>
    %cst_8 = arith.constant 0.000000e+00 : bf16
    %15 = vector.broadcast %cst_8 : bf16 to vector<1x1x32xbf16>
    %16 = vector.extract_strided_slice %8 {offsets = [0, 1, 0], sizes = [1, 15, 32], strides = [1, 1, 1]} : vector<1x16x32xbf16> to vector<1x15x32xbf16>
    %17 = tpu.concatenate %16, %15 in 1 : vector<1x15x32xbf16>, vector<1x1x32xbf16> -> vector<1x16x32xbf16>
    %cst_9 = arith.constant 0.000000e+00 : bf16
    %18 = vector.broadcast %cst_9 : bf16 to vector<1x2x32xbf16>
    %19 = vector.extract_strided_slice %8 {offsets = [0, 2, 0], sizes = [1, 14, 32], strides = [1, 1, 1]} : vector<1x16x32xbf16> to vector<1x14x32xbf16>
    %20 = tpu.concatenate %19, %18 in 1 : vector<1x14x32xbf16>, vector<1x2x32xbf16> -> vector<1x16x32xbf16>
    %21 = tpu.concatenate %11, %14, %8, %17, %20 in 2 : vector<1x16x32xbf16>, vector<1x16x32xbf16>, vector<1x16x32xbf16>, vector<1x16x32xbf16>, vector<1x16x32xbf16> -> vector<1x16x160xbf16>
    %22 = vector.shape_cast %21 : vector<1x16x160xbf16> to vector<16x160xbf16>
    %c0_10 = arith.constant 0 : index
    %c0_11 = arith.constant 0 : index
    %23 = vector.load %arg4[%c0_10, %c0_11] : memref<160x96xbf16, #tpu.memory_space<vmem>>, vector<160x96xbf16>
    %cst_12 = arith.constant dense<0.000000e+00> : vector<16x96xf32>
    %24 = tpu.matmul %22, %23, %cst_12 {dimension_numbers = #tpu.dot_dimension_numbers<[1], [0], [0], [1], [0, 0, 1, 1], [], []>} : vector<16x160xbf16>, vector<160x96xbf16>, vector<16x96xf32> -> vector<16x96xf32>
    %c0_13 = arith.constant 0 : index
    %c0_14 = arith.constant 0 : index
    %25 = vector.load %arg5[%c0_13, %c0_14] : memref<1x96xf32, #tpu.memory_space<vmem>>, vector<1x96xf32>
    %26 = vector.broadcast %25 : vector<1x96xf32> to vector<16x96xf32>
    %27 = arith.addf %24, %26 : vector<16x96xf32>
    %cst_15 = arith.constant 0.000000e+00 : f32
    %28 = vector.broadcast %cst_15 : f32 to vector<16x96xf32>
    %29 = arith.cmpf ogt, %27, %28 : vector<16x96xf32>
    %cst_16 = arith.constant 0.00999999977 : f32
    %30 = vector.broadcast %cst_16 : f32 to vector<16x96xf32>
    %31 = arith.mulf %30, %27 : vector<16x96xf32>
    %32 = arith.select %29, %27, %31 : vector<16x96xi1>, vector<16x96xf32>
    %33 = vector.extract_strided_slice %0 {offsets = [0, 0, 0], sizes = [1, 1, 128], strides = [1, 1, 1]} : vector<1x16x128xbf16> to vector<1x1x128xbf16>
    %34 = vector.extract_strided_slice %0 {offsets = [0, 0, 0], sizes = [1, 15, 128], strides = [1, 1, 1]} : vector<1x16x128xbf16> to vector<1x15x128xbf16>
    %35 = tpu.concatenate %33, %34 in 1 : vector<1x1x128xbf16>, vector<1x15x128xbf16> -> vector<1x16x128xbf16>
    %36 = vector.extract_strided_slice %0 {offsets = [0, 1, 0], sizes = [1, 15, 128], strides = [1, 1, 1]} : vector<1x16x128xbf16> to vector<1x15x128xbf16>
    %37 = vector.extract_strided_slice %0 {offsets = [0, 15, 0], sizes = [1, 1, 128], strides = [1, 1, 1]} : vector<1x16x128xbf16> to vector<1x1x128xbf16>
    %38 = tpu.concatenate %36, %37 in 1 : vector<1x15x128xbf16>, vector<1x1x128xbf16> -> vector<1x16x128xbf16>
    %39 = arith.maximumf %0, %35 : vector<1x16x128xbf16>
    %40 = arith.maximumf %39, %38 : vector<1x16x128xbf16>
    %41 = vector.shape_cast %40 : vector<1x16x128xbf16> to vector<16x128xbf16>
    %c0_17 = arith.constant 0 : index
    %c0_18 = arith.constant 0 : index
    %42 = vector.load %arg6[%c0_17, %c0_18] : memref<128x32xbf16, #tpu.memory_space<vmem>>, vector<128x32xbf16>
    %cst_19 = arith.constant dense<0.000000e+00> : vector<16x32xf32>
    %43 = tpu.matmul %41, %42, %cst_19 {dimension_numbers = #tpu.dot_dimension_numbers<[1], [0], [0], [1], [0, 0, 1, 1], [], []>} : vector<16x128xbf16>, vector<128x32xbf16>, vector<16x32xf32> -> vector<16x32xf32>
    %c0_20 = arith.constant 0 : index
    %c0_21 = arith.constant 0 : index
    %44 = vector.load %arg7[%c0_20, %c0_21] : memref<1x32xf32, #tpu.memory_space<vmem>>, vector<1x32xf32>
    %45 = vector.broadcast %44 : vector<1x32xf32> to vector<16x32xf32>
    %46 = arith.addf %43, %45 : vector<16x32xf32>
    %cst_22 = arith.constant 0.000000e+00 : f32
    %47 = vector.broadcast %cst_22 : f32 to vector<16x32xf32>
    %48 = arith.cmpf ogt, %46, %47 : vector<16x32xf32>
    %cst_23 = arith.constant 0.00999999977 : f32
    %49 = vector.broadcast %cst_23 : f32 to vector<16x32xf32>
    %50 = arith.mulf %49, %46 : vector<16x32xf32>
    %51 = arith.select %48, %46, %50 : vector<16x32xi1>, vector<16x32xf32>
    %52 = tpu.concatenate %32, %51 in 1 : vector<16x96xf32>, vector<16x32xf32> -> vector<16x128xf32>
    %53 = vector.shape_cast %52 : vector<16x128xf32> to vector<1x16x128xf32>
    %54 = arith.truncf %53 : vector<1x16x128xf32> to vector<1x16x128xbf16>
    %c0_24 = arith.constant 0 : index
    %c0_25 = arith.constant 0 : index
    %c0_26 = arith.constant 0 : index
    %55 = vector.load %arg8[%c0_24, %c0_25, %c0_26] : memref<1x16x128xbf16, #tpu.memory_space<vmem>>, vector<1x16x128xbf16>
    tpu.vector_store %arg8[%c0_24, %c0_25, %c0_26], %54 {strides = array<i32>} : memref<1x16x128xbf16, #tpu.memory_space<vmem>>, vector<1x16x128xbf16>,
    return
  }
  func.func @transform_0(%arg0: i32) -> (i32, i32, i32) {
    %c0_i32 = arith.constant 0 : i32
    %c0_i32_0 = arith.constant 0 : i32
    %c0_i32_1 = arith.constant 0 : i32
    return %arg0, %c0_i32, %c0_i32_0 : i32, i32, i32
  }
  func.func @transform_1(%arg0: i32) -> (i32, i32) {
    %c0_i32 = arith.constant 0 : i32
    %c0_i32_0 = arith.constant 0 : i32
    %c0_i32_1 = arith.constant 0 : i32
    return %c0_i32, %c0_i32_0 : i32, i32
  }
  func.func @transform_2(%arg0: i32) -> (i32, i32) {
    %c0_i32 = arith.constant 0 : i32
    %c0_i32_0 = arith.constant 0 : i32
    %c0_i32_1 = arith.constant 0 : i32
    return %c0_i32, %c0_i32_0 : i32, i32
  }
  func.func @transform_3(%arg0: i32) -> (i32, i32) {
    %c0_i32 = arith.constant 0 : i32
    %c0_i32_0 = arith.constant 0 : i32
    %c0_i32_1 = arith.constant 0 : i32
    return %c0_i32, %c0_i32_0 : i32, i32
  }
  func.func @transform_4(%arg0: i32) -> (i32, i32) {
    %c0_i32 = arith.constant 0 : i32
    %c0_i32_0 = arith.constant 0 : i32
    %c0_i32_1 = arith.constant 0 : i32
    return %c0_i32, %c0_i32_0 : i32, i32
  }
  func.func @transform_5(%arg0: i32) -> (i32, i32) {
    %c0_i32 = arith.constant 0 : i32
    %c0_i32_0 = arith.constant 0 : i32
    %c0_i32_1 = arith.constant 0 : i32
    return %c0_i32, %c0_i32_0 : i32, i32
  }
  func.func @transform_6(%arg0: i32) -> (i32, i32) {
    %c0_i32 = arith.constant 0 : i32
    %c0_i32_0 = arith.constant 0 : i32
    %c0_i32_1 = arith.constant 0 : i32
    return %c0_i32, %c0_i32_0 : i32, i32
  }
  func.func @transform_7(%arg0: i32) -> (i32, i32, i32) {
    %c0_i32 = arith.constant 0 : i32
    %c0_i32_0 = arith.constant 0 : i32
    %c0_i32_1 = arith.constant 0 : i32
    return %arg0, %c0_i32, %c0_i32_0 : i32, i32, i32
  }
}

module attributes {stable_mosaic.version = 11 : i64} {
  func.func @kernel(%arg0: i32, %arg1: memref<1x16x16xbf16, #tpu.memory_space<vmem>>, %arg2: memref<16x32xbf16, #tpu.memory_space<vmem>>, %arg3: memref<1x32xf32, #tpu.memory_space<vmem>>, %arg4: memref<160x96xbf16, #tpu.memory_space<vmem>>, %arg5: memref<1x96xf32, #tpu.memory_space<vmem>>, %arg6: memref<16x32xbf16, #tpu.memory_space<vmem>>, %arg7: memref<1x32xf32, #tpu.memory_space<vmem>>, %arg8: memref<1x16x128xbf16, #tpu.memory_space<vmem>>) attributes {dimension_semantics = [#tpu.dimension_semantics<parallel>], iteration_bounds = array<i64: 2>, scalar_prefetch = 0 : i64, scratch_operands = 0 : i64, tpu.core_type = #tpu.core_type<tc>, window_params = [{transform_indices = @transform_0, window_bounds = array<i64: 1, 16, 16>}, {pipeline_mode = #tpu.pipeline_mode<synchronous>, transform_indices = @transform_1, window_bounds = array<i64: 16, 32>}, {pipeline_mode = #tpu.pipeline_mode<synchronous>, transform_indices = @transform_2, window_bounds = array<i64: 1, 32>}, {pipeline_mode = #tpu.pipeline_mode<synchronous>, transform_indices = @transform_3, window_bounds = array<i64: 160, 96>}, {pipeline_mode = #tpu.pipeline_mode<synchronous>, transform_indices = @transform_4, window_bounds = array<i64: 1, 96>}, {pipeline_mode = #tpu.pipeline_mode<synchronous>, transform_indices = @transform_5, window_bounds = array<i64: 16, 32>}, {pipeline_mode = #tpu.pipeline_mode<synchronous>, transform_indices = @transform_6, window_bounds = array<i64: 1, 32>}, {transform_indices = @transform_7, window_bounds = array<i64: 1, 16, 128>}]} {
    %c0 = arith.constant 0 : index
    %c0_0 = arith.constant 0 : index
    %c0_1 = arith.constant 0 : index
    %0 = vector.load %arg1[%c0, %c0_0, %c0_1] : memref<1x16x16xbf16, #tpu.memory_space<vmem>>, vector<1x16x16xbf16>
    %1 = vector.shape_cast %0 : vector<1x16x16xbf16> to vector<16x16xbf16>
    %c0_2 = arith.constant 0 : index
    %c0_3 = arith.constant 0 : index
    %2 = vector.load %arg2[%c0_2, %c0_3] : memref<16x32xbf16, #tpu.memory_space<vmem>>, vector<16x32xbf16>
    %cst = arith.constant dense<0.000000e+00> : vector<16x32xf32>
    %3 = tpu.matmul %1, %2, %cst {dimension_numbers = #tpu.dot_dimension_numbers<[1], [0], [0], [1], [0, 0, 1, 1], [], []>} : vector<16x16xbf16>, vector<16x32xbf16>, vector<16x32xf32> -> vector<16x32xf32>
    %c0_4 = arith.constant 0 : index
    %c0_5 = arith.constant 0 : index
    %4 = vector.load %arg3[%c0_4, %c0_5] : memref<1x32xf32, #tpu.memory_space<vmem>>, vector<1x32xf32>
    %5 = vector.broadcast %4 : vector<1x32xf32> to vector<16x32xf32>
    %6 = arith.addf %3, %5 : vector<16x32xf32>
    %7 = arith.truncf %6 : vector<16x32xf32> to vector<16x32xbf16>
    %8 = vector.shape_cast %7 : vector<16x32xbf16> to vector<1x16x32xbf16>
    %cst_6 = arith.constant 0.000000e+00 : bf16
    %9 = vector.broadcast %cst_6 : bf16 to vector<1x2x32xbf16>
    %10 = vector.extract_strided_slice %8 {offsets = [0, 0, 0], sizes = [1, 14, 32], strides = [1, 1, 1]} : vector<1x16x32xbf16> to vector<1x14x32xbf16>
    %11 = tpu.concatenate %9, %10 in 1 : vector<1x2x32xbf16>, vector<1x14x32xbf16> -> vector<1x16x32xbf16>
    %cst_7 = arith.constant 0.000000e+00 : bf16
    %12 = vector.broadcast %cst_7 : bf16 to vector<1x1x32xbf16>
    %13 = vector.extract_strided_slice %8 {offsets = [0, 0, 0], sizes = [1, 15, 32], strides = [1, 1, 1]} : vector<1x16x32xbf16> to vector<1x15x32xbf16>
    %14 = tpu.concatenate %12, %13 in 1 : vector<1x1x32xbf16>, vector<1x15x32xbf16> -> vector<1x16x32xbf16>
    %cst_8 = arith.constant 0.000000e+00 : bf16
    %15 = vector.broadcast %cst_8 : bf16 to vector<1x1x32xbf16>
    %16 = vector.extract_strided_slice %8 {offsets = [0, 1, 0], sizes = [1, 15, 32], strides = [1, 1, 1]} : vector<1x16x32xbf16> to vector<1x15x32xbf16>
    %17 = tpu.concatenate %16, %15 in 1 : vector<1x15x32xbf16>, vector<1x1x32xbf16> -> vector<1x16x32xbf16>
    %cst_9 = arith.constant 0.000000e+00 : bf16
    %18 = vector.broadcast %cst_9 : bf16 to vector<1x2x32xbf16>
    %19 = vector.extract_strided_slice %8 {offsets = [0, 2, 0], sizes = [1, 14, 32], strides = [1, 1, 1]} : vector<1x16x32xbf16> to vector<1x14x32xbf16>
    %20 = tpu.concatenate %19, %18 in 1 : vector<1x14x32xbf16>, vector<1x2x32xbf16> -> vector<1x16x32xbf16>
    %21 = tpu.concatenate %11, %14, %8, %17, %20 in 2 : vector<1x16x32xbf16>, vector<1x16x32xbf16>, vector<1x16x32xbf16>, vector<1x16x32xbf16>, vector<1x16x32xbf16> -> vector<1x16x160xbf16>
    %22 = vector.shape_cast %21 : vector<1x16x160xbf16> to vector<16x160xbf16>
    %c0_10 = arith.constant 0 : index
    %c0_11 = arith.constant 0 : index
    %23 = vector.load %arg4[%c0_10, %c0_11] : memref<160x96xbf16, #tpu.memory_space<vmem>>, vector<160x96xbf16>
    %cst_12 = arith.constant dense<0.000000e+00> : vector<16x96xf32>
    %24 = tpu.matmul %22, %23, %cst_12 {dimension_numbers = #tpu.dot_dimension_numbers<[1], [0], [0], [1], [0, 0, 1, 1], [], []>} : vector<16x160xbf16>, vector<160x96xbf16>, vector<16x96xf32> -> vector<16x96xf32>
    %c0_13 = arith.constant 0 : index
    %c0_14 = arith.constant 0 : index
    %25 = vector.load %arg5[%c0_13, %c0_14] : memref<1x96xf32, #tpu.memory_space<vmem>>, vector<1x96xf32>
    %26 = vector.broadcast %25 : vector<1x96xf32> to vector<16x96xf32>
    %27 = arith.addf %24, %26 : vector<16x96xf32>
    %cst_15 = arith.constant 0.000000e+00 : f32
    %28 = vector.broadcast %cst_15 : f32 to vector<16x96xf32>
    %29 = arith.cmpf ogt, %27, %28 : vector<16x96xf32>
    %cst_16 = arith.constant 0.00999999977 : f32
    %30 = vector.broadcast %cst_16 : f32 to vector<16x96xf32>
    %31 = arith.mulf %30, %27 : vector<16x96xf32>
    %32 = arith.select %29, %27, %31 : vector<16x96xi1>, vector<16x96xf32>
    %33 = vector.extract_strided_slice %0 {offsets = [0, 0, 0], sizes = [1, 1, 16], strides = [1, 1, 1]} : vector<1x16x16xbf16> to vector<1x1x16xbf16>
    %34 = vector.extract_strided_slice %0 {offsets = [0, 0, 0], sizes = [1, 15, 16], strides = [1, 1, 1]} : vector<1x16x16xbf16> to vector<1x15x16xbf16>
    %35 = tpu.concatenate %33, %34 in 1 : vector<1x1x16xbf16>, vector<1x15x16xbf16> -> vector<1x16x16xbf16>
    %36 = vector.extract_strided_slice %0 {offsets = [0, 1, 0], sizes = [1, 15, 16], strides = [1, 1, 1]} : vector<1x16x16xbf16> to vector<1x15x16xbf16>
    %37 = vector.extract_strided_slice %0 {offsets = [0, 15, 0], sizes = [1, 1, 16], strides = [1, 1, 1]} : vector<1x16x16xbf16> to vector<1x1x16xbf16>
    %38 = tpu.concatenate %36, %37 in 1 : vector<1x15x16xbf16>, vector<1x1x16xbf16> -> vector<1x16x16xbf16>
    %39 = arith.maximumf %0, %35 : vector<1x16x16xbf16>
    %40 = arith.maximumf %39, %38 : vector<1x16x16xbf16>
    %41 = vector.shape_cast %40 : vector<1x16x16xbf16> to vector<16x16xbf16>
    %c0_17 = arith.constant 0 : index
    %c0_18 = arith.constant 0 : index
    %42 = vector.load %arg6[%c0_17, %c0_18] : memref<16x32xbf16, #tpu.memory_space<vmem>>, vector<16x32xbf16>
    %cst_19 = arith.constant dense<0.000000e+00> : vector<16x32xf32>
    %43 = tpu.matmul %41, %42, %cst_19 {dimension_numbers = #tpu.dot_dimension_numbers<[1], [0], [0], [1], [0, 0, 1, 1], [], []>} : vector<16x16xbf16>, vector<16x32xbf16>, vector<16x32xf32> -> vector<16x32xf32>
    %c0_20 = arith.constant 0 : index
    %c0_21 = arith.constant 0 : index
    %44 = vector.load %arg7[%c0_20, %c0_21] : memref<1x32xf32, #tpu.memory_space<vmem>>, vector<1x32xf32>
    %45 = vector.broadcast %44 : vector<1x32xf32> to vector<16x32xf32>
    %46 = arith.addf %43, %45 : vector<16x32xf32>
    %cst_22 = arith.constant 0.000000e+00 : f32
    %47 = vector.broadcast %cst_22 : f32 to vector<16x32xf32>
    %48 = arith.cmpf ogt, %46, %47 : vector<16x32xf32>
    %cst_23 = arith.constant 0.00999999977 : f32
    %49 = vector.broadcast %cst_23 : f32 to vector<16x32xf32>
    %50 = arith.mulf %49, %46 : vector<16x32xf32>
    %51 = arith.select %48, %46, %50 : vector<16x32xi1>, vector<16x32xf32>
    %52 = tpu.concatenate %32, %51 in 1 : vector<16x96xf32>, vector<16x32xf32> -> vector<16x128xf32>
    %53 = vector.shape_cast %52 : vector<16x128xf32> to vector<1x16x128xf32>
    %54 = arith.truncf %53 : vector<1x16x128xf32> to vector<1x16x128xbf16>
    %c0_24 = arith.constant 0 : index
    %c0_25 = arith.constant 0 : index
    %c0_26 = arith.constant 0 : index
    %55 = vector.load %arg8[%c0_24, %c0_25, %c0_26] : memref<1x16x128xbf16, #tpu.memory_space<vmem>>, vector<1x16x128xbf16>
    tpu.vector_store %arg8[%c0_24, %c0_25, %c0_26], %54 {strides = array<i32>} : memref<1x16x128xbf16, #tpu.memory_space<vmem>>, vector<1x16x128xbf16>,
    return
  }
  func.func @transform_0(%arg0: i32) -> (i32, i32, i32) {
    %c0_i32 = arith.constant 0 : i32
    %c0_i32_0 = arith.constant 0 : i32
    %c0_i32_1 = arith.constant 0 : i32
    return %arg0, %c0_i32, %c0_i32_0 : i32, i32, i32
  }
  func.func @transform_1(%arg0: i32) -> (i32, i32) {
    %c0_i32 = arith.constant 0 : i32
    %c0_i32_0 = arith.constant 0 : i32
    %c0_i32_1 = arith.constant 0 : i32
    return %c0_i32, %c0_i32_0 : i32, i32
  }
  func.func @transform_2(%arg0: i32) -> (i32, i32) {
    %c0_i32 = arith.constant 0 : i32
    %c0_i32_0 = arith.constant 0 : i32
    %c0_i32_1 = arith.constant 0 : i32
    return %c0_i32, %c0_i32_0 : i32, i32
  }
  func.func @transform_3(%arg0: i32) -> (i32, i32) {
    %c0_i32 = arith.constant 0 : i32
    %c0_i32_0 = arith.constant 0 : i32
    %c0_i32_1 = arith.constant 0 : i32
    return %c0_i32, %c0_i32_0 : i32, i32
  }
  func.func @transform_4(%arg0: i32) -> (i32, i32) {
    %c0_i32 = arith.constant 0 : i32
    %c0_i32_0 = arith.constant 0 : i32
    %c0_i32_1 = arith.constant 0 : i32
    return %c0_i32, %c0_i32_0 : i32, i32
  }
  func.func @transform_5(%arg0: i32) -> (i32, i32) {
    %c0_i32 = arith.constant 0 : i32
    %c0_i32_0 = arith.constant 0 : i32
    %c0_i32_1 = arith.constant 0 : i32
    return %c0_i32, %c0_i32_0 : i32, i32
  }
  func.func @transform_6(%arg0: i32) -> (i32, i32) {
    %c0_i32 = arith.constant 0 : i32
    %c0_i32_0 = arith.constant 0 : i32
    %c0_i32_1 = arith.constant 0 : i32
    return %c0_i32, %c0_i32_0 : i32, i32
  }
  func.func @transform_7(%arg0: i32) -> (i32, i32, i32) {
    %c0_i32 = arith.constant 0 : i32
    %c0_i32_0 = arith.constant 0 : i32
    %c0_i32_1 = arith.constant 0 : i32
    return %arg0, %c0_i32, %c0_i32_0 : i32, i32, i32
  }
}

module attributes {stable_mosaic.version = 11 : i64} {
  func.func @kernel(%arg0: i32, %arg1: memref<1x16x16xbf16, #tpu.memory_space<vmem>>, %arg2: memref<16x4xbf16, #tpu.memory_space<vmem>>, %arg3: memref<1x4xf32, #tpu.memory_space<vmem>>, %arg4: memref<20x12xbf16, #tpu.memory_space<vmem>>, %arg5: memref<1x12xf32, #tpu.memory_space<vmem>>, %arg6: memref<16x4xbf16, #tpu.memory_space<vmem>>, %arg7: memref<1x4xf32, #tpu.memory_space<vmem>>, %arg8: memref<1x16x16xbf16, #tpu.memory_space<vmem>>) attributes {dimension_semantics = [#tpu.dimension_semantics<parallel>], iteration_bounds = array<i64: 2>, scalar_prefetch = 0 : i64, scratch_operands = 0 : i64, tpu.core_type = #tpu.core_type<tc>, window_params = [{transform_indices = @transform_0, window_bounds = array<i64: 1, 16, 16>}, {pipeline_mode = #tpu.pipeline_mode<synchronous>, transform_indices = @transform_1, window_bounds = array<i64: 16, 4>}, {pipeline_mode = #tpu.pipeline_mode<synchronous>, transform_indices = @transform_2, window_bounds = array<i64: 1, 4>}, {pipeline_mode = #tpu.pipeline_mode<synchronous>, transform_indices = @transform_3, window_bounds = array<i64: 20, 12>}, {pipeline_mode = #tpu.pipeline_mode<synchronous>, transform_indices = @transform_4, window_bounds = array<i64: 1, 12>}, {pipeline_mode = #tpu.pipeline_mode<synchronous>, transform_indices = @transform_5, window_bounds = array<i64: 16, 4>}, {pipeline_mode = #tpu.pipeline_mode<synchronous>, transform_indices = @transform_6, window_bounds = array<i64: 1, 4>}, {transform_indices = @transform_7, window_bounds = array<i64: 1, 16, 16>}]} {
    %c0 = arith.constant 0 : index
    %c0_0 = arith.constant 0 : index
    %c0_1 = arith.constant 0 : index
    %0 = vector.load %arg1[%c0, %c0_0, %c0_1] : memref<1x16x16xbf16, #tpu.memory_space<vmem>>, vector<1x16x16xbf16>
    %1 = vector.shape_cast %0 : vector<1x16x16xbf16> to vector<16x16xbf16>
    %c0_2 = arith.constant 0 : index
    %c0_3 = arith.constant 0 : index
    %2 = vector.load %arg2[%c0_2, %c0_3] : memref<16x4xbf16, #tpu.memory_space<vmem>>, vector<16x4xbf16>
    %cst = arith.constant dense<0.000000e+00> : vector<16x4xf32>
    %3 = tpu.matmul %1, %2, %cst {dimension_numbers = #tpu.dot_dimension_numbers<[1], [0], [0], [1], [0, 0, 1, 1], [], []>} : vector<16x16xbf16>, vector<16x4xbf16>, vector<16x4xf32> -> vector<16x4xf32>
    %c0_4 = arith.constant 0 : index
    %c0_5 = arith.constant 0 : index
    %4 = vector.load %arg3[%c0_4, %c0_5] : memref<1x4xf32, #tpu.memory_space<vmem>>, vector<1x4xf32>
    %5 = vector.broadcast %4 : vector<1x4xf32> to vector<16x4xf32>
    %6 = arith.addf %3, %5 : vector<16x4xf32>
    %7 = arith.truncf %6 : vector<16x4xf32> to vector<16x4xbf16>
    %8 = vector.shape_cast %7 : vector<16x4xbf16> to vector<1x16x4xbf16>
    %cst_6 = arith.constant 0.000000e+00 : bf16
    %9 = vector.broadcast %cst_6 : bf16 to vector<1x2x4xbf16>
    %10 = vector.extract_strided_slice %8 {offsets = [0, 0, 0], sizes = [1, 14, 4], strides = [1, 1, 1]} : vector<1x16x4xbf16> to vector<1x14x4xbf16>
    %11 = tpu.concatenate %9, %10 in 1 : vector<1x2x4xbf16>, vector<1x14x4xbf16> -> vector<1x16x4xbf16>
    %cst_7 = arith.constant 0.000000e+00 : bf16
    %12 = vector.broadcast %cst_7 : bf16 to vector<1x1x4xbf16>
    %13 = vector.extract_strided_slice %8 {offsets = [0, 0, 0], sizes = [1, 15, 4], strides = [1, 1, 1]} : vector<1x16x4xbf16> to vector<1x15x4xbf16>
    %14 = tpu.concatenate %12, %13 in 1 : vector<1x1x4xbf16>, vector<1x15x4xbf16> -> vector<1x16x4xbf16>
    %cst_8 = arith.constant 0.000000e+00 : bf16
    %15 = vector.broadcast %cst_8 : bf16 to vector<1x1x4xbf16>
    %16 = vector.extract_strided_slice %8 {offsets = [0, 1, 0], sizes = [1, 15, 4], strides = [1, 1, 1]} : vector<1x16x4xbf16> to vector<1x15x4xbf16>
    %17 = tpu.concatenate %16, %15 in 1 : vector<1x15x4xbf16>, vector<1x1x4xbf16> -> vector<1x16x4xbf16>
    %cst_9 = arith.constant 0.000000e+00 : bf16
    %18 = vector.broadcast %cst_9 : bf16 to vector<1x2x4xbf16>
    %19 = vector.extract_strided_slice %8 {offsets = [0, 2, 0], sizes = [1, 14, 4], strides = [1, 1, 1]} : vector<1x16x4xbf16> to vector<1x14x4xbf16>
    %20 = tpu.concatenate %19, %18 in 1 : vector<1x14x4xbf16>, vector<1x2x4xbf16> -> vector<1x16x4xbf16>
    %21 = tpu.concatenate %11, %14, %8, %17, %20 in 2 : vector<1x16x4xbf16>, vector<1x16x4xbf16>, vector<1x16x4xbf16>, vector<1x16x4xbf16>, vector<1x16x4xbf16> -> vector<1x16x20xbf16>
    %22 = vector.shape_cast %21 : vector<1x16x20xbf16> to vector<16x20xbf16>
    %c0_10 = arith.constant 0 : index
    %c0_11 = arith.constant 0 : index
    %23 = vector.load %arg4[%c0_10, %c0_11] : memref<20x12xbf16, #tpu.memory_space<vmem>>, vector<20x12xbf16>
    %cst_12 = arith.constant dense<0.000000e+00> : vector<16x12xf32>
    %24 = tpu.matmul %22, %23, %cst_12 {dimension_numbers = #tpu.dot_dimension_numbers<[1], [0], [0], [1], [0, 0, 1, 1], [], []>} : vector<16x20xbf16>, vector<20x12xbf16>, vector<16x12xf32> -> vector<16x12xf32>
    %c0_13 = arith.constant 0 : index
    %c0_14 = arith.constant 0 : index
    %25 = vector.load %arg5[%c0_13, %c0_14] : memref<1x12xf32, #tpu.memory_space<vmem>>, vector<1x12xf32>
    %26 = vector.broadcast %25 : vector<1x12xf32> to vector<16x12xf32>
    %27 = arith.addf %24, %26 : vector<16x12xf32>
    %cst_15 = arith.constant 0.000000e+00 : f32
    %28 = vector.broadcast %cst_15 : f32 to vector<16x12xf32>
    %29 = arith.cmpf ogt, %27, %28 : vector<16x12xf32>
    %cst_16 = arith.constant 0.00999999977 : f32
    %30 = vector.broadcast %cst_16 : f32 to vector<16x12xf32>
    %31 = arith.mulf %30, %27 : vector<16x12xf32>
    %32 = arith.select %29, %27, %31 : vector<16x12xi1>, vector<16x12xf32>
    %33 = vector.extract_strided_slice %0 {offsets = [0, 0, 0], sizes = [1, 1, 16], strides = [1, 1, 1]} : vector<1x16x16xbf16> to vector<1x1x16xbf16>
    %34 = vector.extract_strided_slice %0 {offsets = [0, 0, 0], sizes = [1, 15, 16], strides = [1, 1, 1]} : vector<1x16x16xbf16> to vector<1x15x16xbf16>
    %35 = tpu.concatenate %33, %34 in 1 : vector<1x1x16xbf16>, vector<1x15x16xbf16> -> vector<1x16x16xbf16>
    %36 = vector.extract_strided_slice %0 {offsets = [0, 1, 0], sizes = [1, 15, 16], strides = [1, 1, 1]} : vector<1x16x16xbf16> to vector<1x15x16xbf16>
    %37 = vector.extract_strided_slice %0 {offsets = [0, 15, 0], sizes = [1, 1, 16], strides = [1, 1, 1]} : vector<1x16x16xbf16> to vector<1x1x16xbf16>
    %38 = tpu.concatenate %36, %37 in 1 : vector<1x15x16xbf16>, vector<1x1x16xbf16> -> vector<1x16x16xbf16>
    %39 = arith.maximumf %0, %35 : vector<1x16x16xbf16>
    %40 = arith.maximumf %39, %38 : vector<1x16x16xbf16>
    %41 = vector.shape_cast %40 : vector<1x16x16xbf16> to vector<16x16xbf16>
    %c0_17 = arith.constant 0 : index
    %c0_18 = arith.constant 0 : index
    %42 = vector.load %arg6[%c0_17, %c0_18] : memref<16x4xbf16, #tpu.memory_space<vmem>>, vector<16x4xbf16>
    %cst_19 = arith.constant dense<0.000000e+00> : vector<16x4xf32>
    %43 = tpu.matmul %41, %42, %cst_19 {dimension_numbers = #tpu.dot_dimension_numbers<[1], [0], [0], [1], [0, 0, 1, 1], [], []>} : vector<16x16xbf16>, vector<16x4xbf16>, vector<16x4xf32> -> vector<16x4xf32>
    %c0_20 = arith.constant 0 : index
    %c0_21 = arith.constant 0 : index
    %44 = vector.load %arg7[%c0_20, %c0_21] : memref<1x4xf32, #tpu.memory_space<vmem>>, vector<1x4xf32>
    %45 = vector.broadcast %44 : vector<1x4xf32> to vector<16x4xf32>
    %46 = arith.addf %43, %45 : vector<16x4xf32>
    %cst_22 = arith.constant 0.000000e+00 : f32
    %47 = vector.broadcast %cst_22 : f32 to vector<16x4xf32>
    %48 = arith.cmpf ogt, %46, %47 : vector<16x4xf32>
    %cst_23 = arith.constant 0.00999999977 : f32
    %49 = vector.broadcast %cst_23 : f32 to vector<16x4xf32>
    %50 = arith.mulf %49, %46 : vector<16x4xf32>
    %51 = arith.select %48, %46, %50 : vector<16x4xi1>, vector<16x4xf32>
    %52 = tpu.concatenate %32, %51 in 1 : vector<16x12xf32>, vector<16x4xf32> -> vector<16x16xf32>
    %53 = vector.shape_cast %52 : vector<16x16xf32> to vector<1x16x16xf32>
    %54 = arith.truncf %53 : vector<1x16x16xf32> to vector<1x16x16xbf16>
    %c0_24 = arith.constant 0 : index
    %c0_25 = arith.constant 0 : index
    %c0_26 = arith.constant 0 : index
    %55 = vector.load %arg8[%c0_24, %c0_25, %c0_26] : memref<1x16x16xbf16, #tpu.memory_space<vmem>>, vector<1x16x16xbf16>
    tpu.vector_store %arg8[%c0_24, %c0_25, %c0_26], %54 {strides = array<i32>} : memref<1x16x16xbf16, #tpu.memory_space<vmem>>, vector<1x16x16xbf16>,
    return
  }
  func.func @transform_0(%arg0: i32) -> (i32, i32, i32) {
    %c0_i32 = arith.constant 0 : i32
    %c0_i32_0 = arith.constant 0 : i32
    %c0_i32_1 = arith.constant 0 : i32
    return %arg0, %c0_i32, %c0_i32_0 : i32, i32, i32
  }
  func.func @transform_1(%arg0: i32) -> (i32, i32) {
    %c0_i32 = arith.constant 0 : i32
    %c0_i32_0 = arith.constant 0 : i32
    %c0_i32_1 = arith.constant 0 : i32
    return %c0_i32, %c0_i32_0 : i32, i32
  }
  func.func @transform_2(%arg0: i32) -> (i32, i32) {
    %c0_i32 = arith.constant 0 : i32
    %c0_i32_0 = arith.constant 0 : i32
    %c0_i32_1 = arith.constant 0 : i32
    return %c0_i32, %c0_i32_0 : i32, i32
  }
  func.func @transform_3(%arg0: i32) -> (i32, i32) {
    %c0_i32 = arith.constant 0 : i32
    %c0_i32_0 = arith.constant 0 : i32
    %c0_i32_1 = arith.constant 0 : i32
    return %c0_i32, %c0_i32_0 : i32, i32
  }
  func.func @transform_4(%arg0: i32) -> (i32, i32) {
    %c0_i32 = arith.constant 0 : i32
    %c0_i32_0 = arith.constant 0 : i32
    %c0_i32_1 = arith.constant 0 : i32
    return %c0_i32, %c0_i32_0 : i32, i32
  }
  func.func @transform_5(%arg0: i32) -> (i32, i32) {
    %c0_i32 = arith.constant 0 : i32
    %c0_i32_0 = arith.constant 0 : i32
    %c0_i32_1 = arith.constant 0 : i32
    return %c0_i32, %c0_i32_0 : i32, i32
  }
  func.func @transform_6(%arg0: i32) -> (i32, i32) {
    %c0_i32 = arith.constant 0 : i32
    %c0_i32_0 = arith.constant 0 : i32
    %c0_i32_1 = arith.constant 0 : i32
    return %c0_i32, %c0_i32_0 : i32, i32
  }
  func.func @transform_7(%arg0: i32) -> (i32, i32, i32) {
    %c0_i32 = arith.constant 0 : i32
    %c0_i32_0 = arith.constant 0 : i32
    %c0_i32_1 = arith.constant 0 : i32
    return %arg0, %c0_i32, %c0_i32_0 : i32, i32, i32
  }
}

module attributes {stable_mosaic.version = 11 : i64} {
  func.func @kernel(%arg0: i32, %arg1: memref<1x16x128xbf16, #tpu.memory_space<vmem>>, %arg2: memref<128x16xbf16, #tpu.memory_space<vmem>>, %arg3: memref<1x16xf32, #tpu.memory_space<vmem>>, %arg4: memref<80x48xbf16, #tpu.memory_space<vmem>>, %arg5: memref<1x48xf32, #tpu.memory_space<vmem>>, %arg6: memref<128x16xbf16, #tpu.memory_space<vmem>>, %arg7: memref<1x16xf32, #tpu.memory_space<vmem>>, %arg8: memref<1x16x64xbf16, #tpu.memory_space<vmem>>) attributes {dimension_semantics = [#tpu.dimension_semantics<parallel>], iteration_bounds = array<i64: 2>, scalar_prefetch = 0 : i64, scratch_operands = 0 : i64, tpu.core_type = #tpu.core_type<tc>, window_params = [{transform_indices = @transform_0, window_bounds = array<i64: 1, 16, 128>}, {pipeline_mode = #tpu.pipeline_mode<synchronous>, transform_indices = @transform_1, window_bounds = array<i64: 128, 16>}, {pipeline_mode = #tpu.pipeline_mode<synchronous>, transform_indices = @transform_2, window_bounds = array<i64: 1, 16>}, {pipeline_mode = #tpu.pipeline_mode<synchronous>, transform_indices = @transform_3, window_bounds = array<i64: 80, 48>}, {pipeline_mode = #tpu.pipeline_mode<synchronous>, transform_indices = @transform_4, window_bounds = array<i64: 1, 48>}, {pipeline_mode = #tpu.pipeline_mode<synchronous>, transform_indices = @transform_5, window_bounds = array<i64: 128, 16>}, {pipeline_mode = #tpu.pipeline_mode<synchronous>, transform_indices = @transform_6, window_bounds = array<i64: 1, 16>}, {transform_indices = @transform_7, window_bounds = array<i64: 1, 16, 64>}]} {
    %c0 = arith.constant 0 : index
    %c0_0 = arith.constant 0 : index
    %c0_1 = arith.constant 0 : index
    %0 = vector.load %arg1[%c0, %c0_0, %c0_1] : memref<1x16x128xbf16, #tpu.memory_space<vmem>>, vector<1x16x128xbf16>
    %1 = vector.shape_cast %0 : vector<1x16x128xbf16> to vector<16x128xbf16>
    %c0_2 = arith.constant 0 : index
    %c0_3 = arith.constant 0 : index
    %2 = vector.load %arg2[%c0_2, %c0_3] : memref<128x16xbf16, #tpu.memory_space<vmem>>, vector<128x16xbf16>
    %cst = arith.constant dense<0.000000e+00> : vector<16x16xf32>
    %3 = tpu.matmul %1, %2, %cst {dimension_numbers = #tpu.dot_dimension_numbers<[1], [0], [0], [1], [0, 0, 1, 1], [], []>} : vector<16x128xbf16>, vector<128x16xbf16>, vector<16x16xf32> -> vector<16x16xf32>
    %c0_4 = arith.constant 0 : index
    %c0_5 = arith.constant 0 : index
    %4 = vector.load %arg3[%c0_4, %c0_5] : memref<1x16xf32, #tpu.memory_space<vmem>>, vector<1x16xf32>
    %5 = vector.broadcast %4 : vector<1x16xf32> to vector<16x16xf32>
    %6 = arith.addf %3, %5 : vector<16x16xf32>
    %7 = arith.truncf %6 : vector<16x16xf32> to vector<16x16xbf16>
    %8 = vector.shape_cast %7 : vector<16x16xbf16> to vector<1x16x16xbf16>
    %cst_6 = arith.constant 0.000000e+00 : bf16
    %9 = vector.broadcast %cst_6 : bf16 to vector<1x2x16xbf16>
    %10 = vector.extract_strided_slice %8 {offsets = [0, 0, 0], sizes = [1, 14, 16], strides = [1, 1, 1]} : vector<1x16x16xbf16> to vector<1x14x16xbf16>
    %11 = tpu.concatenate %9, %10 in 1 : vector<1x2x16xbf16>, vector<1x14x16xbf16> -> vector<1x16x16xbf16>
    %cst_7 = arith.constant 0.000000e+00 : bf16
    %12 = vector.broadcast %cst_7 : bf16 to vector<1x1x16xbf16>
    %13 = vector.extract_strided_slice %8 {offsets = [0, 0, 0], sizes = [1, 15, 16], strides = [1, 1, 1]} : vector<1x16x16xbf16> to vector<1x15x16xbf16>
    %14 = tpu.concatenate %12, %13 in 1 : vector<1x1x16xbf16>, vector<1x15x16xbf16> -> vector<1x16x16xbf16>
    %cst_8 = arith.constant 0.000000e+00 : bf16
    %15 = vector.broadcast %cst_8 : bf16 to vector<1x1x16xbf16>
    %16 = vector.extract_strided_slice %8 {offsets = [0, 1, 0], sizes = [1, 15, 16], strides = [1, 1, 1]} : vector<1x16x16xbf16> to vector<1x15x16xbf16>
    %17 = tpu.concatenate %16, %15 in 1 : vector<1x15x16xbf16>, vector<1x1x16xbf16> -> vector<1x16x16xbf16>
    %cst_9 = arith.constant 0.000000e+00 : bf16
    %18 = vector.broadcast %cst_9 : bf16 to vector<1x2x16xbf16>
    %19 = vector.extract_strided_slice %8 {offsets = [0, 2, 0], sizes = [1, 14, 16], strides = [1, 1, 1]} : vector<1x16x16xbf16> to vector<1x14x16xbf16>
    %20 = tpu.concatenate %19, %18 in 1 : vector<1x14x16xbf16>, vector<1x2x16xbf16> -> vector<1x16x16xbf16>
    %21 = tpu.concatenate %11, %14, %8, %17, %20 in 2 : vector<1x16x16xbf16>, vector<1x16x16xbf16>, vector<1x16x16xbf16>, vector<1x16x16xbf16>, vector<1x16x16xbf16> -> vector<1x16x80xbf16>
    %22 = vector.shape_cast %21 : vector<1x16x80xbf16> to vector<16x80xbf16>
    %c0_10 = arith.constant 0 : index
    %c0_11 = arith.constant 0 : index
    %23 = vector.load %arg4[%c0_10, %c0_11] : memref<80x48xbf16, #tpu.memory_space<vmem>>, vector<80x48xbf16>
    %cst_12 = arith.constant dense<0.000000e+00> : vector<16x48xf32>
    %24 = tpu.matmul %22, %23, %cst_12 {dimension_numbers = #tpu.dot_dimension_numbers<[1], [0], [0], [1], [0, 0, 1, 1], [], []>} : vector<16x80xbf16>, vector<80x48xbf16>, vector<16x48xf32> -> vector<16x48xf32>
    %c0_13 = arith.constant 0 : index
    %c0_14 = arith.constant 0 : index
    %25 = vector.load %arg5[%c0_13, %c0_14] : memref<1x48xf32, #tpu.memory_space<vmem>>, vector<1x48xf32>
    %26 = vector.broadcast %25 : vector<1x48xf32> to vector<16x48xf32>
    %27 = arith.addf %24, %26 : vector<16x48xf32>
    %cst_15 = arith.constant 0.000000e+00 : f32
    %28 = vector.broadcast %cst_15 : f32 to vector<16x48xf32>
    %29 = arith.cmpf ogt, %27, %28 : vector<16x48xf32>
    %cst_16 = arith.constant 0.00999999977 : f32
    %30 = vector.broadcast %cst_16 : f32 to vector<16x48xf32>
    %31 = arith.mulf %30, %27 : vector<16x48xf32>
    %32 = arith.select %29, %27, %31 : vector<16x48xi1>, vector<16x48xf32>
    %33 = vector.extract_strided_slice %0 {offsets = [0, 0, 0], sizes = [1, 1, 128], strides = [1, 1, 1]} : vector<1x16x128xbf16> to vector<1x1x128xbf16>
    %34 = vector.extract_strided_slice %0 {offsets = [0, 0, 0], sizes = [1, 15, 128], strides = [1, 1, 1]} : vector<1x16x128xbf16> to vector<1x15x128xbf16>
    %35 = tpu.concatenate %33, %34 in 1 : vector<1x1x128xbf16>, vector<1x15x128xbf16> -> vector<1x16x128xbf16>
    %36 = vector.extract_strided_slice %0 {offsets = [0, 1, 0], sizes = [1, 15, 128], strides = [1, 1, 1]} : vector<1x16x128xbf16> to vector<1x15x128xbf16>
    %37 = vector.extract_strided_slice %0 {offsets = [0, 15, 0], sizes = [1, 1, 128], strides = [1, 1, 1]} : vector<1x16x128xbf16> to vector<1x1x128xbf16>
    %38 = tpu.concatenate %36, %37 in 1 : vector<1x15x128xbf16>, vector<1x1x128xbf16> -> vector<1x16x128xbf16>
    %39 = arith.maximumf %0, %35 : vector<1x16x128xbf16>
    %40 = arith.maximumf %39, %38 : vector<1x16x128xbf16>
    %41 = vector.shape_cast %40 : vector<1x16x128xbf16> to vector<16x128xbf16>
    %c0_17 = arith.constant 0 : index
    %c0_18 = arith.constant 0 : index
    %42 = vector.load %arg6[%c0_17, %c0_18] : memref<128x16xbf16, #tpu.memory_space<vmem>>, vector<128x16xbf16>
    %cst_19 = arith.constant dense<0.000000e+00> : vector<16x16xf32>
    %43 = tpu.matmul %41, %42, %cst_19 {dimension_numbers = #tpu.dot_dimension_numbers<[1], [0], [0], [1], [0, 0, 1, 1], [], []>} : vector<16x128xbf16>, vector<128x16xbf16>, vector<16x16xf32> -> vector<16x16xf32>
    %c0_20 = arith.constant 0 : index
    %c0_21 = arith.constant 0 : index
    %44 = vector.load %arg7[%c0_20, %c0_21] : memref<1x16xf32, #tpu.memory_space<vmem>>, vector<1x16xf32>
    %45 = vector.broadcast %44 : vector<1x16xf32> to vector<16x16xf32>
    %46 = arith.addf %43, %45 : vector<16x16xf32>
    %cst_22 = arith.constant 0.000000e+00 : f32
    %47 = vector.broadcast %cst_22 : f32 to vector<16x16xf32>
    %48 = arith.cmpf ogt, %46, %47 : vector<16x16xf32>
    %cst_23 = arith.constant 0.00999999977 : f32
    %49 = vector.broadcast %cst_23 : f32 to vector<16x16xf32>
    %50 = arith.mulf %49, %46 : vector<16x16xf32>
    %51 = arith.select %48, %46, %50 : vector<16x16xi1>, vector<16x16xf32>
    %52 = tpu.concatenate %32, %51 in 1 : vector<16x48xf32>, vector<16x16xf32> -> vector<16x64xf32>
    %53 = vector.shape_cast %52 : vector<16x64xf32> to vector<1x16x64xf32>
    %54 = arith.truncf %53 : vector<1x16x64xf32> to vector<1x16x64xbf16>
    %c0_24 = arith.constant 0 : index
    %c0_25 = arith.constant 0 : index
    %c0_26 = arith.constant 0 : index
    %55 = vector.load %arg8[%c0_24, %c0_25, %c0_26] : memref<1x16x64xbf16, #tpu.memory_space<vmem>>, vector<1x16x64xbf16>
    tpu.vector_store %arg8[%c0_24, %c0_25, %c0_26], %54 {strides = array<i32>} : memref<1x16x64xbf16, #tpu.memory_space<vmem>>, vector<1x16x64xbf16>,
    return
  }
  func.func @transform_0(%arg0: i32) -> (i32, i32, i32) {
    %c0_i32 = arith.constant 0 : i32
    %c0_i32_0 = arith.constant 0 : i32
    %c0_i32_1 = arith.constant 0 : i32
    return %arg0, %c0_i32, %c0_i32_0 : i32, i32, i32
  }
  func.func @transform_1(%arg0: i32) -> (i32, i32) {
    %c0_i32 = arith.constant 0 : i32
    %c0_i32_0 = arith.constant 0 : i32
    %c0_i32_1 = arith.constant 0 : i32
    return %c0_i32, %c0_i32_0 : i32, i32
  }
  func.func @transform_2(%arg0: i32) -> (i32, i32) {
    %c0_i32 = arith.constant 0 : i32
    %c0_i32_0 = arith.constant 0 : i32
    %c0_i32_1 = arith.constant 0 : i32
    return %c0_i32, %c0_i32_0 : i32, i32
  }
  func.func @transform_3(%arg0: i32) -> (i32, i32) {
    %c0_i32 = arith.constant 0 : i32
    %c0_i32_0 = arith.constant 0 : i32
    %c0_i32_1 = arith.constant 0 : i32
    return %c0_i32, %c0_i32_0 : i32, i32
  }
  func.func @transform_4(%arg0: i32) -> (i32, i32) {
    %c0_i32 = arith.constant 0 : i32
    %c0_i32_0 = arith.constant 0 : i32
    %c0_i32_1 = arith.constant 0 : i32
    return %c0_i32, %c0_i32_0 : i32, i32
  }
  func.func @transform_5(%arg0: i32) -> (i32, i32) {
    %c0_i32 = arith.constant 0 : i32
    %c0_i32_0 = arith.constant 0 : i32
    %c0_i32_1 = arith.constant 0 : i32
    return %c0_i32, %c0_i32_0 : i32, i32
  }
  func.func @transform_6(%arg0: i32) -> (i32, i32) {
    %c0_i32 = arith.constant 0 : i32
    %c0_i32_0 = arith.constant 0 : i32
    %c0_i32_1 = arith.constant 0 : i32
    return %c0_i32, %c0_i32_0 : i32, i32
  }
  func.func @transform_7(%arg0: i32) -> (i32, i32, i32) {
    %c0_i32 = arith.constant 0 : i32
    %c0_i32_0 = arith.constant 0 : i32
    %c0_i32_1 = arith.constant 0 : i32
    return %arg0, %c0_i32, %c0_i32_0 : i32, i32, i32
  }
}

module attributes {stable_mosaic.version = 11 : i64} {
  func.func @kernel(%arg0: i32, %arg1: memref<2x16x64xbf16, #tpu.memory_space<vmem>>, %arg2: memref<2x16x128xbf16, #tpu.memory_space<vmem>>, %arg3: memref<64x16xbf16, #tpu.memory_space<vmem>>, %arg4: memref<1x16xf32, #tpu.memory_space<vmem>>, %arg5: memref<80x48xbf16, #tpu.memory_space<vmem>>, %arg6: memref<1x48xf32, #tpu.memory_space<vmem>>, %arg7: memref<64x16xbf16, #tpu.memory_space<vmem>>, %arg8: memref<1x16xf32, #tpu.memory_space<vmem>>, %arg9: memref<128x64xbf16, #tpu.memory_space<vmem>>, %arg10: memref<1x64xf32, #tpu.memory_space<vmem>>, %arg11: memref<64x64xbf16, #tpu.memory_space<vmem>>, %arg12: memref<1x64xf32, #tpu.memory_space<vmem>>, %arg13: memref<64x16xbf16, #tpu.memory_space<vmem>>, %arg14: memref<1x16xf32, #tpu.memory_space<vmem>>, %arg15: memref<16x1xbf16, #tpu.memory_space<vmem>>, %arg16: memref<1x1xf32, #tpu.memory_space<vmem>>, %arg17: memref<2x1xf32, #tpu.memory_space<vmem>>) attributes {dimension_semantics = [#tpu.dimension_semantics<parallel>], iteration_bounds = array<i64: 1>, scalar_prefetch = 0 : i64, scratch_operands = 0 : i64, tpu.core_type = #tpu.core_type<tc>, window_params = [{transform_indices = @transform_0, window_bounds = array<i64: 2, 16, 64>}, {transform_indices = @transform_1, window_bounds = array<i64: 2, 16, 128>}, {pipeline_mode = #tpu.pipeline_mode<synchronous>, transform_indices = @transform_2, window_bounds = array<i64: 64, 16>}, {pipeline_mode = #tpu.pipeline_mode<synchronous>, transform_indices = @transform_3, window_bounds = array<i64: 1, 16>}, {pipeline_mode = #tpu.pipeline_mode<synchronous>, transform_indices = @transform_4, window_bounds = array<i64: 80, 48>}, {pipeline_mode = #tpu.pipeline_mode<synchronous>, transform_indices = @transform_5, window_bounds = array<i64: 1, 48>}, {pipeline_mode = #tpu.pipeline_mode<synchronous>, transform_indices = @transform_6, window_bounds = array<i64: 64, 16>}, {pipeline_mode = #tpu.pipeline_mode<synchronous>, transform_indices = @transform_7, window_bounds = array<i64: 1, 16>}, {pipeline_mode = #tpu.pipeline_mode<synchronous>, transform_indices = @transform_8, window_bounds = array<i64: 128, 64>}, {pipeline_mode = #tpu.pipeline_mode<synchronous>, transform_indices = @transform_9, window_bounds = array<i64: 1, 64>}, {pipeline_mode = #tpu.pipeline_mode<synchronous>, transform_indices = @transform_10, window_bounds = array<i64: 64, 64>}, {pipeline_mode = #tpu.pipeline_mode<synchronous>, transform_indices = @transform_11, window_bounds = array<i64: 1, 64>}, {pipeline_mode = #tpu.pipeline_mode<synchronous>, transform_indices = @transform_12, window_bounds = array<i64: 64, 16>}, {pipeline_mode = #tpu.pipeline_mode<synchronous>, transform_indices = @transform_13, window_bounds = array<i64: 1, 16>}, {pipeline_mode = #tpu.pipeline_mode<synchronous>, transform_indices = @transform_14, window_bounds = array<i64: 16, 1>}, {pipeline_mode = #tpu.pipeline_mode<synchronous>, transform_indices = @transform_15, window_bounds = array<i64: 1, 1>}, {transform_indices = @transform_16, window_bounds = array<i64: 2, 1>}]} {
    %c0 = arith.constant 0 : index
    %c0_0 = arith.constant 0 : index
    %c0_1 = arith.constant 0 : index
    %0 = vector.load %arg1[%c0, %c0_0, %c0_1] : memref<2x16x64xbf16, #tpu.memory_space<vmem>>, vector<2x16x64xbf16>
    %1 = vector.shape_cast %0 : vector<2x16x64xbf16> to vector<32x64xbf16>
    %c0_2 = arith.constant 0 : index
    %c0_3 = arith.constant 0 : index
    %2 = vector.load %arg3[%c0_2, %c0_3] : memref<64x16xbf16, #tpu.memory_space<vmem>>, vector<64x16xbf16>
    %cst = arith.constant dense<0.000000e+00> : vector<32x16xf32>
    %3 = tpu.matmul %1, %2, %cst {dimension_numbers = #tpu.dot_dimension_numbers<[1], [0], [0], [1], [0, 0, 1, 1], [], []>} : vector<32x64xbf16>, vector<64x16xbf16>, vector<32x16xf32> -> vector<32x16xf32>
    %c0_4 = arith.constant 0 : index
    %c0_5 = arith.constant 0 : index
    %4 = vector.load %arg4[%c0_4, %c0_5] : memref<1x16xf32, #tpu.memory_space<vmem>>, vector<1x16xf32>
    %5 = vector.broadcast %4 : vector<1x16xf32> to vector<32x16xf32>
    %6 = arith.addf %3, %5 : vector<32x16xf32>
    %7 = arith.truncf %6 : vector<32x16xf32> to vector<32x16xbf16>
    %8 = vector.shape_cast %7 : vector<32x16xbf16> to vector<2x16x16xbf16>
    %cst_6 = arith.constant 0.000000e+00 : bf16
    %9 = vector.broadcast %cst_6 : bf16 to vector<2x2x16xbf16>
    %10 = vector.extract_strided_slice %8 {offsets = [0, 0, 0], sizes = [2, 14, 16], strides = [1, 1, 1]} : vector<2x16x16xbf16> to vector<2x14x16xbf16>
    %11 = tpu.concatenate %9, %10 in 1 : vector<2x2x16xbf16>, vector<2x14x16xbf16> -> vector<2x16x16xbf16>
    %cst_7 = arith.constant 0.000000e+00 : bf16
    %12 = vector.broadcast %cst_7 : bf16 to vector<2x1x16xbf16>
    %13 = vector.extract_strided_slice %8 {offsets = [0, 0, 0], sizes = [2, 15, 16], strides = [1, 1, 1]} : vector<2x16x16xbf16> to vector<2x15x16xbf16>
    %14 = tpu.concatenate %12, %13 in 1 : vector<2x1x16xbf16>, vector<2x15x16xbf16> -> vector<2x16x16xbf16>
    %cst_8 = arith.constant 0.000000e+00 : bf16
    %15 = vector.broadcast %cst_8 : bf16 to vector<2x1x16xbf16>
    %16 = vector.extract_strided_slice %8 {offsets = [0, 1, 0], sizes = [2, 15, 16], strides = [1, 1, 1]} : vector<2x16x16xbf16> to vector<2x15x16xbf16>
    %17 = tpu.concatenate %16, %15 in 1 : vector<2x15x16xbf16>, vector<2x1x16xbf16> -> vector<2x16x16xbf16>
    %cst_9 = arith.constant 0.000000e+00 : bf16
    %18 = vector.broadcast %cst_9 : bf16 to vector<2x2x16xbf16>
    %19 = vector.extract_strided_slice %8 {offsets = [0, 2, 0], sizes = [2, 14, 16], strides = [1, 1, 1]} : vector<2x16x16xbf16> to vector<2x14x16xbf16>
    %20 = tpu.concatenate %19, %18 in 1 : vector<2x14x16xbf16>, vector<2x2x16xbf16> -> vector<2x16x16xbf16>
    %21 = tpu.concatenate %11, %14, %8, %17, %20 in 2 : vector<2x16x16xbf16>, vector<2x16x16xbf16>, vector<2x16x16xbf16>, vector<2x16x16xbf16>, vector<2x16x16xbf16> -> vector<2x16x80xbf16>
    %22 = vector.shape_cast %21 : vector<2x16x80xbf16> to vector<32x80xbf16>
    %c0_10 = arith.constant 0 : index
    %c0_11 = arith.constant 0 : index
    %23 = vector.load %arg5[%c0_10, %c0_11] : memref<80x48xbf16, #tpu.memory_space<vmem>>, vector<80x48xbf16>
    %cst_12 = arith.constant dense<0.000000e+00> : vector<32x48xf32>
    %24 = tpu.matmul %22, %23, %cst_12 {dimension_numbers = #tpu.dot_dimension_numbers<[1], [0], [0], [1], [0, 0, 1, 1], [], []>} : vector<32x80xbf16>, vector<80x48xbf16>, vector<32x48xf32> -> vector<32x48xf32>
    %c0_13 = arith.constant 0 : index
    %c0_14 = arith.constant 0 : index
    %25 = vector.load %arg6[%c0_13, %c0_14] : memref<1x48xf32, #tpu.memory_space<vmem>>, vector<1x48xf32>
    %26 = vector.broadcast %25 : vector<1x48xf32> to vector<32x48xf32>
    %27 = arith.addf %24, %26 : vector<32x48xf32>
    %cst_15 = arith.constant 0.000000e+00 : f32
    %28 = vector.broadcast %cst_15 : f32 to vector<32x48xf32>
    %29 = arith.cmpf ogt, %27, %28 : vector<32x48xf32>
    %cst_16 = arith.constant 0.00999999977 : f32
    %30 = vector.broadcast %cst_16 : f32 to vector<32x48xf32>
    %31 = arith.mulf %30, %27 : vector<32x48xf32>
    %32 = arith.select %29, %27, %31 : vector<32x48xi1>, vector<32x48xf32>
    %33 = vector.extract_strided_slice %0 {offsets = [0, 0, 0], sizes = [2, 1, 64], strides = [1, 1, 1]} : vector<2x16x64xbf16> to vector<2x1x64xbf16>
    %34 = vector.extract_strided_slice %0 {offsets = [0, 0, 0], sizes = [2, 15, 64], strides = [1, 1, 1]} : vector<2x16x64xbf16> to vector<2x15x64xbf16>
    %35 = tpu.concatenate %33, %34 in 1 : vector<2x1x64xbf16>, vector<2x15x64xbf16> -> vector<2x16x64xbf16>
    %36 = vector.extract_strided_slice %0 {offsets = [0, 1, 0], sizes = [2, 15, 64], strides = [1, 1, 1]} : vector<2x16x64xbf16> to vector<2x15x64xbf16>
    %37 = vector.extract_strided_slice %0 {offsets = [0, 15, 0], sizes = [2, 1, 64], strides = [1, 1, 1]} : vector<2x16x64xbf16> to vector<2x1x64xbf16>
    %38 = tpu.concatenate %36, %37 in 1 : vector<2x15x64xbf16>, vector<2x1x64xbf16> -> vector<2x16x64xbf16>
    %39 = arith.maximumf %0, %35 : vector<2x16x64xbf16>
    %40 = arith.maximumf %39, %38 : vector<2x16x64xbf16>
    %41 = vector.shape_cast %40 : vector<2x16x64xbf16> to vector<32x64xbf16>
    %c0_17 = arith.constant 0 : index
    %c0_18 = arith.constant 0 : index
    %42 = vector.load %arg7[%c0_17, %c0_18] : memref<64x16xbf16, #tpu.memory_space<vmem>>, vector<64x16xbf16>
    %cst_19 = arith.constant dense<0.000000e+00> : vector<32x16xf32>
    %43 = tpu.matmul %41, %42, %cst_19 {dimension_numbers = #tpu.dot_dimension_numbers<[1], [0], [0], [1], [0, 0, 1, 1], [], []>} : vector<32x64xbf16>, vector<64x16xbf16>, vector<32x16xf32> -> vector<32x16xf32>
    %c0_20 = arith.constant 0 : index
    %c0_21 = arith.constant 0 : index
    %44 = vector.load %arg8[%c0_20, %c0_21] : memref<1x16xf32, #tpu.memory_space<vmem>>, vector<1x16xf32>
    %45 = vector.broadcast %44 : vector<1x16xf32> to vector<32x16xf32>
    %46 = arith.addf %43, %45 : vector<32x16xf32>
    %cst_22 = arith.constant 0.000000e+00 : f32
    %47 = vector.broadcast %cst_22 : f32 to vector<32x16xf32>
    %48 = arith.cmpf ogt, %46, %47 : vector<32x16xf32>
    %cst_23 = arith.constant 0.00999999977 : f32
    %49 = vector.broadcast %cst_23 : f32 to vector<32x16xf32>
    %50 = arith.mulf %49, %46 : vector<32x16xf32>
    %51 = arith.select %48, %46, %50 : vector<32x16xi1>, vector<32x16xf32>
    %52 = tpu.concatenate %32, %51 in 1 : vector<32x48xf32>, vector<32x16xf32> -> vector<32x64xf32>
    %c0_24 = arith.constant 0 : index
    %c0_25 = arith.constant 0 : index
    %c0_26 = arith.constant 0 : index
    %53 = vector.load %arg2[%c0_24, %c0_25, %c0_26] : memref<2x16x128xbf16, #tpu.memory_space<vmem>>, vector<2x16x128xbf16>
    %54 = vector.shape_cast %53 : vector<2x16x128xbf16> to vector<32x128xbf16>
    %c0_27 = arith.constant 0 : index
    %c0_28 = arith.constant 0 : index
    %55 = vector.load %arg9[%c0_27, %c0_28] : memref<128x64xbf16, #tpu.memory_space<vmem>>, vector<128x64xbf16>
    %cst_29 = arith.constant dense<0.000000e+00> : vector<32x64xf32>
    %56 = tpu.matmul %54, %55, %cst_29 {dimension_numbers = #tpu.dot_dimension_numbers<[1], [0], [0], [1], [0, 0, 1, 1], [], []>} : vector<32x128xbf16>, vector<128x64xbf16>, vector<32x64xf32> -> vector<32x64xf32>
    %c0_30 = arith.constant 0 : index
    %c0_31 = arith.constant 0 : index
    %57 = vector.load %arg10[%c0_30, %c0_31] : memref<1x64xf32, #tpu.memory_space<vmem>>, vector<1x64xf32>
    %58 = vector.broadcast %57 : vector<1x64xf32> to vector<32x64xf32>
    %59 = arith.addf %56, %58 : vector<32x64xf32>
    %60 = arith.addf %52, %59 : vector<32x64xf32>
    %cst_32 = arith.constant 0.000000e+00 : f32
    %61 = vector.broadcast %cst_32 : f32 to vector<32x64xf32>
    %62 = arith.cmpf ogt, %60, %61 : vector<32x64xf32>
    %cst_33 = arith.constant 0.00999999977 : f32
    %63 = vector.broadcast %cst_33 : f32 to vector<32x64xf32>
    %64 = arith.mulf %63, %60 : vector<32x64xf32>
    %65 = arith.select %62, %60, %64 : vector<32x64xi1>, vector<32x64xf32>
    %66 = vector.shape_cast %65 : vector<32x64xf32> to vector<2x16x64xf32>
    %cst_34 = arith.constant dense<0.000000e+00> : vector<2x64xf32>
    %67 = vector.multi_reduction <add>, %66, %cst_34 [1] : vector<2x16x64xf32> to vector<2x64xf32>
    %cst_35 = arith.constant 1.600000e+01 : f32
    %68 = vector.broadcast %cst_35 : f32 to vector<2x64xf32>
    %69 = arith.divf %67, %68 : vector<2x64xf32>
    %70 = arith.truncf %69 : vector<2x64xf32> to vector<2x64xbf16>
    %c0_36 = arith.constant 0 : index
    %c0_37 = arith.constant 0 : index
    %71 = vector.load %arg11[%c0_36, %c0_37] : memref<64x64xbf16, #tpu.memory_space<vmem>>, vector<64x64xbf16>
    %cst_38 = arith.constant dense<0.000000e+00> : vector<2x64xf32>
    %72 = tpu.matmul %70, %71, %cst_38 {dimension_numbers = #tpu.dot_dimension_numbers<[1], [0], [0], [1], [0, 0, 1, 1], [], []>} : vector<2x64xbf16>, vector<64x64xbf16>, vector<2x64xf32> -> vector<2x64xf32>
    %c0_39 = arith.constant 0 : index
    %c0_40 = arith.constant 0 : index
    %73 = vector.load %arg12[%c0_39, %c0_40] : memref<1x64xf32, #tpu.memory_space<vmem>>, vector<1x64xf32>
    %74 = vector.broadcast %73 : vector<1x64xf32> to vector<2x64xf32>
    %75 = arith.addf %72, %74 : vector<2x64xf32>
    %cst_41 = arith.constant 0.000000e+00 : f32
    %76 = vector.broadcast %cst_41 : f32 to vector<2x64xf32>
    %77 = arith.cmpf ogt, %75, %76 : vector<2x64xf32>
    %cst_42 = arith.constant 0.00999999977 : f32
    %78 = vector.broadcast %cst_42 : f32 to vector<2x64xf32>
    %79 = arith.mulf %78, %75 : vector<2x64xf32>
    %80 = arith.select %77, %75, %79 : vector<2x64xi1>, vector<2x64xf32>
    %81 = arith.truncf %80 : vector<2x64xf32> to vector<2x64xbf16>
    %c0_43 = arith.constant 0 : index
    %c0_44 = arith.constant 0 : index
    %82 = vector.load %arg13[%c0_43, %c0_44] : memref<64x16xbf16, #tpu.memory_space<vmem>>, vector<64x16xbf16>
    %cst_45 = arith.constant dense<0.000000e+00> : vector<2x16xf32>
    %83 = tpu.matmul %81, %82, %cst_45 {dimension_numbers = #tpu.dot_dimension_numbers<[1], [0], [0], [1], [0, 0, 1, 1], [], []>} : vector<2x64xbf16>, vector<64x16xbf16>, vector<2x16xf32> -> vector<2x16xf32>
    %c0_46 = arith.constant 0 : index
    %c0_47 = arith.constant 0 : index
    %84 = vector.load %arg14[%c0_46, %c0_47] : memref<1x16xf32, #tpu.memory_space<vmem>>, vector<1x16xf32>
    %85 = vector.broadcast %84 : vector<1x16xf32> to vector<2x16xf32>
    %86 = arith.addf %83, %85 : vector<2x16xf32>
    %cst_48 = arith.constant 0.000000e+00 : f32
    %87 = vector.broadcast %cst_48 : f32 to vector<2x16xf32>
    %88 = arith.cmpf ogt, %86, %87 : vector<2x16xf32>
    %cst_49 = arith.constant 0.00999999977 : f32
    %89 = vector.broadcast %cst_49 : f32 to vector<2x16xf32>
    %90 = arith.mulf %89, %86 : vector<2x16xf32>
    %91 = arith.select %88, %86, %90 : vector<2x16xi1>, vector<2x16xf32>
    %92 = arith.truncf %91 : vector<2x16xf32> to vector<2x16xbf16>
    %c0_50 = arith.constant 0 : index
    %c0_51 = arith.constant 0 : index
    %93 = vector.load %arg15[%c0_50, %c0_51] : memref<16x1xbf16, #tpu.memory_space<vmem>>, vector<16x1xbf16>
    %cst_52 = arith.constant dense<0.000000e+00> : vector<2x1xf32>
    %94 = tpu.matmul %92, %93, %cst_52 {dimension_numbers = #tpu.dot_dimension_numbers<[1], [0], [0], [1], [0, 0, 1, 1], [], []>} : vector<2x16xbf16>, vector<16x1xbf16>, vector<2x1xf32> -> vector<2x1xf32>
    %c0_53 = arith.constant 0 : index
    %c0_54 = arith.constant 0 : index
    %95 = vector.load %arg16[%c0_53, %c0_54] : memref<1x1xf32, #tpu.memory_space<vmem>>, vector<1x1xf32>
    %96 = vector.broadcast %95 : vector<1x1xf32> to vector<2x1xf32>
    %97 = arith.addf %94, %96 : vector<2x1xf32>
    %c0_55 = arith.constant 0 : index
    %c0_56 = arith.constant 0 : index
    %98 = vector.load %arg17[%c0_55, %c0_56] : memref<2x1xf32, #tpu.memory_space<vmem>>, vector<2x1xf32>
    tpu.vector_store %arg17[%c0_55, %c0_56], %97 {strides = array<i32>} : memref<2x1xf32, #tpu.memory_space<vmem>>, vector<2x1xf32>,
    return
  }
  func.func @transform_0(%arg0: i32) -> (i32, i32, i32) {
    %c0_i32 = arith.constant 0 : i32
    %c0_i32_0 = arith.constant 0 : i32
    %c0_i32_1 = arith.constant 0 : i32
    return %arg0, %c0_i32, %c0_i32_0 : i32, i32, i32
  }
  func.func @transform_1(%arg0: i32) -> (i32, i32, i32) {
    %c0_i32 = arith.constant 0 : i32
    %c0_i32_0 = arith.constant 0 : i32
    %c0_i32_1 = arith.constant 0 : i32
    return %arg0, %c0_i32, %c0_i32_0 : i32, i32, i32
  }
  func.func @transform_2(%arg0: i32) -> (i32, i32) {
    %c0_i32 = arith.constant 0 : i32
    %c0_i32_0 = arith.constant 0 : i32
    %c0_i32_1 = arith.constant 0 : i32
    return %c0_i32, %c0_i32_0 : i32, i32
  }
  func.func @transform_3(%arg0: i32) -> (i32, i32) {
    %c0_i32 = arith.constant 0 : i32
    %c0_i32_0 = arith.constant 0 : i32
    %c0_i32_1 = arith.constant 0 : i32
    return %c0_i32, %c0_i32_0 : i32, i32
  }
  func.func @transform_4(%arg0: i32) -> (i32, i32) {
    %c0_i32 = arith.constant 0 : i32
    %c0_i32_0 = arith.constant 0 : i32
    %c0_i32_1 = arith.constant 0 : i32
    return %c0_i32, %c0_i32_0 : i32, i32
  }
  func.func @transform_5(%arg0: i32) -> (i32, i32) {
    %c0_i32 = arith.constant 0 : i32
    %c0_i32_0 = arith.constant 0 : i32
    %c0_i32_1 = arith.constant 0 : i32
    return %c0_i32, %c0_i32_0 : i32, i32
  }
  func.func @transform_6(%arg0: i32) -> (i32, i32) {
    %c0_i32 = arith.constant 0 : i32
    %c0_i32_0 = arith.constant 0 : i32
    %c0_i32_1 = arith.constant 0 : i32
    return %c0_i32, %c0_i32_0 : i32, i32
  }
  func.func @transform_7(%arg0: i32) -> (i32, i32) {
    %c0_i32 = arith.constant 0 : i32
    %c0_i32_0 = arith.constant 0 : i32
    %c0_i32_1 = arith.constant 0 : i32
    return %c0_i32, %c0_i32_0 : i32, i32
  }
  func.func @transform_8(%arg0: i32) -> (i32, i32) {
    %c0_i32 = arith.constant 0 : i32
    %c0_i32_0 = arith.constant 0 : i32
    %c0_i32_1 = arith.constant 0 : i32
    return %c0_i32, %c0_i32_0 : i32, i32
  }
  func.func @transform_9(%arg0: i32) -> (i32, i32) {
    %c0_i32 = arith.constant 0 : i32
    %c0_i32_0 = arith.constant 0 : i32
    %c0_i32_1 = arith.constant 0 : i32
    return %c0_i32, %c0_i32_0 : i32, i32
  }
  func.func @transform_10(%arg0: i32) -> (i32, i32) {
    %c0_i32 = arith.constant 0 : i32
    %c0_i32_0 = arith.constant 0 : i32
    %c0_i32_1 = arith.constant 0 : i32
    return %c0_i32, %c0_i32_0 : i32, i32
  }
  func.func @transform_11(%arg0: i32) -> (i32, i32) {
    %c0_i32 = arith.constant 0 : i32
    %c0_i32_0 = arith.constant 0 : i32
    %c0_i32_1 = arith.constant 0 : i32
    return %c0_i32, %c0_i32_0 : i32, i32
  }
  func.func @transform_12(%arg0: i32) -> (i32, i32) {
    %c0_i32 = arith.constant 0 : i32
    %c0_i32_0 = arith.constant 0 : i32
    %c0_i32_1 = arith.constant 0 : i32
    return %c0_i32, %c0_i32_0 : i32, i32
  }
  func.func @transform_13(%arg0: i32) -> (i32, i32) {
    %c0_i32 = arith.constant 0 : i32
    %c0_i32_0 = arith.constant 0 : i32
    %c0_i32_1 = arith.constant 0 : i32
    return %c0_i32, %c0_i32_0 : i32, i32
  }
  func.func @transform_14(%arg0: i32) -> (i32, i32) {
    %c0_i32 = arith.constant 0 : i32
    %c0_i32_0 = arith.constant 0 : i32
    %c0_i32_1 = arith.constant 0 : i32
    return %c0_i32, %c0_i32_0 : i32, i32
  }
  func.func @transform_15(%arg0: i32) -> (i32, i32) {
    %c0_i32 = arith.constant 0 : i32
    %c0_i32_0 = arith.constant 0 : i32
    %c0_i32_1 = arith.constant 0 : i32
    return %c0_i32, %c0_i32_0 : i32, i32
  }
  func.func @transform_16(%arg0: i32) -> (i32, i32) {
    %c0_i32 = arith.constant 0 : i32
    %c0_i32_0 = arith.constant 0 : i32
    return %arg0, %c0_i32 : i32, i32
  }
}

</mosaic_0001>

<bundles_post_ra>
// kernel: forward.6
= control target key start
LH: loop header
LB: loop body
LE: loop exit
PB: predicated region body
PF: predicated region fallthrough
CT: control target
= control target key end

     0   :  { %s622_s24 = smov 0   ;;  %s682_s0 = inlined_call_operand.vmem [shape: f32[2,16,4], index: 0, kind: input, shape index: {}]   ;;  %s683_s1 = inlined_call_operand.vmem [shape: bf16[4,4], index: 1, kind: input, shape index: {}]   ;;  %s684_s2 = inlined_call_operand.vmem [shape: f32[1,4], index: 2, kind: input, shape index: {}]   ;;  %s685_s3 = inlined_call_operand.vmem [shape: bf16[20,12], index: 3, kind: input, shape index: {}]   ;;  %s686_s4 = inlined_call_operand.vmem [shape: f32[1,12], index: 4, kind: input, shape index: {}]   ;;  %s687_s5 = inlined_call_operand.vmem [shape: bf16[4,4], index: 5, kind: input, shape index: {}]   ;;  %s688_s6 = inlined_call_operand.vmem [shape: f32[1,4], index: 6, kind: input, shape index: {}]   ;;  %s689_s7 = inlined_call_operand.vmem [shape: bf16[2,16,16], index: 7, kind: output, shape index: {}]  }
   0x1 LB: > { %s529_s25 = sadd.s32 4294967295, %s576_s24   ;;  %p533_p0 = scmp.ge.s32.totalorder %s576_s24, 1  ;;  %s576_s24 = sphi %s622_s24, %s17_s24  }
   0x2   : > { %p237_p1 = scmp.lt.s32.totalorder %s576_s24, 3 }
   0x4   : > { %p238_p2 = pnand %p533_p0, %p237_p1 }
   0x5   : > { %p269_p3 = scmp.lt.s32.totalorder (!%p238_p2), %s529_s25, 1  ;;  %s578_s13 = smov (!%p238_p2), 12  }
   0x6   : > { %241 = sbr.rel (%p238_p2) target bundleno = 435 (0x1b3), region = 48  ;;  %s579_s14 = smov (!%p238_p2), 4  }
   0x7   : > { %s580_s15 = smov (!%p238_p2), 16   ;;  %s581_s16 = smov (!%p238_p2), 8  }
   0xb   : > { %v283_v0 = vld [vmem:[%s683_s1] sm:$0x3]  ;;  %vm292_vm0 = vcmask 1041408   ;;  %s691_s25 = smov (!%p269_p3, %s529_s25), 1  ;;  %vm288_vm1 = vcmask 31744   ;;  %vm318_vm2 = vcmask 1040384  }
   0xc   : > { %v294_v1 = vsel %vm292_vm0, %v283_v0, 0  ;;  %s547_s28 = sshll.u32 %s691_s25, 4  ;;  %vm342_vm3 = vcmask 1046528   ;;  %v428_v12 = vld [vmem:[%s687_s5] sm:$0x3]  ;;  %vm337_vm4 = vcmask 1047552  }
   0xd   : > { %303 = vmatpush.bf16.msra.mxu0 %v294_v1  ;;  %s273_s8 = scalar_lea.vmem %s682_s0, %s547_s28  ;;  %v567_v15 = vld [vmem:[%s684_s2] ss:$0 sm:$0xff]  ;;  %v437_v16 = vsel %vm292_vm0, %v428_v12, 0  ;;  %vm338_vm5 = vsmask.f32 7424  ;;  %vm358_vm9 = vcmask 64512  }
   0xe   : > { %v280_v2 = vld [vmem:[%s273_s8] sm:$0xff]  ;;  %v281_v3 = vld [vmem:[%s273_s8 + $0x8] sm:$0xff]  ;;  %446 = vmatpush.bf16.msra.mxu2 %v437_v16  ;;  %vm331_vm6 = vsmask.f32 256  ;;  %vm339_vm7 = vmand %vm337_vm4, %vm338_vm5  ;;  %vm361_vm10 = vcmask 97280   ;;  %vm364_vm11 = vcmask 130048  }
   0xf   : > { %v282_v4 = vpack.c.bf16 %v281_v3, %v280_v2  ;;  %v417_v5 = vrot.slane %v280_v2, 1  ;;  %v418_v6 = vrot.slane %v281_v3, 1  ;;  %v411_v7 = vrot.slane %v280_v2, 7  ;;  %vm332_vm8 = vmand %vm318_vm2, %vm331_vm6  ;;  %v369_v42 = vld [vmem:[%s685_s3 + $0x8] sm:$0x3]  ;;  %v549_v46 = vld [vmem:[%s685_s3] sm:$0xff] }
  0x10   : > { %v412_v8 = vrot.slane %v281_v3, 7  ;;  %v379_v43 = vunpack.c.l.b16 %v369_v42  ;;  %v568_v49 = vld [vmem:[%s688_s6] ss:$0 sm:$0xff]  ;;  %vm383_vm12 = vcmask 162816   ;;  %s548_s27 = sshll.u32 %s691_s25, 3 }
  0x11   : > { %538 = vmatmul.msk.bf16.vlgmr.msra.gmra.mxu0 %vm288_vm1, %v282_v4  ;;  %v419_v10 = vsel %vm342_vm3, %v417_v5, %v418_v6  ;;  %v422_v11 = vsel %vm342_vm3, %v418_v6, %v281_v3  ;;  %v416_v14 = vsel %vm318_vm2, %v280_v2, %v411_v7  ;;  %v569_v1 = vld [vmem:[%s686_s4] ss:$0 sm:$0xff]  ;;  %s278_s30 = scalar_lea.vmem %s689_s7, %s548_s27 }
  0x12   : > { %v413_v13 = vsel %vm318_vm2, %v411_v7, %v412_v8  ;;  %v423_v17 = vmax.f32 %v280_v2, %v416_v14  ;;  %v381_v44 = vpack.c.b16 %v379_v43, %v379_v43 }
  0x13   : > { %v424_v18 = vmax.f32 %v281_v3, %v413_v13 }
  0x14   : > { %v425_v19 = vmax.f32 %v423_v17, %v419_v10  ;;  %v387_v45 = vsel %vm292_vm0, %v381_v44, 0  ;;  %vm471_vm0 = vcmask 125952  }
  0x15   : > { %v426_v20 = vmax.f32 %v424_v18, %v422_v11  ;;  %395 = vmatpush.bf16.msra.mxu1 %v387_v45 }
  0x17   : > { %v427_v22 = vpack.c.bf16 %v426_v20, %v425_v19 }
  0x19   : > { %544 = vmatmul.msk.bf16.vlgmr.msra.gmra.mxu2 %vm288_vm1, %v427_v22  ;;  %396 = vmatpush.bf16.msra.mxu1 %v549_v46 }
  0x8e   : > { %v305_v9 = vpop.f32.mrf.mxu0 }
  0x8f   : > { %v306_v21 = vadd.f32 %v567_v15, %v305_v9 }
  0x91   : > { %v310_v24 = vpack.c.bf16 %v306_v21, %v306_v21 }
  0x93   : > { %v314_v27 = vunpack.c.l.b16 %v310_v24 }
  0x96   : > { %v307_v23 = vpop.f32.mrf.mxu0 }
  0x97   : > { %v308_v25 = vadd.f32 %v567_v15, %v307_v23 }
  0x99   : > { %v311_v26 = vpack.c.bf16 %v308_v25, %v308_v25 }
  0x9b   : > { %v315_v28 = vunpack.c.l.b16 %v311_v26 }
  0x9c   : > { %v448_v50 = vpop.f32.mrf.mxu2 }
  0x9d   : > { %v316_v29 = vpack.c.b16 %v315_v28, %v314_v27  ;;  %v449_v51 = vadd.f32 %v568_v49, %v448_v50 }
  0x9f   : > { %v323_v30 = vshrl.u32 %v316_v29, 16  ;;  %v326_v31 = vshll.u32 %v316_v29, 16  ;;  %v317_v32 = vrot.slane %v316_v29, 7  ;;  %v341_v40 = vrot.slane %v316_v29, 1 }
  0xa0   : > { %v455_v54 = vmul.f32 0.01, %v449_v51  ;;  %vm453_vm13 = vcmp.gt.f32.partialorder %v449_v51, 0.0 }
  0xa1   : > { %v334_v33 = vrot.slane %v326_v31, 1  ;;  %v325_v34 = vrot.slane %v323_v30, 7  ;;  %v321_v35 = vsel %vm318_vm2, 0, %v317_v32  ;;  %v344_v41 = vsel %vm342_vm3, %v341_v40, 0 }
  0xa2   : > { %v457_v62 = vsel %vm453_vm13, %v449_v51, %v455_v54 }
  0xa3   : > { %v335_v36 = vor.u32 %v334_v33, %v323_v30  ;;  %v328_v37 = vor.u32 %v326_v31, %v325_v34 }
  0xa4   : > { %v450_v56 = vpop.f32.mrf.mxu2 }
  0xa5   : > { %v340_v38 = vsel %vm339_vm7, %v335_v36, 0  ;;  %v333_v39 = vsel %vm332_vm8, 0, %v328_v37  ;;  %v451_v59 = vadd.f32 %v568_v49, %v450_v56 }
  0xa6   : > { %351 = vrot.lane.b32.xlu1 %v340_v38, %s578_s13  ;;  %346 = vrot.lane.b32.xlu0 %v333_v39, %s579_s14 }
  0xa7   : > { %v456_v61 = vmul.f32 0.01, %v451_v59  ;;  %vm454_vm14 = vcmp.gt.f32.partialorder %v451_v59, 0.0 }
  0xa9   : > { %v458_v63 = vsel %vm454_vm14, %v451_v59, %v456_v61 }
  0xaa   : > { %v562_v0 = vpack.i.bf16 %v458_v63, %v457_v62 }
  0xac   : > { %563 = vrot.lane.b32.xlu2 %v562_v0, %s578_s13 }
  0xae   : > { %354 = vrot.lane.b32.xlu1 %v344_v41, %s580_s15  ;;  %348 = vrot.lane.b32.xlu0 %v316_v29, %s581_s16 }
 0x106   : > { %v564_v4 = vpop.permute.xlu2 %563 }
 0x107   : > { %v565_v6 = vunpack.i.l.bf16 %v564_v4  ;;  %v566_v13 = vunpack.i.h.bf16 %v564_v4 }
 0x118   : > { %v352_v47 = vpop.permute.xlu1 %351  ;;  %v347_v48 = vpop.permute.xlu0 %346 }
 0x119   : > { %v357_v52 = vsel %vm288_vm1, %v321_v35, %v347_v48 }
 0x120   : > { %v349_v53 = vpop.permute.xlu0 %348  ;;  %v355_v57 = vpop.permute.xlu1 %354 }
 0x121   : > { %v360_v55 = vsel %vm358_vm9, %v357_v52, %v349_v53 }
 0x122   : > { %v363_v58 = vsel %vm361_vm10, %v360_v55, %v352_v47 }
 0x123   : > { %v366_v60 = vsel %vm364_vm11, %v363_v58, %v355_v57 }
 0x124   : > { %543 = vmatmul.msk.bf16.vlgmr.msra.gmra.mxu1 %vm383_vm12, %v366_v60 }
 0x1a1   : > { %v398_v2 = vpop.f32.mrf.mxu1 }
 0x1a2   : > { %v399_v3 = vadd.f32 %v569_v1, %v398_v2 }
 0x1a4   : > { %vm403_vm15 = vcmp.gt.f32.partialorder %v399_v3, 0.0  ;;  %v405_v5 = vmul.f32 0.01, %v399_v3 }
 0x1a6   : > { %v407_v7 = vsel %vm403_vm15, %v399_v3, %v405_v5 }
 0x1a7   : > { %v467_v8 = vsel %vm361_vm10, %v407_v7, %v565_v6 }
 0x1a8   : > { %v469_v9 = vpack.c.bf16 %v467_v8, %v467_v8 }
 0x1a9   : > { %v400_v10 = vpop.f32.mrf.mxu1 }
 0x1aa   : > { %472 = vst.msk [vmem:[%s278_s30] sm:$0xf] %vm471_vm0, %v469_v9  ;;  %v401_v11 = vadd.f32 %v569_v1, %v400_v10 }
 0x1ac   : > { %vm404_vm1 = vcmp.gt.f32.partialorder %v401_v11, 0.0  ;;  %v406_v12 = vmul.f32 0.01, %v401_v11 }
 0x1ae   : > { %v408_v14 = vsel %vm404_vm1, %v401_v11, %v406_v12 }
 0x1af   : > { %v468_v15 = vsel %vm361_vm10, %v408_v14, %v566_v13 }
 0x1b0   : > { %v470_v16 = vpack.c.bf16 %v468_v15, %v468_v15 }
 0x1b2   : > { %473 = vst.msk [vmem:[%s278_s30 + $0x4] sm:$0xf] %vm471_vm0, %v470_v16 }
 0x1b3 PF: > { %s17_s24 = sadd.s32 1, %s576_s24  }
 0x1b4   : > { %p14_p4 = scmp.ge.s32.totalorder %s17_s24, 4  }
 0x1b6   :  { %16 = sbr.rel (!%p14_p4) target bundleno = 1 (0x1), region = 78 }

// kernel: forward.9
= control target key start
LH: loop header
LB: loop body
LE: loop exit
PB: predicated region body
PF: predicated region fallthrough
CT: control target
= control target key end

     0   :  { %s956_s24 = smov 0   ;;  %s1090_s0 = inlined_call_operand.vmem [shape: bf16[2,16,128], index: 0, kind: input, shape index: {}]   ;;  %s1091_s1 = inlined_call_operand.vmem [shape: bf16[128,32], index: 1, kind: input, shape index: {}]   ;;  %s1092_s2 = inlined_call_operand.vmem [shape: f32[1,32], index: 2, kind: input, shape index: {}]   ;;  %s1093_s3 = inlined_call_operand.vmem [shape: bf16[160,96], index: 3, kind: input, shape index: {}]   ;;  %s1094_s4 = inlined_call_operand.vmem [shape: f32[1,96], index: 4, kind: input, shape index: {}]   ;;  %s1095_s5 = inlined_call_operand.vmem [shape: bf16[128,32], index: 5, kind: input, shape index: {}]   ;;  %s1096_s6 = inlined_call_operand.vmem [shape: f32[1,32], index: 6, kind: input, shape index: {}]   ;;  %s1097_s7 = inlined_call_operand.vmem [shape: bf16[2,16,128], index: 7, kind: output, shape index: {}]  }
   0x1 LB: > { %s737_s25 = sadd.s32 4294967295, %s911_s24   ;;  %p741_p0 = scmp.ge.s32.totalorder %s911_s24, 1  ;;  %s911_s24 = sphi %s956_s24, %s17_s24  }
   0x2   : > { %p237_p1 = scmp.lt.s32.totalorder %s911_s24, 3 }
   0x4   : > { %p238_p2 = pnand %p741_p0, %p237_p1 }
   0x5   : > { %p269_p3 = scmp.lt.s32.totalorder (!%p238_p2), %s737_s25, 1  ;;  %s913_s16 = smov (!%p238_p2), 96  }
   0x6   : > { %241 = sbr.rel (%p238_p2) target bundleno = 462 (0x1ce), region = 48  ;;  %s914_s17 = smov (!%p238_p2), 32  }
   0x7   : > { %s915_s18 = smov (!%p238_p2), 64  }
   0xb   : > { %v862_v0 = vld [vmem:[%s1091_s1 + $0x38] sm:$0xff]  ;;  %v861_v1 = vld [vmem:[%s1091_s1 + $0x30] sm:$0xff]  ;;  %v860_v4 = vld [vmem:[%s1091_s1 + $0x28] sm:$0xff]  ;;  %s1103_s25 = smov (!%p269_p3, %s737_s25), 1  ;;  %vm378_vm0 = vcmask 1040384   ;;  %vm397_vm3 = vcmask 1047552  }
   0xc   : > { %356 = vmatpush.bf16.msra.mxu0 %v862_v0  ;;  %v880_v2 = vld [vmem:[%s1095_s5 + $0x38] sm:$0xff]  ;;  %v879_v3 = vld [vmem:[%s1095_s5 + $0x30] sm:$0xff]  ;;  %v878_v5 = vld [vmem:[%s1095_s5 + $0x28] sm:$0xff]  ;;  %s853_s21 = sshll.u32 %s1103_s25, 3  ;;  %vm391_vm1 = vsmask.f32 256 }
   0xd   : > { %648 = vmatpush.bf16.msra.mxu3 %v880_v2  ;;  %v859_v6 = vld [vmem:[%s1091_s1 + $0x20] sm:$0xff]  ;;  %v858_v8 = vld [vmem:[%s1091_s1 + $0x18] sm:$0xff]  ;;  %v857_v9 = vld [vmem:[%s1091_s1 + $0x10] sm:$0xff]  ;;  %s273_s28 = scalar_lea.vmem %s1090_s0, %s853_s21  ;;  %vm398_vm4 = vsmask.f32 7424  ;;  %vm402_vm6 = vcmask 1046528   ;;  %s278_s9 = scalar_lea.vmem %s1097_s7, %s853_s21 }
   0xe   : > { %v877_v7 = vld [vmem:[%s1095_s5 + $0x20] sm:$0xff]  ;;  %v856_v10 = vld [vmem:[%s1091_s1 + $0x8] sm:$0xff]  ;;  %v876_v22 = vld [vmem:[%s1095_s5 + $0x18] sm:$0xff]  ;;  %vm413_vm7 = vcmask 261120   ;;  %vm416_vm10 = vcmask 523264   ;;  %vm419_vm11 = vcmask 785408  }
   0xf   : > { %v280_v11 = vld [vmem:[%s273_s28] sm:$0xf]  ;;  %v281_v12 = vld [vmem:[%s273_s28 + $0x4] sm:$0xf]  ;;  %vm1012_vm2 = vmand %vm378_vm0, %vm391_vm1 }
  0x10   : > { %357 = vmatpush.bf16.msra.mxu0 %v861_v1  ;;  %v304_v13 = vunpack.c.l.b16 %v280_v11  ;;  %v305_v14 = vunpack.c.l.b16 %v281_v12  ;;  %v855_v15 = vld [vmem:[%s1091_s1] sm:$0xff]  ;;  %v559_v25 = vunpack.c.l.bf16 %v281_v12  ;;  %v875_v27 = vld [vmem:[%s1095_s5 + $0x10] sm:$0xff]  ;;  %vm1021_vm5 = vmand %vm397_vm3, %vm398_vm4  ;;  %v558_v30 = vunpack.c.l.bf16 %v280_v11 }
  0x11   : > { %649 = vmatpush.bf16.msra.mxu3 %v879_v3  ;;  %v874_v38 = vld [vmem:[%s1095_s5 + $0x8] sm:$0xff]  ;;  %v873_v44 = vld [vmem:[%s1095_s5] sm:$0xff]  ;;  %v870_v50 = vld [vmem:[%s1093_s3 + $0x38] sm:$0xff] }
  0x12   : > { %v306_v16 = vpack.c.b16 %v305_v14, %v304_v13  ;;  %v555_v24 = vpack.c.b16 %v305_v14, %v305_v14  ;;  %v872_v43 = vld [vmem:[%s1093_s3 + $0x48] sm:$0xff]  ;;  %v871_v48 = vld [vmem:[%s1093_s3 + $0x40] sm:$0xff]  ;;  %509 = vmatpush.bf16.msra.mxu1 %v870_v50  ;;  %v869_v52 = vld [vmem:[%s1093_s3 + $0x30] sm:$0xff] }
  0x13   : > { %529 = vmatpush.bf16.msra.mxu2 %v872_v43  ;;  %v902_v51 = vld [vmem:[%s1092_s2] ss:$0 sm:$0xff]  ;;  %v868_v54 = vld [vmem:[%s1093_s3 + $0x28] sm:$0xff]  ;;  %v866_v62 = vld [vmem:[%s1093_s3 + $0x18] sm:$0xff] }
  0x14   : > { %358 = vmatpush.bf16.msra.mxu0 %v860_v4  ;;  %v544_v17 = vshrl.u32 %v306_v16, 16  ;;  %v547_v18 = vshll.u32 %v306_v16, 16  ;;  %v867_v58 = vld [vmem:[%s1093_s3 + $0x20] sm:$0xff]  ;;  %v865_v4 = vld [vmem:[%s1093_s3 + $0x10] sm:$0xff]  ;;  %v864_v13 = vld [vmem:[%s1093_s3 + $0x8] sm:$0xff] }
  0x15   : > { %650 = vmatpush.bf16.msra.mxu3 %v878_v5  ;;  %v863_v14 = vld [vmem:[%s1093_s3] sm:$0xff] }
  0x16   : > { %v546_v19 = vrot.slane %v544_v17, 7  ;;  %v552_v20 = vrot.slane %v547_v18, 1  ;;  %510 = vmatpush.bf16.msra.mxu1 %v869_v52 }
  0x17   : > { %530 = vmatpush.bf16.msra.mxu2 %v871_v48 }
  0x18   : > { %359 = vmatpush.bf16.msra.mxu0 %v859_v6  ;;  %v549_v21 = vor.u32 %v547_v18, %v546_v19  ;;  %v553_v23 = vor.u32 %v552_v20, %v544_v17 }
  0x19   : > { %651 = vmatpush.bf16.msra.mxu3 %v877_v7 }
  0x1a   : > { %v551_v28 = vsel %vm1012_vm2, %v280_v11, %v549_v21  ;;  %v557_v33 = vsel %vm1021_vm5, %v553_v23, %v555_v24  ;;  %511 = vmatpush.bf16.msra.mxu1 %v868_v54 }
  0x1b   : > { %v560_v31 = vunpack.c.l.bf16 %v551_v28  ;;  %v561_v32 = vunpack.c.h.bf16 %v551_v28  ;;  %v568_v36 = vunpack.c.l.bf16 %v557_v33  ;;  %v569_v37 = vunpack.c.h.bf16 %v557_v33 }
  0x1c   : > { %360 = vmatpush.bf16.msra.mxu0 %v858_v8 }
  0x1d   : > { %652 = vmatpush.bf16.msra.mxu3 %v876_v22  ;;  %v562_v34 = vmax.f32 %v558_v30, %v560_v31  ;;  %v563_v35 = vmax.f32 %v559_v25, %v561_v32  ;;  %v904_v31 = vld [vmem:[%s1094_s4] ss:$0 sm:$0xff] }
  0x1e   : > { %512 = vmatpush.bf16.msra.mxu1 %v867_v58 }
  0x1f   : > { %v570_v39 = vmax.f32 %v562_v34, %v568_v36  ;;  %v571_v40 = vmax.f32 %v563_v35, %v569_v37 }
  0x20   : > { %361 = vmatpush.bf16.msra.mxu0 %v857_v9 }
  0x21   : > { %653 = vmatpush.bf16.msra.mxu3 %v875_v27  ;;  %v572_v41 = vpack.c.bf16 %v570_v39, %v570_v39  ;;  %v573_v42 = vpack.c.bf16 %v571_v40, %v571_v40 }
  0x22   : > { %513 = vmatpush.bf16.msra.mxu1 %v866_v62 }
  0x23   : > { %v596_v45 = vunpack.c.l.b16 %v572_v41  ;;  %v597_v46 = vunpack.c.l.b16 %v573_v42 }
  0x24   : > { %362 = vmatpush.bf16.msra.mxu0 %v856_v10 }
  0x25   : > { %654 = vmatpush.bf16.msra.mxu3 %v874_v38  ;;  %v598_v47 = vpack.c.b16 %v597_v46, %v596_v45 }
  0x26   : > { %514 = vmatpush.bf16.msra.mxu1 %v865_v4 }
  0x28   : > { %363 = vmatpush.bf16.msra.mxu0 %v855_v15  ;;  %v903_v15 = vld [vmem:[%s1096_s6] ss:$0 sm:$0xff] }
  0x29   : > { %655 = vmatpush.bf16.msra.mxu3 %v873_v44 }
  0x2a   : > { %515 = vmatpush.bf16.msra.mxu1 %v864_v13 }
  0x2b   : > { %364 = vmatmul.bf16.vlgmr.msra.gmra.mxu0 %v306_v16 }
  0x2c   : > { %656 = vmatmul.bf16.vlgmr.msra.gmra.mxu3 %v598_v47 }
  0x2e   : > { %516 = vmatpush.bf16.msra.mxu1 %v863_v14 }
  0xa8   : > { %v365_v49 = vpop.f32.mrf.mxu0 }
  0xa9   : > { %v366_v53 = vadd.f32 %v902_v51, %v365_v49 }
  0xab   : > { %v370_v56 = vpack.c.bf16 %v366_v53, %v366_v53 }
  0xad   : > { %v374_v60 = vunpack.c.l.b16 %v370_v56 }
  0xaf   : > { %v657_v16 = vpop.f32.mrf.mxu3 }
  0xb0   : > { %v367_v55 = vpop.f32.mrf.mxu0  ;;  %v658_v17 = vadd.f32 %v903_v15, %v657_v16 }
  0xb1   : > { %v368_v57 = vadd.f32 %v902_v51, %v367_v55 }
  0xb2   : > { %v664_v18 = vmul.f32 0.01, %v658_v17  ;;  %vm662_vm8 = vcmp.gt.f32.partialorder %v658_v17, 0.0 }
  0xb3   : > { %v371_v59 = vpack.c.bf16 %v368_v57, %v368_v57 }
  0xb4   : > { %v666_v22 = vsel %vm662_vm8, %v658_v17, %v664_v18 }
  0xb5   : > { %v375_v61 = vunpack.c.l.b16 %v371_v59 }
  0xb7   : > { %v376_v63 = vpack.c.b16 %v375_v61, %v374_v60  ;;  %v659_v19 = vpop.f32.mrf.mxu3 }
  0xb8   : > { %v660_v20 = vadd.f32 %v903_v15, %v659_v19 }
  0xb9   : > { %v401_v0 = vrot.slane %v376_v63, 1  ;;  %v383_v1 = vshrl.u32 %v376_v63, 16  ;;  %v386_v2 = vshll.u32 %v376_v63, 16  ;;  %v377_v3 = vrot.slane %v376_v63, 7 }
  0xba   : > { %vm663_vm9 = vcmp.gt.f32.partialorder %v660_v20, 0.0  ;;  %v665_v21 = vmul.f32 0.01, %v660_v20 }
  0xbb   : > { %v404_v5 = vsel %vm402_vm6, %v401_v0, 0  ;;  %v394_v6 = vrot.slane %v386_v2, 1  ;;  %v385_v7 = vrot.slane %v383_v1, 7  ;;  %v381_v8 = vsel %vm378_vm0, 0, %v377_v3 }
  0xbc   : > { %818 = vmatmul.msk.bf16.vlgmr.msra.gmra.mxu2 %vm413_vm7, %v404_v5  ;;  %v667_v23 = vsel %vm663_vm9, %v660_v20, %v665_v21 }
  0xbd   : > { %v395_v9 = vor.u32 %v394_v6, %v383_v1  ;;  %v388_v10 = vor.u32 %v386_v2, %v385_v7  ;;  %v897_v24 = vpack.i.bf16 %v667_v23, %v666_v22 }
  0xbf   : > { %v400_v11 = vsel %vm1021_vm5, %v395_v9, 0  ;;  %v393_v12 = vsel %vm1012_vm2, 0, %v388_v10 }
  0xc0   : > { %411 = vrot.lane.b32.xlu1 %v400_v11, %s913_s16  ;;  %406 = vrot.lane.b32.xlu0 %v393_v12, %s914_s17 }
  0xc8   : > { %408 = vrot.lane.b32.xlu0 %v376_v63, %s915_s18  ;;  %898 = vrot.lane.b32.xlu1 %v897_v24, %s913_s16 }
 0x132   : > { %v407_v25 = vpop.permute.xlu0 %406  ;;  %v412_v28 = vpop.permute.xlu1 %411 }
 0x133   : > { %v415_v26 = vsel %vm413_vm7, %v381_v8, %v407_v25 }
 0x13a   : > { %v409_v27 = vpop.permute.xlu0 %408  ;;  %v899_v40 = vpop.permute.xlu1 %898 }
 0x13b   : > { %v418_v29 = vsel %vm416_vm10, %v415_v26, %v409_v27  ;;  %v901_v44 = vunpack.i.h.bf16 %v899_v40  ;;  %v900_v45 = vunpack.i.l.bf16 %v899_v40 }
 0x13c   : > { %v421_v30 = vsel %vm419_vm11, %v418_v29, %v412_v28 }
 0x13d   : > { %517 = vmatmul.bf16.vlgmr.msra.gmra.mxu1 %v421_v30 }
 0x13f   : > { %v532_v32 = vpop.f32.mrf.mxu2 }
 0x147   : > { %v534_v39 = vpop.f32.mrf.mxu2 }
 0x1ba   : > { %v518_v33 = vpop.f32.mrf.mxu1 }
 0x1bb   : > { %v519_v34 = vadd.f32 %v904_v31, %v518_v33 }
 0x1bd   : > { %v533_v35 = vadd.f32 %v532_v32, %v519_v34 }
 0x1bf   : > { %v539_v37 = vmul.f32 0.01, %v533_v35  ;;  %vm537_vm12 = vcmp.gt.f32.partialorder %v533_v35, 0.0 }
 0x1c1   : > { %v541_v42 = vsel %vm537_vm12, %v533_v35, %v539_v37 }
 0x1c2   : > { %v520_v36 = vpop.f32.mrf.mxu1  ;;  %v676_v47 = vsel %vm419_vm11, %v541_v42, %v900_v45 }
 0x1c3   : > { %v521_v38 = vadd.f32 %v904_v31, %v520_v36 }
 0x1c5   : > { %v535_v41 = vadd.f32 %v534_v39, %v521_v38 }
 0x1c7   : > { %vm538_vm13 = vcmp.gt.f32.partialorder %v535_v41, 0.0  ;;  %v540_v43 = vmul.f32 0.01, %v535_v41 }
 0x1c9   : > { %v542_v46 = vsel %vm538_vm13, %v535_v41, %v540_v43 }
 0x1ca   : > { %v677_v48 = vsel %vm419_vm11, %v542_v46, %v901_v44 }
 0x1cb   : > { %v884_v49 = vpack.c.bf16 %v677_v48, %v676_v47 }
 0x1cd   : > { %885 = vst [vmem:[%s278_s9] sm:$0xff] %v884_v49  }
 0x1ce PF: > { %s17_s24 = sadd.s32 1, %s911_s24  }
 0x1cf   : > { %p14_p4 = scmp.ge.s32.totalorder %s17_s24, 4  }
 0x1d1   :  { %16 = sbr.rel (!%p14_p4) target bundleno = 1 (0x1), region = 78 }

// kernel: forward.8
= control target key start
LH: loop header
LB: loop body
LE: loop exit
PB: predicated region body
PF: predicated region fallthrough
CT: control target
= control target key end

     0   :  { %12 = vsyncpa [#allocation3], 0  ;;  %s861_s24 = smov 0   ;;  %s928_s0 = inlined_call_operand.vmem [shape: bf16[2,16,16], index: 0, kind: input, shape index: {}]   ;;  %s929_s1 = inlined_call_operand.vmem [shape: bf16[16,32], index: 1, kind: input, shape index: {}]   ;;  %s930_s2 = inlined_call_operand.vmem [shape: f32[1,32], index: 2, kind: input, shape index: {}]   ;;  %s931_s3 = inlined_call_operand.hbm [shape: bf16[160,96], index: 3, kind: input, shape index: {}]   ;;  %s932_s4 = inlined_call_operand.vmem [shape: f32[1,96], index: 4, kind: input, shape index: {}]   ;;  %s933_s5 = inlined_call_operand.vmem [shape: bf16[16,32], index: 5, kind: input, shape index: {}]   ;;  %s934_s6 = inlined_call_operand.vmem [shape: f32[1,32], index: 6, kind: input, shape index: {}]   ;;  %s935_s7 = inlined_call_operand.vmem [shape: bf16[2,16,128], index: 7, kind: output, shape index: {}]  }
   0x1 LB: > { %s218_s27 = sshll.u32 %s931_s3, 4  ;;  %s658_s28 = sadd.s32 4294967295, %s813_s24   ;;  %s813_s24 = sphi %s861_s24, %s18_s24   ;;  %s219_s27 = int_to_ptr.hbm [resolvable:$true] %s218_s27 }
   0x2   : > { %p660_p0 = scmp.ge.s32.totalorder %s813_s24, 1  ;;  %p201_p1 = scmp.lt.s32.totalorder %s813_s24, 3 }
   0x3   : > { %p749_p2 = scmp.eq.s32.totalorder %s658_s28, 0  ;;  %s815_s29 = smov [#allocation2]  }
   0x4   : > { %p202_p3 = pnand %p660_p0, %p201_p1  ;;  %s220_s30 = sshll.u32 %s815_s29, 4  ;;  %s221_s30 = int_to_ptr.vmem [resolvable:$true] %s220_s30 }
   0x5   : > { %s816_s8 = smov 64   ;;  %s817_s9 = smov 4  }
   0x6   : > { %p745_p4 = pneg %p202_p3  ;;  %253 = sbr.rel (%p202_p3) target bundleno = 441 (0x1b9), region = 48 }
   0x8   : > { %p746_p5 = pnand %p749_p2, %p745_p4 }
   0xa   : > { %748 = dma.hbm_to_vmem [thread:$0]  (!%p746_p5), %s219_s27, 1280, %s221_s30, [#allocation3], %s816_s8, %s816_s8, %s817_s9  }
   0xb   : > { %808 = dma.done.wait (%p749_p2), [#allocation3], 1280  }
   0xc   : > { %810 = vsyncadd (%p749_p2), [#allocation3], 4294966016  ;;  %p286_p6 = scmp.lt.s32.totalorder %s658_s28, 1  ;;  %v724_v0 = vld [vmem:[%s929_s1] sm:$0xff]  ;;  %vm316_vm0 = vcmask 130048   ;;  %vm342_vm1 = vcmask 1040384  }
   0xd   : > { %327 = vmatpush.bf16.msra.mxu0 %v724_v0  ;;  %vm355_vm2 = vsmask.f32 256  ;;  %vm361_vm4 = vcmask 1047552   ;;  %vm362_vm5 = vsmask.f32 7424  ;;  %v734_v29 = vld [vmem:[#allocation2 + $0x48] sm:$0xff] }
   0xe   : > { %s941_s28 = smov (!%p286_p6, %s658_s28), 1  ;;  %vm885_vm3 = vmand %vm342_vm1, %vm355_vm2  ;;  %v735_v30 = vld [vmem:[%s933_s5] sm:$0xff]  ;;  %493 = vmatpush.bf16.msra.mxu2 %v734_v29  ;;  %v732_v36 = vld [vmem:[#allocation2 + $0x38] sm:$0xff]  ;;  %vm366_vm7 = vcmask 1046528   ;;  %vm377_vm8 = vcmask 261120   ;;  %s818_s20 = smov 96  }
   0xf   : > { %s722_s10 = sshll.u32 %s941_s28, 3  ;;  %vm891_vm6 = vmand %vm361_vm4, %vm362_vm5  ;;  %564 = vmatpush.bf16.msra.mxu3 %v735_v30  ;;  %v733_v34 = vld [vmem:[#allocation2 + $0x40] sm:$0xff]  ;;  %473 = vmatpush.bf16.msra.mxu1 %v732_v36  ;;  %v731_v38 = vld [vmem:[#allocation2 + $0x30] sm:$0xff]  ;;  %s819_s21 = smov 32   ;;  %vm380_vm11 = vcmask 523264   ;;  %vm383_vm12 = vcmask 785408  }
  0x10   : > { %s290_s13 = scalar_lea.vmem %s928_s0, %s722_s10  ;;  %v770_v37 = vld [vmem:[%s930_s2] ss:$0 sm:$0xff]  ;;  %v730_v40 = vld [vmem:[#allocation2 + $0x28] sm:$0xff]  ;;  %v728_v48 = vld [vmem:[#allocation2 + $0x18] sm:$0xff]  ;;  %s820_s22 = smov 64  }
  0x11   : > { %v297_v1 = vld [vmem:[%s290_s13] sm:$0xf]  ;;  %v298_v2 = vld [vmem:[%s290_s13 + $0x4] sm:$0xf]  ;;  %v727_v53 = vld [vmem:[#allocation2 + $0x10] sm:$0xff]  ;;  %s295_s8 = scalar_lea.vmem %s935_s7, %s722_s10 }
  0x12   : > { %v307_v3 = vunpack.c.l.b16 %v297_v1  ;;  %v308_v4 = vunpack.c.l.b16 %v298_v2  ;;  %v521_v15 = vunpack.c.l.bf16 %v297_v1  ;;  %v522_v16 = vunpack.c.l.bf16 %v298_v2  ;;  %494 = vmatpush.bf16.msra.mxu2 %v733_v34  ;;  %v729_v44 = vld [vmem:[#allocation2 + $0x20] sm:$0xff]  ;;  %v726_v61 = vld [vmem:[#allocation2 + $0x8] sm:$0xff] }
  0x13   : > { %474 = vmatpush.bf16.msra.mxu1 %v731_v38  ;;  %v725_v62 = vld [vmem:[#allocation2] sm:$0xff] }
  0x14   : > { %v309_v5 = vpack.c.b16 %v308_v4, %v307_v3  ;;  %v518_v14 = vpack.c.b16 %v308_v4, %v308_v4  ;;  %v771_v63 = vld [vmem:[%s934_s6] ss:$0 sm:$0xff] }
  0x15   : > { %v772_v17 = vld [vmem:[%s932_s4] ss:$0 sm:$0xff] }
  0x16   : > { %673 = vmatmul.msk.bf16.vlgmr.msra.gmra.mxu0 %vm316_vm0, %v309_v5  ;;  %v507_v6 = vshrl.u32 %v309_v5, 16  ;;  %v510_v7 = vshll.u32 %v309_v5, 16 }
  0x17   : > { %475 = vmatpush.bf16.msra.mxu1 %v730_v40 }
  0x18   : > { %v509_v8 = vrot.slane %v507_v6, 7  ;;  %v515_v12 = vrot.slane %v510_v7, 1 }
  0x1a   : > { %v512_v10 = vor.u32 %v510_v7, %v509_v8  ;;  %v516_v13 = vor.u32 %v515_v12, %v507_v6 }
  0x1b   : > { %476 = vmatpush.bf16.msra.mxu1 %v729_v44 }
  0x1c   : > { %v514_v11 = vsel %vm885_vm3, %v297_v1, %v512_v10  ;;  %v520_v20 = vsel %vm891_vm6, %v516_v13, %v518_v14 }
  0x1d   : > { %v523_v18 = vunpack.c.l.bf16 %v514_v11  ;;  %v524_v19 = vunpack.c.h.bf16 %v514_v11  ;;  %v531_v23 = vunpack.c.l.bf16 %v520_v20  ;;  %v532_v24 = vunpack.c.h.bf16 %v520_v20 }
  0x1f   : > { %v525_v21 = vmax.f32 %v521_v15, %v523_v18  ;;  %v526_v22 = vmax.f32 %v522_v16, %v524_v19  ;;  %477 = vmatpush.bf16.msra.mxu1 %v728_v48 }
  0x21   : > { %v533_v25 = vmax.f32 %v525_v21, %v531_v23  ;;  %v534_v26 = vmax.f32 %v526_v22, %v532_v24 }
  0x23   : > { %v535_v27 = vpack.c.bf16 %v533_v25, %v533_v25  ;;  %v536_v28 = vpack.c.bf16 %v534_v26, %v534_v26  ;;  %478 = vmatpush.bf16.msra.mxu1 %v727_v53 }
  0x25   : > { %v545_v31 = vunpack.c.l.b16 %v535_v27  ;;  %v546_v32 = vunpack.c.l.b16 %v536_v28 }
  0x27   : > { %v547_v33 = vpack.c.b16 %v546_v32, %v545_v31  ;;  %479 = vmatpush.bf16.msra.mxu1 %v726_v61 }
  0x29   : > { %719 = vmatmul.msk.bf16.vlgmr.msra.gmra.mxu3 %vm316_vm0, %v547_v33 }
  0x2b   : > { %480 = vmatpush.bf16.msra.mxu1 %v725_v62 }
  0x93   : > { %v329_v35 = vpop.f32.mrf.mxu0 }
  0x94   : > { %v330_v39 = vadd.f32 %v770_v37, %v329_v35 }
  0x96   : > { %v334_v42 = vpack.c.bf16 %v330_v39, %v330_v39 }
  0x98   : > { %v338_v46 = vunpack.c.l.b16 %v334_v42 }
  0x9b   : > { %v331_v41 = vpop.f32.mrf.mxu0 }
  0x9c   : > { %v332_v43 = vadd.f32 %v770_v37, %v331_v41 }
  0x9e   : > { %v335_v45 = vpack.c.bf16 %v332_v43, %v332_v43 }
  0xa0   : > { %v339_v47 = vunpack.c.l.b16 %v335_v45 }
  0xa2   : > { %v340_v49 = vpack.c.b16 %v339_v47, %v338_v46 }
  0xa4   : > { %v365_v50 = vrot.slane %v340_v49, 1  ;;  %v347_v51 = vshrl.u32 %v340_v49, 16  ;;  %v350_v52 = vshll.u32 %v340_v49, 16  ;;  %v341_v10 = vrot.slane %v340_v49, 7 }
  0xa6   : > { %v368_v54 = vsel %vm366_vm7, %v365_v50, 0  ;;  %v358_v55 = vrot.slane %v350_v52, 1  ;;  %v349_v56 = vrot.slane %v347_v51, 7  ;;  %v345_v11 = vsel %vm342_vm1, 0, %v341_v10 }
  0xa7   : > { %714 = vmatmul.msk.bf16.vlgmr.msra.gmra.mxu2 %vm377_vm8, %v368_v54 }
  0xa8   : > { %v359_v57 = vor.u32 %v358_v55, %v347_v51  ;;  %v352_v58 = vor.u32 %v350_v52, %v349_v56 }
  0xaa   : > { %v364_v59 = vsel %vm891_vm6, %v359_v57, 0  ;;  %v357_v60 = vsel %vm885_vm3, 0, %v352_v58 }
  0xab   : > { %375 = vrot.lane.b32.xlu1 %v364_v59, %s818_s20  ;;  %370 = vrot.lane.b32.xlu0 %v357_v60, %s819_s21 }
  0xac   : > { %v566_v0 = vpop.f32.mrf.mxu3 }
  0xad   : > { %v567_v1 = vadd.f32 %v771_v63, %v566_v0 }
  0xaf   : > { %v573_v2 = vmul.f32 0.01, %v567_v1  ;;  %vm571_vm9 = vcmp.gt.f32.partialorder %v567_v1, 0.0 }
  0xb1   : > { %v575_v6 = vsel %vm571_vm9, %v567_v1, %v573_v2 }
  0xb3   : > { %372 = vrot.lane.b32.xlu0 %v340_v49, %s820_s22 }
  0xb4   : > { %v568_v3 = vpop.f32.mrf.mxu3 }
  0xb5   : > { %v569_v4 = vadd.f32 %v771_v63, %v568_v3 }
  0xb7   : > { %vm572_vm10 = vcmp.gt.f32.partialorder %v569_v4, 0.0  ;;  %v574_v5 = vmul.f32 0.01, %v569_v4 }
  0xb9   : > { %v576_v7 = vsel %vm572_vm10, %v569_v4, %v574_v5 }
  0xba   : > { %v765_v8 = vpack.i.bf16 %v576_v7, %v575_v6 }
  0xbc   : > { %766 = vrot.lane.b32.xlu1 %v765_v8, %s818_s20 }
 0x11d   : > { %v371_v9 = vpop.permute.xlu0 %370  ;;  %v376_v14 = vpop.permute.xlu1 %375 }
 0x11e   : > { %v379_v12 = vsel %vm377_vm8, %v345_v11, %v371_v9 }
 0x125   : > { %v373_v13 = vpop.permute.xlu0 %372 }
 0x126   : > { %v382_v15 = vsel %vm380_vm11, %v379_v12, %v373_v13 }
 0x127   : > { %v385_v16 = vsel %vm383_vm12, %v382_v15, %v376_v14 }
 0x128   : > { %481 = vmatmul.bf16.vlgmr.msra.gmra.mxu1 %v385_v16 }
 0x12a   : > { %v496_v18 = vpop.f32.mrf.mxu2 }
 0x12e   : > { %v767_v26 = vpop.permute.xlu1 %766 }
 0x12f   : > { %v769_v30 = vunpack.i.h.bf16 %v767_v26  ;;  %v768_v31 = vunpack.i.l.bf16 %v767_v26 }
 0x132   : > { %v498_v25 = vpop.f32.mrf.mxu2 }
 0x1a5   : > { %v482_v19 = vpop.f32.mrf.mxu1 }
 0x1a6   : > { %v483_v20 = vadd.f32 %v772_v17, %v482_v19 }
 0x1a8   : > { %v497_v21 = vadd.f32 %v496_v18, %v483_v20 }
 0x1aa   : > { %v503_v23 = vmul.f32 0.01, %v497_v21  ;;  %vm501_vm13 = vcmp.gt.f32.partialorder %v497_v21, 0.0 }
 0x1ac   : > { %v505_v28 = vsel %vm501_vm13, %v497_v21, %v503_v23 }
 0x1ad   : > { %v484_v22 = vpop.f32.mrf.mxu1  ;;  %v585_v33 = vsel %vm383_vm12, %v505_v28, %v768_v31 }
 0x1ae   : > { %v485_v24 = vadd.f32 %v772_v17, %v484_v22 }
 0x1b0   : > { %v499_v27 = vadd.f32 %v498_v25, %v485_v24 }
 0x1b2   : > { %vm502_vm14 = vcmp.gt.f32.partialorder %v499_v27, 0.0  ;;  %v504_v29 = vmul.f32 0.01, %v499_v27 }
 0x1b4   : > { %v506_v32 = vsel %vm502_vm14, %v499_v27, %v504_v29 }
 0x1b5   : > { %v586_v34 = vsel %vm383_vm12, %v506_v32, %v769_v30 }
 0x1b6   : > { %v739_v35 = vpack.c.bf16 %v586_v34, %v585_v33 }
 0x1b8   : > { %740 = vst [vmem:[%s295_s8] sm:$0xff] %v739_v35  }
 0x1b9 PF: > { %s18_s24 = sadd.s32 1, %s813_s24  }
 0x1ba   : > { %p15_p7 = scmp.ge.s32.totalorder %s18_s24, 4  }
 0x1bc   :  { %17 = sbr.rel (!%p15_p7) target bundleno = 1 (0x1), region = 83 }
 0x1c1   :  { %612 = vsyncpa [#allocation3], 1 }
 0x1c2   :  { %614 = vsyncpa [#allocation3 + $0x1], 1 }

// kernel: forward.10
= control target key start
LH: loop header
LB: loop body
LE: loop exit
PB: predicated region body
PF: predicated region fallthrough
CT: control target
= control target key end

     0   :  { %s881_s24 = smov 0   ;;  %s1000_s0 = inlined_call_operand.vmem [shape: bf16[2,16,128], index: 0, kind: input, shape index: {}]   ;;  %s1001_s1 = inlined_call_operand.vmem [shape: bf16[128,16], index: 1, kind: input, shape index: {}]   ;;  %s1002_s2 = inlined_call_operand.vmem [shape: f32[1,16], index: 2, kind: input, shape index: {}]   ;;  %s1003_s3 = inlined_call_operand.vmem [shape: bf16[80,48], index: 3, kind: input, shape index: {}]   ;;  %s1004_s4 = inlined_call_operand.vmem [shape: f32[1,48], index: 4, kind: input, shape index: {}]   ;;  %s1005_s5 = inlined_call_operand.vmem [shape: bf16[128,16], index: 5, kind: input, shape index: {}]   ;;  %s1006_s6 = inlined_call_operand.vmem [shape: f32[1,16], index: 6, kind: input, shape index: {}]   ;;  %s1007_s7 = inlined_call_operand.vmem [shape: bf16[2,16,64], index: 7, kind: output, shape index: {}]  }
   0x1 LB: > { %s690_s25 = sadd.s32 4294967295, %s835_s24   ;;  %p694_p0 = scmp.ge.s32.totalorder %s835_s24, 1  ;;  %s835_s24 = sphi %s881_s24, %s17_s24  }
   0x2   : > { %p237_p1 = scmp.lt.s32.totalorder %s835_s24, 3 }
   0x4   : > { %p238_p2 = pnand %p694_p0, %p237_p1 }
   0x5   : > { %p269_p3 = scmp.lt.s32.totalorder (!%p238_p2), %s690_s25, 1  ;;  %s837_s27 = smov (!%p238_p2), 48  }
   0x6   : > { %241 = sbr.rel (%p238_p2) target bundleno = 461 (0x1cd), region = 48  ;;  %s838_s28 = smov (!%p238_p2), 16  }
   0x7   : > { %s839_s29 = smov (!%p238_p2), 64   ;;  %s840_s30 = smov (!%p238_p2), 32  }
   0xb   : > { %v795_v0 = vld [vmem:[%s1001_s1 + $0x38] sm:$0xff]  ;;  %v794_v1 = vld [vmem:[%s1001_s1 + $0x30] sm:$0xff]  ;;  %v793_v2 = vld [vmem:[%s1001_s1 + $0x28] sm:$0xff]  ;;  %s1013_s25 = smov (!%p269_p3, %s690_s25), 1  ;;  %vm391_vm0 = vsmask.f32 256 }
   0xc   : > { %356 = vmatpush.bf16.msra.mxu0 %v795_v0  ;;  %v792_v3 = vld [vmem:[%s1001_s1 + $0x20] sm:$0xff]  ;;  %v791_v4 = vld [vmem:[%s1001_s1 + $0x18] sm:$0xff]  ;;  %s786_s13 = sshll.u32 %s1013_s25, 3  ;;  %v790_v5 = vld [vmem:[%s1001_s1 + $0x10] sm:$0xff]  ;;  %vm397_vm1 = vcmask 1047552   ;;  %vm378_vm3 = vcmask 1040384  }
   0xd   : > { %s273_s18 = scalar_lea.vmem %s1000_s0, %s786_s13  ;;  %v789_v6 = vld [vmem:[%s1001_s1 + $0x8] sm:$0xff]  ;;  %v788_v11 = vld [vmem:[%s1001_s1] sm:$0xff]  ;;  %v808_v13 = vld [vmem:[%s1005_s5 + $0x38] sm:$0xff]  ;;  %vm398_vm2 = vsmask.f32 7424  ;;  %vm402_vm6 = vcmask 1046528   ;;  %s278_s21 = scalar_lea.vmem %s1007_s7, %s786_s13 }
   0xe   : > { %v280_v7 = vld [vmem:[%s273_s18] sm:$0xf]  ;;  %v281_v8 = vld [vmem:[%s273_s18 + $0x4] sm:$0xf]  ;;  %600 = vmatpush.bf16.msra.mxu2 %v808_v13  ;;  %v807_v14 = vld [vmem:[%s1005_s5 + $0x30] sm:$0xff]  ;;  %vm416_vm7 = vcmask 130048  }
   0xf   : > { %v304_v9 = vunpack.c.l.b16 %v280_v7  ;;  %v305_v10 = vunpack.c.l.b16 %v281_v8  ;;  %v806_v15 = vld [vmem:[%s1005_s5 + $0x28] sm:$0xff]  ;;  %v805_v16 = vld [vmem:[%s1005_s5 + $0x20] sm:$0xff]  ;;  %v804_v19 = vld [vmem:[%s1005_s5 + $0x18] sm:$0xff]  ;;  %v511_v25 = vunpack.c.l.bf16 %v281_v8  ;;  %v510_v33 = vunpack.c.l.bf16 %v280_v7 }
  0x10   : > { %357 = vmatpush.bf16.msra.mxu0 %v794_v1  ;;  %v803_v24 = vld [vmem:[%s1005_s5 + $0x10] sm:$0xff]  ;;  %vm940_vm4 = vmand %vm378_vm3, %vm391_vm0  ;;  %v802_v36 = vld [vmem:[%s1005_s5 + $0x8] sm:$0xff]  ;;  %vm419_vm8 = vcmask 261120   ;;  %vm422_vm9 = vcmask 392192   ;;  %vm425_vm10 = vcmask 523264   ;;  %vm472_vm11 = vcmask 654336  }
  0x11   : > { %v306_v12 = vpack.c.b16 %v305_v10, %v304_v9  ;;  %v507_v21 = vpack.c.b16 %v305_v10, %v305_v10  ;;  %vm944_vm5 = vmand %vm397_vm1, %vm398_vm2  ;;  %v801_v42 = vld [vmem:[%s1005_s5] sm:$0xff]  ;;  %v799_v47 = vld [vmem:[%s1003_s3 + $0x18] sm:$0xff]  ;;  %vm632_vm15 = vcmask 519168  }
  0x12   : > { %601 = vmatpush.bf16.msra.mxu2 %v807_v14  ;;  %v800_v43 = vld [vmem:[%s1003_s3 + $0x20] sm:$0xff]  ;;  %v797_v8 = vld [vmem:[%s1003_s3 + $0x8] sm:$0xff] }
  0x13   : > { %v496_v17 = vshrl.u32 %v306_v12, 16  ;;  %v499_v18 = vshll.u32 %v306_v12, 16  ;;  %v826_v44 = vld [vmem:[%s1002_s2] ss:$0 sm:$0xff]  ;;  %478 = vmatpush.bf16.msra.mxu1 %v800_v43 }
  0x14   : > { %358 = vmatpush.bf16.msra.mxu0 %v793_v2  ;;  %v796_v9 = vld [vmem:[%s1003_s3] sm:$0xff] }
  0x15   : > { %v498_v20 = vrot.slane %v496_v17, 7  ;;  %v504_v22 = vrot.slane %v499_v18, 1  ;;  %v828_v28 = vld [vmem:[%s1004_s4] ss:$0 sm:$0xff] }
  0x16   : > { %602 = vmatpush.bf16.msra.mxu2 %v806_v15 }
  0x17   : > { %v501_v23 = vor.u32 %v499_v18, %v498_v20  ;;  %v505_v26 = vor.u32 %v504_v22, %v496_v17  ;;  %479 = vmatpush.bf16.msra.mxu1 %v799_v47 }
  0x18   : > { %359 = vmatpush.bf16.msra.mxu0 %v792_v3 }
  0x19   : > { %v503_v29 = vsel %vm940_vm4, %v280_v7, %v501_v23  ;;  %v509_v30 = vsel %vm944_vm5, %v505_v26, %v507_v21  ;;  %v798_v7 = vld [vmem:[%s1003_s3 + $0x10] sm:$0xff] }
  0x1a   : > { %603 = vmatpush.bf16.msra.mxu2 %v805_v16  ;;  %v512_v31 = vunpack.c.l.bf16 %v503_v29  ;;  %v513_v32 = vunpack.c.h.bf16 %v503_v29  ;;  %v520_v34 = vunpack.c.l.bf16 %v509_v30  ;;  %v521_v35 = vunpack.c.h.bf16 %v509_v30 }
  0x1b   : > { %480 = vmatpush.bf16.msra.mxu1 %v798_v7 }
  0x1c   : > { %360 = vmatpush.bf16.msra.mxu0 %v791_v4  ;;  %v514_v37 = vmax.f32 %v510_v33, %v512_v31  ;;  %v515_v38 = vmax.f32 %v511_v25, %v513_v32 }
  0x1e   : > { %604 = vmatpush.bf16.msra.mxu2 %v804_v19  ;;  %v522_v39 = vmax.f32 %v514_v37, %v520_v34  ;;  %v523_v40 = vmax.f32 %v515_v38, %v521_v35 }
  0x1f   : > { %481 = vmatpush.bf16.msra.mxu1 %v797_v8 }
  0x20   : > { %361 = vmatpush.bf16.msra.mxu0 %v790_v5  ;;  %v524_v45 = vpack.c.bf16 %v522_v39, %v522_v39  ;;  %v525_v46 = vpack.c.bf16 %v523_v40, %v523_v40 }
  0x22   : > { %605 = vmatpush.bf16.msra.mxu2 %v803_v24  ;;  %v548_v48 = vunpack.c.l.b16 %v524_v45  ;;  %v549_v49 = vunpack.c.l.b16 %v525_v46 }
  0x23   : > { %482 = vmatpush.bf16.msra.mxu1 %v796_v9 }
  0x24   : > { %362 = vmatpush.bf16.msra.mxu0 %v789_v6  ;;  %v550_v51 = vpack.c.b16 %v549_v49, %v548_v48 }
  0x26   : > { %606 = vmatpush.bf16.msra.mxu2 %v802_v36 }
  0x28   : > { %363 = vmatpush.bf16.msra.mxu0 %v788_v11 }
  0x2a   : > { %607 = vmatpush.bf16.msra.mxu2 %v801_v42 }
  0x2b   : > { %364 = vmatmul.bf16.vlgmr.msra.gmra.mxu0 %v306_v12  ;;  %v827_v12 = vld [vmem:[%s1006_s6] ss:$0 sm:$0xff] }
  0x2d   : > { %608 = vmatmul.bf16.vlgmr.msra.gmra.mxu2 %v550_v51 }
  0xa8   : > { %v365_v41 = vpop.f32.mrf.mxu0 }
  0xa9   : > { %v366_v50 = vadd.f32 %v826_v44, %v365_v41 }
  0xab   : > { %v370_v53 = vpack.c.bf16 %v366_v50, %v366_v50 }
  0xad   : > { %v374_v56 = vunpack.c.l.b16 %v370_v53 }
  0xb0   : > { %v367_v52 = vpop.f32.mrf.mxu0  ;;  %v609_v13 = vpop.f32.mrf.mxu2 }
  0xb1   : > { %v368_v54 = vadd.f32 %v826_v44, %v367_v52  ;;  %v610_v14 = vadd.f32 %v827_v12, %v609_v13 }
  0xb3   : > { %v371_v55 = vpack.c.bf16 %v368_v54, %v368_v54  ;;  %v616_v17 = vmul.f32 0.01, %v610_v14  ;;  %vm614_vm12 = vcmp.gt.f32.partialorder %v610_v14, 0.0 }
  0xb5   : > { %v375_v57 = vunpack.c.l.b16 %v371_v55  ;;  %v618_v25 = vsel %vm614_vm12, %v610_v14, %v616_v17 }
  0xb7   : > { %v376_v58 = vpack.c.b16 %v375_v57, %v374_v56 }
  0xb8   : > { %v611_v19 = vpop.f32.mrf.mxu2 }
  0xb9   : > { %v383_v59 = vshrl.u32 %v376_v58, 16  ;;  %v386_v60 = vshll.u32 %v376_v58, 16  ;;  %v377_v61 = vrot.slane %v376_v58, 7  ;;  %v401_v5 = vrot.slane %v376_v58, 1 }
  0xba   : > { %v612_v22 = vadd.f32 %v827_v12, %v611_v19 }
  0xbb   : > { %v394_v62 = vrot.slane %v386_v60, 1  ;;  %v385_v63 = vrot.slane %v383_v59, 7  ;;  %v381_v0 = vsel %vm378_vm3, 0, %v377_v61  ;;  %v404_v6 = vsel %vm402_vm6, %v401_v5, 0 }
  0xbc   : > { %v617_v24 = vmul.f32 0.01, %v612_v22  ;;  %vm615_vm13 = vcmp.gt.f32.partialorder %v612_v22, 0.0 }
  0xbd   : > { %v395_v1 = vor.u32 %v394_v62, %v383_v59  ;;  %v388_v2 = vor.u32 %v386_v60, %v385_v63 }
  0xbe   : > { %v619_v26 = vsel %vm615_vm13, %v612_v22, %v617_v24 }
  0xbf   : > { %v400_v3 = vsel %vm944_vm5, %v395_v1, 0  ;;  %v393_v4 = vsel %vm940_vm4, 0, %v388_v2  ;;  %v821_v27 = vpack.i.bf16 %v619_v26, %v618_v25 }
  0xc0   : > { %411 = vrot.lane.b32.xlu1 %v400_v3, %s837_s27  ;;  %406 = vrot.lane.b32.xlu0 %v393_v4, %s838_s28 }
  0xc1   : > { %822 = vrot.lane.b32.xlu2 %v821_v27, %s837_s27 }
  0xc8   : > { %414 = vrot.lane.b32.xlu1 %v404_v6, %s839_s29  ;;  %408 = vrot.lane.b32.xlu0 %v376_v58, %s840_s30 }
 0x11b   : > { %v823_v31 = vpop.permute.xlu2 %822 }
 0x11c   : > { %v824_v33 = vunpack.i.l.bf16 %v823_v31  ;;  %v825_v40 = vunpack.i.h.bf16 %v823_v31 }
 0x132   : > { %v412_v10 = vpop.permute.xlu1 %411  ;;  %v407_v11 = vpop.permute.xlu0 %406 }
 0x133   : > { %v418_v15 = vsel %vm416_vm7, %v381_v0, %v407_v11 }
 0x13a   : > { %v409_v16 = vpop.permute.xlu0 %408  ;;  %v415_v20 = vpop.permute.xlu1 %414 }
 0x13b   : > { %v421_v18 = vsel %vm419_vm8, %v418_v15, %v409_v16 }
 0x13c   : > { %v424_v21 = vsel %vm422_vm9, %v421_v18, %v412_v10 }
 0x13d   : > { %v427_v23 = vsel %vm425_vm10, %v424_v21, %v415_v20 }
 0x13e   : > { %751 = vmatmul.msk.bf16.vlgmr.msra.gmra.mxu1 %vm472_vm11, %v427_v23 }
 0x1bb   : > { %v484_v29 = vpop.f32.mrf.mxu1 }
 0x1bc   : > { %v485_v30 = vadd.f32 %v828_v28, %v484_v29 }
 0x1be   : > { %vm489_vm14 = vcmp.gt.f32.partialorder %v485_v30, 0.0  ;;  %v491_v32 = vmul.f32 0.01, %v485_v30 }
 0x1c0   : > { %v493_v34 = vsel %vm489_vm14, %v485_v30, %v491_v32 }
 0x1c1   : > { %v628_v35 = vsel %vm422_vm9, %v493_v34, %v824_v33 }
 0x1c2   : > { %v630_v36 = vpack.c.bf16 %v628_v35, %v628_v35 }
 0x1c3   : > { %v486_v37 = vpop.f32.mrf.mxu1 }
 0x1c4   : > { %633 = vst.msk [vmem:[%s278_s21] sm:$0xf] %vm632_vm15, %v630_v36  ;;  %v487_v38 = vadd.f32 %v828_v28, %v486_v37 }
 0x1c6   : > { %vm490_vm0 = vcmp.gt.f32.partialorder %v487_v38, 0.0  ;;  %v492_v39 = vmul.f32 0.01, %v487_v38 }
 0x1c8   : > { %v494_v41 = vsel %vm490_vm0, %v487_v38, %v492_v39 }
 0x1c9   : > { %v629_v42 = vsel %vm422_vm9, %v494_v41, %v825_v40 }
 0x1ca   : > { %v631_v43 = vpack.c.bf16 %v629_v42, %v629_v42 }
 0x1cc   : > { %634 = vst.msk [vmem:[%s278_s21 + $0x4] sm:$0xf] %vm632_vm15, %v631_v43 }
 0x1cd PF: > { %s17_s24 = sadd.s32 1, %s835_s24  }
 0x1ce   : > { %p14_p4 = scmp.ge.s32.totalorder %s17_s24, 4  }
 0x1d0   :  { %16 = sbr.rel (!%p14_p4) target bundleno = 1 (0x1), region = 78 }

// kernel: forward.7
= control target key start
LH: loop header
LB: loop body
LE: loop exit
PB: predicated region body
PF: predicated region fallthrough
CT: control target
= control target key end

     0   :  { %s660_s24 = smov 0   ;;  %s731_s0 = inlined_call_operand.vmem [shape: bf16[2,16,16], index: 0, kind: input, shape index: {}]   ;;  %s732_s1 = inlined_call_operand.vmem [shape: bf16[16,4], index: 1, kind: input, shape index: {}]   ;;  %s733_s2 = inlined_call_operand.vmem [shape: f32[1,4], index: 2, kind: input, shape index: {}]   ;;  %s734_s3 = inlined_call_operand.vmem [shape: bf16[20,12], index: 3, kind: input, shape index: {}]   ;;  %s735_s4 = inlined_call_operand.vmem [shape: f32[1,12], index: 4, kind: input, shape index: {}]   ;;  %s736_s5 = inlined_call_operand.vmem [shape: bf16[16,4], index: 5, kind: input, shape index: {}]   ;;  %s737_s6 = inlined_call_operand.vmem [shape: f32[1,4], index: 6, kind: input, shape index: {}]   ;;  %s738_s7 = inlined_call_operand.vmem [shape: bf16[2,16,16], index: 7, kind: output, shape index: {}]  }
   0x1 LB: > { %s557_s25 = sadd.s32 4294967295, %s614_s24   ;;  %p561_p0 = scmp.ge.s32.totalorder %s614_s24, 1  ;;  %s614_s24 = sphi %s660_s24, %s17_s24  }
   0x2   : > { %p237_p1 = scmp.lt.s32.totalorder %s614_s24, 3 }
   0x4   : > { %p238_p2 = pnand %p561_p0, %p237_p1 }
   0x5   : > { %p269_p3 = scmp.lt.s32.totalorder (!%p238_p2), %s557_s25, 1  ;;  %s616_s13 = smov (!%p238_p2), 12  }
   0x6   : > { %241 = sbr.rel (%p238_p2) target bundleno = 437 (0x1b5), region = 48  ;;  %s617_s14 = smov (!%p238_p2), 4  }
   0x7   : > { %s618_s15 = smov (!%p238_p2), 16   ;;  %s619_s16 = smov (!%p238_p2), 8  }
   0xb   : > { %v585_v0 = vld [vmem:[%s732_s1] sm:$0xff]  ;;  %s744_s25 = smov (!%p269_p3, %s557_s25), 1  ;;  %vm299_vm0 = vcmask 130048   ;;  %vm338_vm1 = vsmask.f32 256  ;;  %vm344_vm2 = vcmask 1047552  }
   0xc   : > { %310 = vmatpush.bf16.msra.mxu0 %v585_v0  ;;  %s583_s28 = sshll.u32 %s744_s25, 3  ;;  %vm345_vm3 = vsmask.f32 7424  ;;  %vm325_vm4 = vcmask 1040384   ;;  %v587_v28 = vld [vmem:[%s736_s5] sm:$0xff]  ;;  %vm349_vm7 = vcmask 1046528  }
   0xd   : > { %s273_s8 = scalar_lea.vmem %s731_s0, %s583_s28  ;;  %vm681_vm5 = vmand %vm325_vm4, %vm338_vm1  ;;  %v605_v29 = vld [vmem:[%s733_s2] ss:$0 sm:$0xff]  ;;  %474 = vmatpush.bf16.msra.mxu2 %v587_v28  ;;  %v376_v55 = vld [vmem:[%s734_s3 + $0x8] sm:$0x3]  ;;  %vm393_vm8 = vcmask 1041408   ;;  %vm363_vm9 = vcmask 31744   ;;  %s278_s30 = scalar_lea.vmem %s738_s7, %s583_s28 }
   0xe   : > { %v280_v1 = vld [vmem:[%s273_s8] sm:$0xf]  ;;  %v281_v2 = vld [vmem:[%s273_s8 + $0x4] sm:$0xf]  ;;  %vm685_vm6 = vmand %vm344_vm2, %vm345_vm3  ;;  %v386_v56 = vunpack.c.l.b16 %v376_v55  ;;  %vm366_vm10 = vcmask 64512   ;;  %vm369_vm11 = vcmask 97280  }
   0xf   : > { %v290_v3 = vunpack.c.l.b16 %v280_v1  ;;  %v291_v4 = vunpack.c.l.b16 %v281_v2  ;;  %v432_v12 = vunpack.c.l.bf16 %v281_v2  ;;  %v431_v15 = vunpack.c.l.bf16 %v280_v1  ;;  %v586_v59 = vld [vmem:[%s734_s3] sm:$0xff] }
  0x10   : > { %v388_v57 = vpack.c.b16 %v386_v56, %v386_v56  ;;  %v606_v62 = vld [vmem:[%s737_s6] ss:$0 sm:$0xff]  ;;  %vm390_vm12 = vcmask 162816  }
  0x11   : > { %v292_v5 = vpack.c.b16 %v291_v4, %v290_v3  ;;  %v428_v9 = vpack.c.b16 %v291_v4, %v291_v4  ;;  %v607_v14 = vld [vmem:[%s735_s4] ss:$0 sm:$0xff] }
  0x12   : > { %v395_v58 = vsel %vm393_vm8, %v388_v57, 0 }
  0x13   : > { %570 = vmatmul.msk.bf16.vlgmr.msra.gmra.mxu0 %vm299_vm0, %v292_v5  ;;  %v417_v6 = vshrl.u32 %v292_v5, 16  ;;  %v420_v7 = vshll.u32 %v292_v5, 16  ;;  %403 = vmatpush.bf16.msra.mxu1 %v395_v58 }
  0x15   : > { %v419_v8 = vrot.slane %v417_v6, 7  ;;  %v425_v10 = vrot.slane %v420_v7, 1 }
  0x17   : > { %v422_v11 = vor.u32 %v420_v7, %v419_v8  ;;  %v426_v13 = vor.u32 %v425_v10, %v417_v6  ;;  %404 = vmatpush.bf16.msra.mxu1 %v586_v59 }
  0x19   : > { %v424_v17 = vsel %vm681_vm5, %v280_v1, %v422_v11  ;;  %v430_v18 = vsel %vm685_vm6, %v426_v13, %v428_v9 }
  0x1a   : > { %v433_v19 = vunpack.c.l.bf16 %v424_v17  ;;  %v434_v20 = vunpack.c.h.bf16 %v424_v17  ;;  %v441_v21 = vunpack.c.l.bf16 %v430_v18  ;;  %v442_v22 = vunpack.c.h.bf16 %v430_v18 }
  0x1c   : > { %v435_v23 = vmax.f32 %v431_v15, %v433_v19  ;;  %v436_v24 = vmax.f32 %v432_v12, %v434_v20 }
  0x1e   : > { %v443_v25 = vmax.f32 %v435_v23, %v441_v21  ;;  %v444_v26 = vmax.f32 %v436_v24, %v442_v22 }
  0x20   : > { %v445_v30 = vpack.c.bf16 %v443_v25, %v443_v25  ;;  %v446_v31 = vpack.c.bf16 %v444_v26, %v444_v26 }
  0x22   : > { %v455_v32 = vunpack.c.l.b16 %v445_v30  ;;  %v456_v33 = vunpack.c.l.b16 %v446_v31 }
  0x24   : > { %v457_v35 = vpack.c.b16 %v456_v33, %v455_v32 }
  0x26   : > { %580 = vmatmul.msk.bf16.vlgmr.msra.gmra.mxu2 %vm299_vm0, %v457_v35 }
  0x90   : > { %v312_v27 = vpop.f32.mrf.mxu0 }
  0x91   : > { %v313_v34 = vadd.f32 %v605_v29, %v312_v27 }
  0x93   : > { %v317_v37 = vpack.c.bf16 %v313_v34, %v313_v34 }
  0x95   : > { %v321_v40 = vunpack.c.l.b16 %v317_v37 }
  0x98   : > { %v314_v36 = vpop.f32.mrf.mxu0 }
  0x99   : > { %v315_v38 = vadd.f32 %v605_v29, %v314_v36 }
  0x9b   : > { %v318_v39 = vpack.c.bf16 %v315_v38, %v315_v38 }
  0x9d   : > { %v322_v41 = vunpack.c.l.b16 %v318_v39 }
  0x9f   : > { %v323_v42 = vpack.c.b16 %v322_v41, %v321_v40 }
  0xa1   : > { %v330_v43 = vshrl.u32 %v323_v42, 16  ;;  %v333_v44 = vshll.u32 %v323_v42, 16  ;;  %v324_v45 = vrot.slane %v323_v42, 7  ;;  %v348_v53 = vrot.slane %v323_v42, 1 }
  0xa3   : > { %v341_v46 = vrot.slane %v333_v44, 1  ;;  %v332_v47 = vrot.slane %v330_v43, 7  ;;  %v328_v48 = vsel %vm325_vm4, 0, %v324_v45  ;;  %v351_v54 = vsel %vm349_vm7, %v348_v53, 0 }
  0xa5   : > { %v342_v49 = vor.u32 %v341_v46, %v330_v43  ;;  %v335_v50 = vor.u32 %v333_v44, %v332_v47 }
  0xa7   : > { %v347_v51 = vsel %vm685_vm6, %v342_v49, 0  ;;  %v340_v52 = vsel %vm681_vm5, 0, %v335_v50 }
  0xa8   : > { %358 = vrot.lane.b32.xlu1 %v347_v51, %s616_s13  ;;  %353 = vrot.lane.b32.xlu0 %v340_v52, %s617_s14 }
  0xa9   : > { %v476_v63 = vpop.f32.mrf.mxu2 }
  0xaa   : > { %v477_v0 = vadd.f32 %v606_v62, %v476_v63 }
  0xac   : > { %v483_v3 = vmul.f32 0.01, %v477_v0  ;;  %vm481_vm13 = vcmp.gt.f32.partialorder %v477_v0, 0.0 }
  0xae   : > { %v485_v11 = vsel %vm481_vm13, %v477_v0, %v483_v3 }
  0xb0   : > { %361 = vrot.lane.b32.xlu1 %v351_v54, %s618_s15  ;;  %355 = vrot.lane.b32.xlu0 %v323_v42, %s619_s16 }
  0xb1   : > { %v478_v5 = vpop.f32.mrf.mxu2 }
  0xb2   : > { %v479_v8 = vadd.f32 %v606_v62, %v478_v5 }
  0xb4   : > { %v484_v10 = vmul.f32 0.01, %v479_v8  ;;  %vm482_vm14 = vcmp.gt.f32.partialorder %v479_v8, 0.0 }
  0xb6   : > { %v486_v12 = vsel %vm482_vm14, %v479_v8, %v484_v10 }
  0xb7   : > { %v600_v13 = vpack.i.bf16 %v486_v12, %v485_v11 }
  0xb9   : > { %601 = vrot.lane.b32.xlu2 %v600_v13, %s616_s13 }
 0x113   : > { %v602_v17 = vpop.permute.xlu2 %601 }
 0x114   : > { %v603_v19 = vunpack.i.l.bf16 %v602_v17  ;;  %v604_v26 = vunpack.i.h.bf16 %v602_v17 }
 0x11a   : > { %v359_v60 = vpop.permute.xlu1 %358  ;;  %v354_v61 = vpop.permute.xlu0 %353 }
 0x11b   : > { %v365_v1 = vsel %vm363_vm9, %v328_v48, %v354_v61 }
 0x122   : > { %v356_v2 = vpop.permute.xlu0 %355  ;;  %v362_v6 = vpop.permute.xlu1 %361 }
 0x123   : > { %v368_v4 = vsel %vm366_vm10, %v365_v1, %v356_v2 }
 0x124   : > { %v371_v7 = vsel %vm369_vm11, %v368_v4, %v359_v60 }
 0x125   : > { %v373_v9 = vsel %vm299_vm0, %v371_v7, %v362_v6  ;;  %vm499_vm0 = vcmask 125952  }
 0x126   : > { %575 = vmatmul.msk.bf16.vlgmr.msra.gmra.mxu1 %vm390_vm12, %v373_v9 }
 0x1a3   : > { %v406_v15 = vpop.f32.mrf.mxu1 }
 0x1a4   : > { %v407_v16 = vadd.f32 %v607_v14, %v406_v15 }
 0x1a6   : > { %vm411_vm15 = vcmp.gt.f32.partialorder %v407_v16, 0.0  ;;  %v413_v18 = vmul.f32 0.01, %v407_v16 }
 0x1a8   : > { %v415_v20 = vsel %vm411_vm15, %v407_v16, %v413_v18 }
 0x1a9   : > { %v495_v21 = vsel %vm369_vm11, %v415_v20, %v603_v19 }
 0x1aa   : > { %v497_v22 = vpack.c.bf16 %v495_v21, %v495_v21 }
 0x1ab   : > { %v408_v23 = vpop.f32.mrf.mxu1 }
 0x1ac   : > { %500 = vst.msk [vmem:[%s278_s30] sm:$0xf] %vm499_vm0, %v497_v22  ;;  %v409_v24 = vadd.f32 %v607_v14, %v408_v23 }
 0x1ae   : > { %vm412_vm1 = vcmp.gt.f32.partialorder %v409_v24, 0.0  ;;  %v414_v25 = vmul.f32 0.01, %v409_v24 }
 0x1b0   : > { %v416_v27 = vsel %vm412_vm1, %v409_v24, %v414_v25 }
 0x1b1   : > { %v496_v28 = vsel %vm369_vm11, %v416_v27, %v604_v26 }
 0x1b2   : > { %v498_v29 = vpack.c.bf16 %v496_v28, %v496_v28 }
 0x1b4   : > { %501 = vst.msk [vmem:[%s278_s30 + $0x4] sm:$0xf] %vm499_vm0, %v498_v29 }
 0x1b5 PF: > { %s17_s24 = sadd.s32 1, %s614_s24  }
 0x1b6   : > { %p14_p4 = scmp.ge.s32.totalorder %s17_s24, 4  }
 0x1b8   :  { %16 = sbr.rel (!%p14_p4) target bundleno = 1 (0x1), region = 78 }

// kernel: forward.11
= control target key start
LH: loop header
LB: loop body
LE: loop exit
PB: predicated region body
PF: predicated region fallthrough
CT: control target
= control target key end

     0   :  { %vm106_vm0 = vcmask 523264   ;;  %vm148_vm1 = vcmask 1040384   ;;  %vm171_vm2 = vsmask.f32 256  ;;  %vm181_vm4 = vcmask 1047552   ;;  %s961_s21 = smov 48   ;;  %s1251_s2 = inlined_call_operand.vmem [shape: bf16[64,16], index: 2, kind: input, shape index: {}]   ;;  %s1252_s3 = inlined_call_operand.vmem [shape: f32[1,16], index: 3, kind: input, shape index: {}]   ;;  %s1253_s0 = inlined_call_operand.vmem [shape: bf16[2,16,64], index: 0, kind: input, shape index: {}]   ;;  %s1254_s6 = inlined_call_operand.vmem [shape: bf16[64,16], index: 6, kind: input, shape index: {}]   ;;  %s1255_s8 = inlined_call_operand.vmem [shape: bf16[128,64], index: 8, kind: input, shape index: {}]   ;;  %s1256_s7 = inlined_call_operand.vmem [shape: f32[1,16], index: 7, kind: input, shape index: {}]   ;;  %s1257_s4 = inlined_call_operand.vmem [shape: bf16[80,48], index: 4, kind: input, shape index: {}]   ;;  %s1258_s9 = inlined_call_operand.vmem [shape: f32[1,64], index: 9, kind: input, shape index: {}]   ;;  %s1259_s1 = inlined_call_operand.vmem [shape: bf16[2,16,128], index: 1, kind: input, shape index: {}]   ;;  %s1260_s5 = inlined_call_operand.vmem [shape: f32[1,48], index: 5, kind: input, shape index: {}]   ;;  %s1261_s11 = inlined_call_operand.vmem [shape: f32[1,64], index: 11, kind: input, shape index: {}]   ;;  %s1262_s10 = inlined_call_operand.vmem [shape: bf16[64,64], index: 10, kind: input, shape index: {}]   ;;  %s1263_s12 = inlined_call_operand.vmem [shape: bf16[64,16], index: 12, kind: input, shape index: {}]   ;;  %s1264_s13 = inlined_call_operand.vmem [shape: f32[1,16], index: 13, kind: input, shape index: {}]   ;;  %s1265_s14 = inlined_call_operand.vmem [shape: bf16[16,1], index: 14, kind: input, shape index: {}]   ;;  %s1266_s15 = inlined_call_operand.<no memory space> [shape: f32[1,1], index: 15, kind: input, shape index: {}]   ;;  %s1267_s16 = inlined_call_operand.vmem [shape: f32[2,1], index: 16, kind: output, shape index: {}]  }
   0x1   :  { %1269 = sst [smem:[#allocation3_spill]] %s1251_s2  ;;  %v56_v3 = vld [vmem:[%s1253_s0] sm:$0xf]  ;;  %v57_v4 = vld [vmem:[%s1253_s0 + $0x4] sm:$0xf]  ;;  %v927_v19 = vld [vmem:[%s1254_s6 + $0x18] sm:$0xff] }
   0x2   :  { %s1270_s23 = sld [smem:[#allocation3_spill]]  ;;  %v76_v5 = vunpack.c.l.b16 %v56_v3  ;;  %v77_v6 = vunpack.c.l.b16 %v57_v4  ;;  %v58_v9 = vld [vmem:[%s1253_s0 + $0x8] sm:$0xf]  ;;  %v59_v10 = vld [vmem:[%s1253_s0 + $0xc] sm:$0xf]  ;;  %430 = vmatpush.bf16.msra.mxu2 %v927_v19  ;;  %v342_v22 = vunpack.c.l.bf16 %v56_v3  ;;  %v343_v23 = vunpack.c.l.bf16 %v57_v4  ;;  %vm1081_vm3 = vmand %vm148_vm1, %vm171_vm2  ;;  %s962_s22 = smov 16  }
   0x3   :  { %v78_v11 = vunpack.c.l.b16 %v58_v9  ;;  %v79_v12 = vunpack.c.l.b16 %v59_v10  ;;  %v926_v25 = vld [vmem:[%s1254_s6 + $0x10] sm:$0xff]  ;;  %vm182_vm5 = vsmask.f32 7424  ;;  %v925_v36 = vld [vmem:[%s1254_s6 + $0x8] sm:$0xff]  ;;  %v924_v43 = vld [vmem:[%s1254_s6] sm:$0xff]  ;;  %v344_v51 = vunpack.c.l.bf16 %v58_v9  ;;  %s963_s26 = smov 64  }
   0x4   :  { %v80_v8 = vpack.c.b16 %v77_v6, %v76_v5  ;;  %v336_v21 = vpack.c.b16 %v77_v6, %v77_v6  ;;  %vm1090_vm6 = vmand %vm181_vm4, %vm182_vm5  ;;  %v345_v52 = vunpack.c.l.bf16 %v59_v10  ;;  %v952_v58 = vld [vmem:[%s1252_s3] ss:$0 sm:$0xff]  ;;  %vm188_vm7 = vcmask 1046528   ;;  %s964_s27 = smov 32   ;;  %v931_v24 = vld [vmem:[%s1255_s8 + $0x8] sm:$0xff] }
   0x5   :  { %v81_v13 = vpack.c.b16 %v79_v12, %v78_v11  ;;  %v337_v50 = vpack.c.b16 %v79_v12, %v79_v12  ;;  %v922_v27 = vld [vmem:[%s1257_s4 + $0x18] sm:$0xff]  ;;  %vm215_vm10 = vcmask 130048   ;;  %vm225_vm11 = vcmask 392192  }
   0x6   :  { %v314_v14 = vshrl.u32 %v80_v8, 16  ;;  %v317_v15 = vshll.u32 %v80_v8, 16  ;;  %431 = vmatpush.bf16.msra.mxu2 %v926_v25  ;;  %vm220_vm13 = vcmask 261120   ;;  %vm278_vm14 = vcmask 654336  }
   0x7   :  { %v320_v35 = vshrl.u32 %v81_v13, 16  ;;  %v323_v37 = vshll.u32 %v81_v13, 16 }
   0x8   :  { %v918_v0 = vld [vmem:[%s1270_s23 + $0x18] sm:$0xff]  ;;  %v917_v1 = vld [vmem:[%s1270_s23 + $0x10] sm:$0xff]  ;;  %v916_v2 = vld [vmem:[%s1270_s23 + $0x8] sm:$0xff]  ;;  %v316_v16 = vrot.slane %v314_v14, 7  ;;  %v330_v17 = vrot.slane %v317_v15, 1 }
   0x9   :  { %117 = vmatpush.bf16.msra.mxu0 %v918_v0  ;;  %v915_v7 = vld [vmem:[%s1270_s23] sm:$0xff]  ;;  %v322_v42 = vrot.slane %v320_v35, 7  ;;  %v332_v44 = vrot.slane %v323_v37, 1 }
   0xa   :  { %v319_v18 = vor.u32 %v317_v15, %v316_v16  ;;  %v331_v20 = vor.u32 %v330_v17, %v314_v14  ;;  %432 = vmatpush.bf16.msra.mxu2 %v925_v36  ;;  %v937_v15 = vld [vmem:[%s1255_s8 + $0x38] sm:$0xff] }
   0xb   :  { %v325_v48 = vor.u32 %v323_v37, %v322_v42  ;;  %v333_v49 = vor.u32 %v332_v44, %v320_v35  ;;  %561 = vmatpush.bf16.msra.mxu3 %v937_v15 }
   0xc   :  { %v328_v26 = vsel %vm1081_vm3, %v56_v3, %v319_v18  ;;  %v340_v30 = vsel %vm1090_vm6, %v331_v20, %v336_v21  ;;  %v936_v18 = vld [vmem:[%s1255_s8 + $0x30] sm:$0xff] }
   0xd   :  { %118 = vmatpush.bf16.msra.mxu0 %v917_v1  ;;  %v346_v28 = vunpack.c.l.bf16 %v328_v26  ;;  %v347_v29 = vunpack.c.h.bf16 %v328_v26  ;;  %v362_v33 = vunpack.c.l.bf16 %v340_v30  ;;  %v363_v34 = vunpack.c.h.bf16 %v340_v30 }
   0xe   :  { %433 = vmatpush.bf16.msra.mxu2 %v924_v43  ;;  %v329_v53 = vsel %vm1081_vm3, %v58_v9, %v325_v48  ;;  %v341_v54 = vsel %vm1090_vm6, %v333_v49, %v337_v50 }
   0xf   :  { %v350_v31 = vmax.f32 %v342_v22, %v346_v28  ;;  %v351_v32 = vmax.f32 %v343_v23, %v347_v29  ;;  %v348_v55 = vunpack.c.l.bf16 %v329_v53  ;;  %v349_v56 = vunpack.c.h.bf16 %v329_v53  ;;  %562 = vmatpush.bf16.msra.mxu3 %v936_v18  ;;  %v935_v28 = vld [vmem:[%s1255_s8 + $0x28] sm:$0xff] }
  0x10   :  { %v364_v61 = vunpack.c.l.bf16 %v341_v54  ;;  %v365_v62 = vunpack.c.h.bf16 %v341_v54 }
  0x11   :  { %119 = vmatpush.bf16.msra.mxu0 %v916_v2  ;;  %v366_v38 = vmax.f32 %v350_v31, %v362_v33  ;;  %v367_v39 = vmax.f32 %v351_v32, %v363_v34  ;;  %v352_v59 = vmax.f32 %v344_v51, %v348_v55  ;;  %v353_v60 = vmax.f32 %v345_v52, %v349_v56  ;;  %v934_v34 = vld [vmem:[%s1255_s8 + $0x20] sm:$0xff] }
  0x12   :  { %v923_v55 = vld [vmem:[%s1257_s4 + $0x20] sm:$0xff] }
  0x13   :  { %v370_v40 = vpack.c.bf16 %v366_v38, %v366_v38  ;;  %v371_v41 = vpack.c.bf16 %v367_v39, %v367_v39  ;;  %v368_v63 = vmax.f32 %v352_v59, %v364_v61  ;;  %v369_v0 = vmax.f32 %v353_v60, %v365_v62  ;;  %563 = vmatpush.bf16.msra.mxu3 %v935_v28  ;;  %v933_v39 = vld [vmem:[%s1255_s8 + $0x18] sm:$0xff]  ;;  %v930_v56 = vld [vmem:[%s1255_s8] sm:$0xff]  ;;  %v920_v59 = vld [vmem:[%s1257_s4 + $0x8] sm:$0xff] }
  0x14   :  { %286 = vmatpush.bf16.msra.mxu1 %v923_v55  ;;  %v919_v60 = vld [vmem:[%s1257_s4] sm:$0xff]  ;;  %v929_v61 = vld [vmem:[%s1259_s1 + $0x8] sm:$0xff] }
  0x15   :  { %120 = vmatpush.bf16.msra.mxu0 %v915_v7  ;;  %v390_v45 = vunpack.c.l.b16 %v370_v40  ;;  %v391_v46 = vunpack.c.l.b16 %v371_v41  ;;  %v372_v2 = vpack.c.bf16 %v368_v63, %v368_v63  ;;  %v373_v3 = vpack.c.bf16 %v369_v0, %v369_v0  ;;  %v953_v62 = vld [vmem:[%s1256_s7] ss:$0 sm:$0xff] }
  0x17   :  { %v394_v47 = vpack.c.b16 %v391_v46, %v390_v45  ;;  %v392_v5 = vunpack.c.l.b16 %v372_v2  ;;  %v393_v6 = vunpack.c.l.b16 %v373_v3  ;;  %564 = vmatpush.bf16.msra.mxu3 %v934_v34  ;;  %v932_v45 = vld [vmem:[%s1255_s8 + $0x10] sm:$0xff]  ;;  %v955_v34 = vld [vmem:[%s1260_s5] ss:$0 sm:$0xff] }
  0x18   :  { %794 = vmatmul.msk.bf16.vlgmr.msra.gmra.mxu0 %vm106_vm0, %v80_v8  ;;  %287 = vmatpush.bf16.msra.mxu1 %v922_v27 }
  0x19   :  { %834 = vmatmul.msk.bf16.vlgmr.msra.gmra.mxu2 %vm106_vm0, %v394_v47  ;;  %v395_v9 = vpack.c.b16 %v393_v6, %v392_v5 }
  0x1b   :  { %565 = vmatpush.bf16.msra.mxu3 %v933_v39 }
  0x1f   :  { %566 = vmatpush.bf16.msra.mxu3 %v932_v45 }
  0x23   :  { %567 = vmatpush.bf16.msra.mxu3 %v931_v24 }
  0x27   :  { %568 = vmatpush.bf16.msra.mxu3 %v930_v56 }
  0x28   :  { %795 = vmatmul.msk.bf16.gmra.mxu0 %vm106_vm0, %v81_v13 }
  0x29   :  { %835 = vmatmul.msk.bf16.gmra.mxu2 %vm106_vm0, %v395_v9 }
  0x95   :  { %v122_v57 = vpop.f32.mrf.mxu0 }
  0x96   :  { %v123_v1 = vadd.f32 %v952_v58, %v122_v57  ;;  %v921_v57 = vld [vmem:[%s1257_s4 + $0x10] sm:$0xff] }
  0x97   :  { %288 = vmatpush.bf16.msra.mxu1 %v921_v57 }
  0x98   :  { %v132_v7 = vpack.c.bf16 %v123_v1, %v123_v1 }
  0x9a   :  { %v140_v11 = vunpack.c.l.b16 %v132_v7 }
  0x9b   :  { %289 = vmatpush.bf16.msra.mxu1 %v920_v59  ;;  %v939_v59 = vld [vmem:[%s1262_s10 + $0x8] sm:$0xff] }
  0x9c   :  { %v435_v63 = vpop.f32.mrf.mxu2 }
  0x9d   :  { %v124_v4 = vpop.f32.mrf.mxu0  ;;  %v436_v0 = vadd.f32 %v953_v62, %v435_v63  ;;  %v965_v63 = vmov 16.0  }
  0x9e   :  { %v125_v8 = vadd.f32 %v952_v58, %v124_v4  ;;  %959 = vrcp.f32 %v965_v63  ;;  %v957_v63 = vld [vmem:[%s1264_s13] ss:$0 sm:$0xff] }
  0x9f   :  { %290 = vmatpush.bf16.msra.mxu1 %v919_v60  ;;  %v449_v1 = vmul.f32 0.01, %v436_v0  ;;  %vm445_vm8 = vcmp.gt.f32.partialorder %v436_v0, 0.0 }
  0xa0   :  { %v133_v10 = vpack.c.bf16 %v125_v8, %v125_v8 }
  0xa1   :  { %v453_v4 = vsel %vm445_vm8, %v436_v0, %v449_v1 }
  0xa2   :  { %v141_v12 = vunpack.c.l.b16 %v133_v10 }
  0xa4   :  { %v144_v13 = vpack.c.b16 %v141_v12, %v140_v11  ;;  %v437_v2 = vpop.f32.mrf.mxu2 }
  0xa5   :  { %v127_v14 = vpop.f32.mrf.mxu0  ;;  %v438_v3 = vadd.f32 %v953_v62, %v437_v2 }
  0xa6   :  { %v155_v16 = vshrl.u32 %v144_v13, 16  ;;  %v158_v17 = vshll.u32 %v144_v13, 16  ;;  %v146_v19 = vrot.slane %v144_v13, 7  ;;  %v128_v20 = vadd.f32 %v952_v58, %v127_v14 }
  0xa7   :  { %v186_v37 = vrot.slane %v144_v13, 1  ;;  %v450_v5 = vmul.f32 0.01, %v438_v3  ;;  %vm446_vm9 = vcmp.gt.f32.partialorder %v438_v3, 0.0 }
  0xa8   :  { %v175_v21 = vrot.slane %v158_v17, 1  ;;  %v157_v22 = vrot.slane %v155_v16, 7  ;;  %v1118_v23 = vsel %vm148_vm1, 0, %v146_v19  ;;  %v134_v29 = vpack.c.bf16 %v128_v20, %v128_v20 }
  0xa9   :  { %v190_v41 = vsel %vm188_vm7, %v186_v37, 0  ;;  %v454_v8 = vsel %vm446_vm9, %v438_v3, %v450_v5  ;;  %v938_v5 = vld [vmem:[%s1262_s10] sm:$0xff] }
  0xaa   :  { %v176_v25 = vor.u32 %v175_v21, %v155_v16  ;;  %v160_v26 = vor.u32 %v158_v17, %v157_v22  ;;  %v142_v35 = vunpack.c.l.b16 %v134_v29 }
  0xac   :  { %v184_v30 = vsel %vm1090_vm6, %v176_v25, 0  ;;  %v173_v31 = vsel %vm1081_vm3, 0, %v160_v26  ;;  %v440_v9 = vpop.f32.mrf.mxu2 }
  0xad   :  { %v129_v32 = vpop.f32.mrf.mxu0  ;;  %205 = vrot.lane.b32.xlu1 %v184_v30, %s961_s21  ;;  %195 = vrot.lane.b32.xlu0 %v173_v31, %s962_s22  ;;  %v441_v10 = vadd.f32 %v953_v62, %v440_v9  ;;  %v960_v9 = vpop.eup %959 }
  0xae   :  { %v130_v33 = vadd.f32 %v952_v58, %v129_v32  ;;  %v928_v58 = vld [vmem:[%s1259_s1] sm:$0xff]  ;;  %vm619_vm9 = vweird.f32 %v960_v9 }
  0xaf   :  { %569 = vmatmul.bf16.vlgmr.msra.gmra.mxu3 %v928_v58  ;;  %v451_v11 = vmul.f32 0.01, %v441_v10  ;;  %vm447_vm12 = vcmp.gt.f32.partialorder %v441_v10, 0.0 }
  0xb0   :  { %v135_v36 = vpack.c.bf16 %v130_v33, %v130_v33 }
  0xb1   :  { %v455_v15 = vsel %vm447_vm12, %v441_v10, %v451_v11 }
  0xb2   :  { %v143_v38 = vunpack.c.l.b16 %v135_v36  ;;  %v954_v36 = vld [vmem:[%s1258_s9] ss:$0 sm:$0xff] }
  0xb4   :  { %v145_v40 = vpack.c.b16 %v143_v38, %v142_v35  ;;  %v442_v20 = vpop.f32.mrf.mxu2 }
  0xb5   :  { %211 = vrot.lane.b32.xlu1 %v190_v41, %s963_s26  ;;  %199 = vrot.lane.b32.xlu0 %v144_v13, %s964_s27  ;;  %v443_v21 = vadd.f32 %v953_v62, %v442_v20 }
  0xb6   :  { %v162_v42 = vshrl.u32 %v145_v40, 16  ;;  %v165_v43 = vshll.u32 %v145_v40, 16  ;;  %v147_v44 = vrot.slane %v145_v40, 7  ;;  %v187_v47 = vrot.slane %v145_v40, 1 }
  0xb7   :  { %v452_v22 = vmul.f32 0.01, %v443_v21  ;;  %vm448_vm15 = vcmp.gt.f32.partialorder %v443_v21, 0.0 }
  0xb8   :  { %v164_v46 = vrot.slane %v162_v42, 7  ;;  %v177_v48 = vrot.slane %v165_v43, 1  ;;  %v1140_v49 = vsel %vm148_vm1, 0, %v147_v44  ;;  %v192_v53 = vsel %vm188_vm7, %v187_v47, 0 }
  0xba   :  { %v167_v50 = vor.u32 %v165_v43, %v164_v46  ;;  %v178_v51 = vor.u32 %v177_v48, %v162_v42  ;;  %v941_v48 = vld [vmem:[%s1262_s10 + $0x18] sm:$0xff] }
  0xbb   :  { %675 = vmatpush.bf16.msrb.mxu0 %v941_v48 }
  0xbc   :  { %v174_v52 = vsel %vm1081_vm3, 0, %v167_v50  ;;  %v185_v54 = vsel %vm1090_vm6, %v178_v51, 0 }
  0xbd   :  { %197 = vrot.lane.b32.xlu2 %v174_v52, %s962_s22  ;;  %213 = vrot.lane.b32.xlu1 %v192_v53, %s963_s26  ;;  %v940_v53 = vld [vmem:[%s1262_s10 + $0x10] sm:$0xff] }
  0xbe   :  { %207 = vrot.lane.b32.xlu0 %v185_v54, %s961_s21 }
  0xbf   :  { %574 = vmatmul.bf16.gmra.mxu3 %v929_v61  ;;  %676 = vmatpush.bf16.msrb.mxu0 %v940_v53 }
  0xc3   :  { %677 = vmatpush.bf16.msrb.mxu0 %v939_v59 }
  0xc5   :  { %201 = vrot.lane.b32.xlu2 %v145_v40, %s964_s27  ;;  %465 = vrot.lane.b32.xlu1 %v455_v15, %s961_s21  ;;  %v615_v15 = vmul.f32 16.0, %v960_v9 }
  0xc6   :  { %463 = vrot.lane.b32.xlu0 %v454_v8, %s961_s21 }
  0xc7   :  { %678 = vmatpush.bf16.msrb.mxu0 %v938_v5 }
  0xcd   :  { %461 = vrot.lane.b32.xlu2 %v453_v4, %s961_s21 }
 0x117   :  { %v198_v16 = vpop.permute.xlu2 %197 }
 0x118   :  { %v219_v28 = vsel %vm215_vm10, %v1140_v49, %v198_v16  ;;  %v945_v16 = vld [vmem:[%s1263_s12 + $0x18] sm:$0xff] }
 0x119   :  { %731 = vmatpush.bf16.msrb.mxu2 %v945_v16 }
 0x11f   :  { %v206_v6 = vpop.permute.xlu1 %205  ;;  %v196_v7 = vpop.permute.xlu0 %195 }
 0x120   :  { %v217_v12 = vsel %vm215_vm10, %v1118_v23, %v196_v7  ;;  %v456_v23 = vsel %vm448_vm15, %v443_v21, %v452_v22  ;;  %v202_v25 = vpop.permute.xlu2 %201  ;;  %v944_v22 = vld [vmem:[%s1263_s12 + $0x10] sm:$0xff] }
 0x121   :  { %467 = vrot.lane.b32.xlu2 %v456_v23, %s961_s21  ;;  %v224_v29 = vsel %vm220_vm13, %v219_v28, %v202_v25  ;;  %732 = vmatpush.bf16.msrb.mxu2 %v944_v22 }
 0x127   :  { %v200_v13 = vpop.permute.xlu0 %199  ;;  %v212_v17 = vpop.permute.xlu1 %211 }
 0x128   :  { %v222_v14 = vsel %vm220_vm13, %v217_v12, %v200_v13  ;;  %v462_v39 = vpop.permute.xlu2 %461 }
 0x129   :  { %v227_v18 = vsel %vm225_vm11, %v222_v14, %v206_v6 }
 0x12a   :  { %v231_v19 = vsel %vm106_vm0, %v227_v18, %v212_v17 }
 0x12b   :  { %816 = vmatmul.msk.bf16.vlgmr.msra.gmra.mxu1 %vm278_vm14, %v231_v19 }
 0x12f   :  { %v214_v30 = vpop.permute.xlu1 %213 }
 0x130   :  { %v208_v26 = vpop.permute.xlu0 %207 }
 0x131   :  { %v229_v31 = vsel %vm225_vm11, %v224_v29, %v208_v26  ;;  %v616_v26 = vsub.f32 1.0, %v615_v15 }
 0x132   :  { %v233_v32 = vsel %vm106_vm0, %v229_v31, %v214_v30  ;;  %v570_v33 = vpop.f32.mrf.mxu3  ;;  %v943_v30 = vld [vmem:[%s1263_s12 + $0x8] sm:$0xff] }
 0x133   :  { %v571_v40 = vadd.f32 %v954_v36, %v570_v33  ;;  %733 = vmatpush.bf16.msrb.mxu2 %v943_v30 }
 0x137   :  { %v466_v62 = vpop.permute.xlu1 %465 }
 0x138   :  { %v464_v51 = vpop.permute.xlu0 %463 }
 0x13a   :  { %v572_v43 = vpop.f32.mrf.mxu3 }
 0x13b   :  { %817 = vmatmul.msk.bf16.gmra.mxu1 %vm278_vm14, %v233_v32  ;;  %v573_v50 = vadd.f32 %v954_v36, %v572_v43 }
 0x142   :  { %v575_v24 = vpop.f32.mrf.mxu3 }
 0x143   :  { %v576_v3 = vadd.f32 %v954_v36, %v575_v24  ;;  %v946_v24 = vld [vmem:[%s1265_s14] sm:$0xff] }
 0x144   :  { %766 = vmatpush.bf16.msrb.mxu1 %v946_v24 }
 0x14a   :  { %v577_v12 = vpop.f32.mrf.mxu3 }
 0x14b   :  { %v578_v18 = vadd.f32 %v954_v36, %v577_v12 }
 0x17b   :  { %v468_v17 = vpop.permute.xlu2 %467 }
 0x1a8   :  { %v292_v35 = vpop.f32.mrf.mxu1 }
 0x1a9   :  { %v293_v37 = vadd.f32 %v955_v34, %v292_v35  ;;  %v617_v35 = vmul.f32 %v960_v9, %v616_v26 }
 0x1ab   :  { %vm302_vm1 = vcmp.gt.f32.partialorder %v293_v37, 0.0  ;;  %v306_v38 = vmul.f32 0.01, %v293_v37 }
 0x1ad   :  { %v310_v41 = vsel %vm302_vm1, %v293_v37, %v306_v38 }
 0x1ae   :  { %v473_v42 = vsel %vm225_vm11, %v310_v41, %v462_v39  ;;  %v618_v39 = vadd.f32 %v960_v9, %v617_v35 }
 0x1af   :  { %v580_v45 = vadd.f32 %v571_v40, %v473_v42 }
 0x1b0   :  { %v294_v44 = vpop.f32.mrf.mxu1  ;;  %v620_v43 = vsel %vm619_vm9, %v960_v9, %v618_v39 }
 0x1b1   :  { %v295_v46 = vadd.f32 %v955_v34, %v294_v44  ;;  %v588_v49 = vmul.f32 0.01, %v580_v45  ;;  %vm584_vm3 = vcmp.gt.f32.partialorder %v580_v45, 0.0 }
 0x1b3   :  { %vm303_vm2 = vcmp.gt.f32.partialorder %v295_v46, 0.0  ;;  %v307_v47 = vmul.f32 0.01, %v295_v46  ;;  %v592_v57 = vsel %vm584_vm3, %v580_v45, %v588_v49 }
 0x1b4   :  { %v596_v0 = vsel %vm106_vm0, %v592_v57, 0.0 }
 0x1b5   :  { %v311_v52 = vsel %vm303_vm2, %v295_v46, %v307_v47 }
 0x1b6   :  { %v474_v54 = vsel %vm225_vm11, %v311_v52, %v464_v51 }
 0x1b7   :  { %v581_v55 = vadd.f32 %v573_v50, %v474_v54 }
 0x1b8   :  { %v297_v27 = vpop.f32.mrf.mxu1 }
 0x1b9   :  { %vm585_vm4 = vcmp.gt.f32.partialorder %v581_v55, 0.0  ;;  %v589_v56 = vmul.f32 0.01, %v581_v55  ;;  %v298_v58 = vadd.f32 %v955_v34, %v297_v27  ;;  %v956_v27 = vld [vmem:[%s1261_s11] ss:$0 sm:$0xff] }
 0x1bb   :  { %v593_v60 = vsel %vm585_vm4, %v581_v55, %v589_v56  ;;  %vm304_vm5 = vcmp.gt.f32.partialorder %v298_v58, 0.0  ;;  %v308_v61 = vmul.f32 0.01, %v298_v58  ;;  %v942_v55 = vld [vmem:[%s1263_s12] sm:$0xff] }
 0x1bc   :  { %v597_v1 = vsel %vm106_vm0, %v593_v60, 0.0  ;;  %734 = vmatpush.bf16.msrb.mxu2 %v942_v55 }
 0x1bd   :  { %v598_v2 = vadd.f32 %v597_v1, %v596_v0  ;;  %v312_v4 = vsel %vm304_vm5, %v298_v58, %v308_v61 }
 0x1be   :  { %v475_v6 = vsel %vm225_vm11, %v312_v4, %v466_v62  ;;  %v21_v62 = vstv %s1266_s15 }
 0x1bf   :  { %v599_v7 = vrot.slane %v598_v2, 4  ;;  %v582_v10 = vadd.f32 %v576_v3, %v475_v6  ;;  %22 = vst [vmem:[#allocation2] sm:$0x1] %v21_v62 }
 0x1c0   :  { %v299_v8 = vpop.f32.mrf.mxu1 }
 0x1c1   :  { %v300_v11 = vadd.f32 %v955_v34, %v299_v8  ;;  %v600_v13 = vadd.f32 %v599_v7, %v598_v2  ;;  %v590_v19 = vmul.f32 0.01, %v582_v10  ;;  %vm586_vm7 = vcmp.gt.f32.partialorder %v582_v10, 0.0 }
 0x1c3   :  { %vm305_vm6 = vcmp.gt.f32.partialorder %v300_v11, 0.0  ;;  %v309_v14 = vmul.f32 0.01, %v300_v11  ;;  %v601_v23 = vrot.slane %v600_v13, 2  ;;  %v594_v28 = vsel %vm586_vm7, %v582_v10, %v590_v19 }
 0x1c4   :  { %v605_v33 = vsel %vm106_vm0, %v594_v28, 0.0 }
 0x1c5   :  { %v313_v20 = vsel %vm305_vm6, %v300_v11, %v309_v14  ;;  %v602_v31 = vadd.f32 %v601_v23, %v600_v13 }
 0x1c6   :  { %v476_v21 = vsel %vm225_vm11, %v313_v20, %v468_v17  ;;  %vm641_vm11 = vcmask 1041409   ;;  %v958_v6 = vld [vmem:[#allocation2] ss:$0 sm:$0xff] }
 0x1c7   :  { %v583_v25 = vadd.f32 %v578_v18, %v476_v21  ;;  %v603_v37 = vrot.slane %v602_v31, 1 }
 0x1c9   :  { %vm587_vm8 = vcmp.gt.f32.partialorder %v583_v25, 0.0  ;;  %v591_v29 = vmul.f32 0.01, %v583_v25  ;;  %v604_v42 = vadd.f32 %v603_v37, %v602_v31 }
 0x1cb   :  { %v595_v32 = vsel %vm587_vm8, %v583_v25, %v591_v29  ;;  %v621_v46 = vmul.f32 %v620_v43, %v604_v42 }
 0x1cc   :  { %v606_v34 = vsel %vm106_vm0, %v595_v32, 0.0 }
 0x1cd   :  { %v607_v36 = vadd.f32 %v606_v34, %v605_v33  ;;  %v623_v49 = vpack.c.bf16 %v621_v46, %v621_v46 }
 0x1cf   :  { %v608_v38 = vrot.slane %v607_v36, 4  ;;  %v639_v51 = vunpack.c.l.b16 %v623_v49 }
 0x1d1   :  { %v609_v40 = vadd.f32 %v608_v38, %v607_v36 }
 0x1d3   :  { %v610_v41 = vrot.slane %v609_v40, 2 }
 0x1d5   :  { %v611_v44 = vadd.f32 %v610_v41, %v609_v40 }
 0x1d7   :  { %v612_v45 = vrot.slane %v611_v44, 1 }
 0x1d9   :  { %v613_v47 = vadd.f32 %v612_v45, %v611_v44 }
 0x1db   :  { %v622_v48 = vmul.f32 %v620_v43, %v613_v47 }
 0x1dd   :  { %v624_v50 = vpack.c.bf16 %v622_v48, %v622_v48 }
 0x1df   :  { %v640_v52 = vunpack.c.l.b16 %v624_v50 }
 0x1e1   :  { %v642_v53 = vsel %vm641_vm11, %v640_v52, %v639_v51 }
 0x1e2   :  { %v643_v54 = vpack.c.b16 %v642_v53, %v642_v53 }
 0x1e4   :  { %892 = vmatmul.msk.bf16.vlgmr.msrb.gmra.mxu0 %vm106_vm0, %v643_v54 }
 0x261   :  { %v680_v56 = vpop.f32.mrf.mxu0 }
 0x262   :  { %v681_v57 = vadd.f32 %v956_v27, %v680_v56 }
 0x264   :  { %vm684_vm12 = vcmp.gt.f32.partialorder %v681_v57, 0.0  ;;  %v685_v58 = vmul.f32 0.01, %v681_v57 }
 0x266   :  { %v686_v59 = vsel %vm684_vm12, %v681_v57, %v685_v58 }
 0x267   :  { %v687_v60 = vpack.c.bf16 %v686_v59, %v686_v59 }
 0x269   :  { %v682_v61 = vpop.f32.mrf.mxu0  ;;  %909 = vmatmul.msk.bf16.vlgmr.msrb.gmra.mxu2 %vm106_vm0, %v687_v60  ;;  %vm772_vm0 = vcmask 1024  }
 0x2ec   :  { %v736_v0 = vpop.f32.mrf.mxu2 }
 0x2ed   :  { %v737_v1 = vadd.f32 %v957_v63, %v736_v0 }
 0x2ef   :  { %vm740_vm13 = vcmp.gt.f32.partialorder %v737_v1, 0.0  ;;  %v741_v2 = vmul.f32 0.01, %v737_v1 }
 0x2f1   :  { %v742_v3 = vsel %vm740_vm13, %v737_v1, %v741_v2 }
 0x2f2   :  { %v743_v4 = vpack.c.bf16 %v742_v3, %v742_v3 }
 0x2f4   :  { %v738_v5 = vpop.f32.mrf.mxu2  ;;  %914 = vmatmul.msk.bf16.vlgmr.msrb.gmra.mxu1 %vm215_vm10, %v743_v4 }
 0x371   :  { %v768_v7 = vpop.f32.mrf.mxu1 }
 0x372   :  { %v769_v8 = vadd.f32 %v958_v6, %v768_v7 }
 0x374   :  { %773 = vst.msk [vmem:[%s1267_s16] sm:$0x3] %vm772_vm0, %v769_v8 }
 0x379   :  { %v770_v9 = vpop.f32.mrf.mxu1 }

</bundles_post_ra>
